<compile_context>
chip_gen: v7x
topology: tpu7x:2x2x1
jax: 0.10.0
libtpu: 0.0.40
codegen_flags: <defaults>
</compile_context>

<pallas_src>
import jax
import jax.numpy as jnp
from jax import lax
from jax.experimental import pallas as pl
from jax.experimental.pallas import tpu as pltpu

EPS = 1e-5
_LANES = 128


# --------------------------------------------------------------------------------------
# Kernels
# --------------------------------------------------------------------------------------

def _bn_relu_conv3x3_s2_kernel(x_ref, scale_ref, shift_ref, w_ref, o_ref, lhs_ref):
    """BN -> ReLU -> 3x3 conv (stride 2, pad 1) for G images.

    x_ref:     (G, 4, OH+1, OW+1, Cin)  zero-pre-padded, phase-decomposed raw input:
               slab[g, 2q+p, 1+i, 1+j, c] = x[g, 2i+q, 2j+p, c]; row/col 0 are zeros.
    scale_ref: (1, Cin)   folded BN scale
    shift_ref: (1, Cin)   folded BN shift
    w_ref:     (9*Cin, Coutp) bf16, row block t = kh*3 + kw
    o_ref:     (G, OH, OW, Coutp)
    lhs_ref:   (G, OH, OW, 9*Cin) bf16 VMEM im2col scratch (fully rewritten each step)
    """
    g, _, ohp, owp, cin = x_ref.shape
    oh, ow = ohp - 1, owp - 1
    coutp = o_ref.shape[-1]
    k = lhs_ref.shape[-1]

    scale = scale_ref[...].astype(jnp.float32)          # (1, Cin), broadcasts over rows
    shift = shift_ref[...].astype(jnp.float32)

    x = x_ref[...].astype(jnp.float32)                  # (G, 4, OH+1, OW+1, Cin)
    act = jnp.maximum(x * scale + shift, 0.0)           # BN + ReLU in f32 (v5e-safe)

    # The slab's top row / left column are raw zeros; zero the *activation* there.
    r = lax.broadcasted_iota(jnp.int32, (ohp, owp, cin), 0)
    c = lax.broadcasted_iota(jnp.int32, (ohp, owp, cin), 1)
    act = act * ((r > 0) & (c > 0)).astype(jnp.float32)

    act = act.astype(jnp.bfloat16)                      # bf16 operands for the MXU

    # im2col: 9 static slices packed channel-wise into the bf16 scratch.
    for kh in range(3):
        q = 0 if kh == 1 else 1          # row phase used by this tap
        r0 = 0 if kh == 0 else 1         # padded-row start (0 => reads the zero pad row)
        for kw in range(3):
            p = 0 if kw == 1 else 1      # col phase
            c0 = 0 if kw == 0 else 1
            t = kh * 3 + kw
            f = 2 * q + p
            lhs_ref[:, :, :, t * cin:(t + 1) * cin] = act[:, f, r0:r0 + oh, c0:c0 + ow, :]

    lhs = lhs_ref[...].reshape(g * oh * ow, k)          # (G*OH*OW, 9*Cin) bf16
    out = jnp.dot(lhs, w_ref[...], preferred_element_type=jnp.float32)
    o_ref[...] = out.reshape(g, oh, ow, coutp).astype(o_ref.dtype)


def _bn_relu_conv3x3_s1_kernel(x_ref, scale_ref, shift_ref, w_ref, o_ref, lhs_ref):
    """BN -> ReLU -> 3x3 conv (stride 1, pad 1) for G images (double path).

    x_ref:     (G, H+2, W+2, Cinp)  spatially zero-pre-padded NHWC input
    scale_ref: (1, Cinp)   folded BN scale  (zero on padded channels)
    shift_ref: (1, Cinp)   folded BN shift  (zero on padded channels)
    w_ref:     (9*Cinp, Coutp) bf16, row block t = kh*3 + kw
    o_ref:     (G, H, W, Coutp)
    lhs_ref:   (G, H, W, 9*Cinp) bf16 VMEM im2col scratch
    """
    g, hp, wp, cinp = x_ref.shape
    h, w = hp - 2, wp - 2
    coutp = o_ref.shape[-1]
    k = lhs_ref.shape[-1]

    scale = scale_ref[...].astype(jnp.float32)
    shift = shift_ref[...].astype(jnp.float32)

    x = x_ref[...].astype(jnp.float32)
    act = jnp.maximum(x * scale + shift, 0.0)

    # Zero the activation on the spatial pad border (all four sides here).
    r = lax.broadcasted_iota(jnp.int32, (hp, wp, cinp), 0)
    c = lax.broadcasted_iota(jnp.int32, (hp, wp, cinp), 1)
    valid = ((r > 0) & (r <= h) & (c > 0) & (c <= w)).astype(jnp.float32)
    act = (act * valid).astype(jnp.bfloat16)

    for kh in range(3):
        for kw in range(3):
            t = kh * 3 + kw
            lhs_ref[:, :, :, t * cinp:(t + 1) * cinp] = act[:, kh:kh + h, kw:kw + w, :]

    lhs = lhs_ref[...].reshape(g * h * w, k)
    out = jnp.dot(lhs, w_ref[...], preferred_element_type=jnp.float32)
    o_ref[...] = out.reshape(g, h, w, coutp).astype(o_ref.dtype)


# --------------------------------------------------------------------------------------
# Wrappers
# --------------------------------------------------------------------------------------

def _round_up(x, m):
    return (x + m - 1) // m * m


def _fold_bn(gamma, beta, mean, var):
    scale = gamma.astype(jnp.float32) * jax.lax.rsqrt(var.astype(jnp.float32) + EPS)
    shift = beta.astype(jnp.float32) - mean.astype(jnp.float32) * scale
    return scale, shift


def _pack_weights(w_oihw, cin_pad, cout_pad):
    """PyTorch (Cout, Cin, 3, 3) -> bf16 (9*cin_pad, cout_pad); row block t = kh*3+kw."""
    cout, cin, kh, kw = w_oihw.shape
    w = jnp.pad(w_oihw.astype(jnp.float32),
                ((0, cout_pad - cout), (0, cin_pad - cin), (0, 0), (0, 0)))
    w = jnp.transpose(w, (2, 3, 1, 0)).reshape(kh * kw * cin_pad, cout_pad)
    return w.astype(jnp.bfloat16)


def _pick_images_per_step(batch, rows_per_image, bytes_per_image,
                          max_rows=2048, max_bytes=8 << 20):
    """Largest divisor of batch keeping per-step VMEM and matmul M within budget."""
    g = 1
    for cand in range(1, batch + 1):
        if batch % cand:
            continue
        if cand * rows_per_image <= max_rows and cand * bytes_per_image <= max_bytes:
            g = cand
    return g


def _bn_relu_conv3x3_s2(x_nchw, scale, shift, w_mat, coutp):
    """conv1(relu(bn1(x))) in lane-padded NHWC: (B, H//2, W//2, coutp)."""
    B, Cin, H, W = x_nchw.shape
    if H % 2 or W % 2:
        # TODO(synk): odd spatial sizes (output = ceil(H/2)) are not supported by the
        # phase decomposition used for the stride-2 conv.
        raise ValueError("stride-2 Pallas kernel requires even H and W")
    OH, OW = H // 2, W // 2
    K = w_mat.shape[0]                       # 9 * Cin
    itemsize = jnp.dtype(x_nchw.dtype).itemsize

    # Layout glue (fused XLA copy): NCHW -> zero-pre-padded phase-decomposed NHWC slab
    #   slab[b, 2q+p, 1+i, 1+j, c] = x[b, c, 2i+q, 2j+p]
    xp = jnp.transpose(x_nchw, (0, 2, 3, 1)).reshape(B, OH, 2, OW, 2, Cin)
    xp = jnp.transpose(xp, (0, 2, 4, 1, 3, 5)).reshape(B, 4, OH, OW, Cin)
    xp = jnp.pad(xp, ((0, 0), (0, 0), (1, 0), (1, 0), (0, 0)))

    bytes_per_image = (2 * 4 * (OH + 1) * (OW + 1) * Cin * itemsize   # dbl-buffered in
                       + OH * OW * K * 2                              # bf16 im2col
                       + 2 * OH * OW * coutp * itemsize)              # dbl-buffered out
    G = _pick_images_per_step(B, OH * OW, bytes_per_image)

    cost = pl.CostEstimate(
        flops=2 * B * OH * OW * K * coutp + 5 * B * 4 * (OH + 1) * (OW + 1) * Cin,
        transcendentals=0,
        bytes_accessed=(B * 4 * (OH + 1) * (OW + 1) * Cin + B * OH * OW * coutp) * itemsize
        + K * coutp * 2 + 2 * Cin * 4,
    )

    return pl.pallas_call(
        _bn_relu_conv3x3_s2_kernel,
        out_shape=jax.ShapeDtypeStruct((B, OH, OW, coutp), x_nchw.dtype),
        grid=(B // G,),
        in_specs=[
            pl.BlockSpec((G, 4, OH + 1, OW + 1, Cin), lambda b: (b, 0, 0, 0, 0)),
            pl.BlockSpec((1, Cin), lambda b: (0, 0)),
            pl.BlockSpec((1, Cin), lambda b: (0, 0)),
            pl.BlockSpec((K, coutp), lambda b: (0, 0)),
        ],
        out_specs=pl.BlockSpec((G, OH, OW, coutp), lambda b: (b, 0, 0, 0)),
        scratch_shapes=[pltpu.VMEM((G, OH, OW, K), jnp.bfloat16)],
        compiler_params=pltpu.CompilerParams(dimension_semantics=("parallel",)),
        cost_estimate=cost,
    )(xp, scale.reshape(1, Cin), shift.reshape(1, Cin), w_mat)


def _bn_relu_conv3x3_s1(y_nhwc, scale, shift, w_mat, coutp):
    """conv2(relu(bn2(y))) in lane-padded NHWC (same spatial size)."""
    B, H, W, Cinp = y_nhwc.shape
    K = w_mat.shape[0]                       # 9 * Cinp
    itemsize = jnp.dtype(y_nhwc.dtype).itemsize

    yp = jnp.pad(y_nhwc, ((0, 0), (1, 1), (1, 1), (0, 0)))   # spatial zero pre-pad

    bytes_per_image = (2 * (H + 2) * (W + 2) * Cinp * itemsize
                       + H * W * K * 2
                       + 2 * H * W * coutp * itemsize)
    G = _pick_images_per_step(B, H * W, bytes_per_image)

    cost = pl.CostEstimate(
        flops=2 * B * H * W * K * coutp + 5 * B * (H + 2) * (W + 2) * Cinp,
        transcendentals=0,
        bytes_accessed=(B * (H + 2) * (W + 2) * Cinp + B * H * W * coutp) * itemsize
        + K * coutp * 2 + 2 * Cinp * 4,
    )

    return pl.pallas_call(
        _bn_relu_conv3x3_s1_kernel,
        out_shape=jax.ShapeDtypeStruct((B, H, W, coutp), y_nhwc.dtype),
        grid=(B // G,),
        in_specs=[
            pl.BlockSpec((G, H + 2, W + 2, Cinp), lambda b: (b, 0, 0, 0)),
            pl.BlockSpec((1, Cinp), lambda b: (0, 0)),
            pl.BlockSpec((1, Cinp), lambda b: (0, 0)),
            pl.BlockSpec((K, coutp), lambda b: (0, 0)),
        ],
        out_specs=pl.BlockSpec((G, H, W, coutp), lambda b: (b, 0, 0, 0)),
        scratch_shapes=[pltpu.VMEM((G, H, W, K), jnp.bfloat16)],
        compiler_params=pltpu.CompilerParams(dimension_semantics=("parallel",)),
        cost_estimate=cost,
    )(yp, scale.reshape(1, Cinp), shift.reshape(1, Cinp), w_mat)


def downsample_b_forward(x_nchw, params, *, double=False, nchw_output=True):
    """Pallas forward of DownSampleB: conv1(relu(bn1(x))) [+ conv2(relu(bn2(.)))]."""
    B, Cin, H, W = x_nchw.shape
    cout = params["conv1"].shape[0]
    coutp = _round_up(cout, _LANES)          # lane-dense output / full MXU columns

    scale1, shift1 = _fold_bn(*params["bn1"])
    w1 = _pack_weights(params["conv1"], cin_pad=Cin, cout_pad=coutp)
    y = _bn_relu_conv3x3_s2(x_nchw, scale1, shift1, w1, coutp)   # (B, H/2, W/2, coutp)

    if double:
        scale2, shift2 = _fold_bn(*params["bn2"])
        scale2 = jnp.pad(scale2, (0, coutp - cout))              # padded channels -> 0
        shift2 = jnp.pad(shift2, (0, coutp - cout))
        w2 = _pack_weights(params["conv2"], cin_pad=coutp, cout_pad=coutp)
        y = _bn_relu_conv3x3_s1(y, scale2, shift2, w2, coutp)    # stays padded NHWC

    y = y[..., :cout]                         # drop lane padding once, at the end
    if nchw_output:
        # TODO(synk): skip this full-tensor relayout when the consumer accepts NHWC.
        y = jnp.transpose(y, (0, 3, 1, 2))
    return y


# --------------------------------------------------------------------------------------
# Reference + test harness
# --------------------------------------------------------------------------------------

def init_params(key, indepth, outdepth):
    ks = jax.random.split(key, 10)

    def bn_params(k0, k1, k2, k3, c):
        gamma = 1.0 + 0.1 * jax.random.normal(k0, (c,), jnp.float32)
        beta = 0.1 * jax.random.normal(k1, (c,), jnp.float32)
        rmean = 0.1 * jax.random.normal(k2, (c,), jnp.float32)
        rvar = jnp.abs(1.0 + 0.1 * jax.random.normal(k3, (c,), jnp.float32))
        return gamma, beta, rmean, rvar

    bn1 = bn_params(ks[0], ks[1], ks[2], ks[3], indepth)
    w1 = jax.random.normal(ks[4], (outdepth, indepth, 3, 3), jnp.float32) / jnp.sqrt(9.0 * indepth)
    bn2 = bn_params(ks[5], ks[6], ks[7], ks[8], outdepth)
    w2 = jax.random.normal(ks[9], (outdepth, outdepth, 3, 3), jnp.float32) / jnp.sqrt(9.0 * outdepth)
    return {"bn1": bn1, "conv1": w1, "bn2": bn2, "conv2": w2}


def _bn_relu_ref(x, gamma, beta, mean, var):
    scale = gamma / jnp.sqrt(var + EPS)
    shift = beta - mean * scale
    return jnp.maximum(x * scale.reshape(1, -1, 1, 1) + shift.reshape(1, -1, 1, 1), 0.0)


def reference_forward(x, params, *, double=False):
    y = _bn_relu_ref(x, *params["bn1"])
    y = lax.conv_general_dilated(y, params["conv1"], window_strides=(2, 2),
                                 padding=((1, 1), (1, 1)),
                                 dimension_numbers=("NCHW", "OIHW", "NCHW"),
                                 precision=lax.Precision.HIGHEST)
    if double:
        y = _bn_relu_ref(y, *params["bn2"])
        y = lax.conv_general_dilated(y, params["conv2"], window_strides=(1, 1),
                                     padding=((1, 1), (1, 1)),
                                     dimension_numbers=("NCHW", "OIHW", "NCHW"),
                                     precision=lax.Precision.HIGHEST)
    return y


if __name__ == "__main__":
    key = jax.random.PRNGKey(0)
    k_x, k_p = jax.random.split(key)

    B, indepth, outdepth, H, W = 2, 8, 16, 16, 16
    x = jax.random.normal(k_x, (B, indepth, H, W), jnp.float32)
    params = init_params(k_p, indepth, outdepth)

    # Default module configuration: double=False.
    out = jax.block_until_ready(
        jax.jit(lambda v: downsample_b_forward(v, params, double=False))(x))
    ref = reference_forward(x, params, double=False)
    assert out.shape == (B, outdepth, H // 2, W // 2), out.shape
    # bf16 MXU operands -> looser tolerance than the old f32 x f32 matmul.
    assert jnp.allclose(out, ref, atol=5e-2, rtol=5e-2), "mismatch vs reference (double=False)"

    # double=True configuration (second BN + ReLU + stride-1 conv).
    out2 = jax.block_until_ready(
        jax.jit(lambda v: downsample_b_forward(v, params, double=True))(x))
    ref2 = reference_forward(x, params, double=True)
    assert out2.shape == (B, outdepth, H // 2, W // 2), out2.shape
    assert jnp.allclose(out2, ref2, atol=5e-2, rtol=5e-2), "mismatch vs reference (double=True)"

    print("KERNEL_OK")
</pallas_src>

<mosaic_0001>
module attributes {stable_mosaic.version = 11 : i64} {
  func.func @_bn_relu_conv3x3_s2_kernel(%arg0: i32, %arg1: memref<2x4x9x9x8xf32, #tpu.memory_space<vmem>>, %arg2: memref<1x8xf32, #tpu.memory_space<vmem>>, %arg3: memref<1x8xf32, #tpu.memory_space<vmem>>, %arg4: memref<72x128xbf16, #tpu.memory_space<vmem>>, %arg5: memref<2x8x8x128xf32, #tpu.memory_space<vmem>>, %arg6: memref<2x8x8x72xbf16, #tpu.memory_space<vmem>>) attributes {dimension_semantics = [#tpu.dimension_semantics<parallel>], iteration_bounds = array<i64: 1>, scalar_prefetch = 0 : i64, scratch_operands = 1 : i64, tpu.core_type = #tpu.core_type<tc>, window_params = [{transform_indices = @transform_0, window_bounds = array<i64: 2, 4, 9, 9, 8>}, {pipeline_mode = #tpu.pipeline_mode<synchronous>, transform_indices = @transform_1, window_bounds = array<i64: 1, 8>}, {pipeline_mode = #tpu.pipeline_mode<synchronous>, transform_indices = @transform_2, window_bounds = array<i64: 1, 8>}, {pipeline_mode = #tpu.pipeline_mode<synchronous>, transform_indices = @transform_3, window_bounds = array<i64: 72, 128>}, {transform_indices = @transform_4, window_bounds = array<i64: 2, 8, 8, 128>}]} {
    %c0 = arith.constant 0 : index
    %c0_0 = arith.constant 0 : index
    %0 = vector.load %arg2[%c0, %c0_0] : memref<1x8xf32, #tpu.memory_space<vmem>>, vector<1x8xf32>
    %c0_1 = arith.constant 0 : index
    %c0_2 = arith.constant 0 : index
    %1 = vector.load %arg3[%c0_1, %c0_2] : memref<1x8xf32, #tpu.memory_space<vmem>>, vector<1x8xf32>
    %c0_3 = arith.constant 0 : index
    %c0_4 = arith.constant 0 : index
    %c0_5 = arith.constant 0 : index
    %c0_6 = arith.constant 0 : index
    %c0_7 = arith.constant 0 : index
    %2 = vector.load %arg1[%c0_3, %c0_4, %c0_5, %c0_6, %c0_7] : memref<2x4x9x9x8xf32, #tpu.memory_space<vmem>>, vector<2x4x9x9x8xf32>
    %3 = vector.shape_cast %0 : vector<1x8xf32> to vector<1x1x1x1x8xf32>
    %4 = vector.broadcast %3 : vector<1x1x1x1x8xf32> to vector<2x4x9x9x8xf32>
    %5 = arith.mulf %2, %4 : vector<2x4x9x9x8xf32>
    %6 = vector.shape_cast %1 : vector<1x8xf32> to vector<1x1x1x1x8xf32>
    %7 = vector.broadcast %6 : vector<1x1x1x1x8xf32> to vector<2x4x9x9x8xf32>
    %8 = arith.addf %5, %7 : vector<2x4x9x9x8xf32>
    %cst = arith.constant 0.000000e+00 : f32
    %9 = vector.broadcast %cst : f32 to vector<2x4x9x9x8xf32>
    %10 = arith.maximumf %8, %9 : vector<2x4x9x9x8xf32>
    %11 = tpu.iota {dimensions = array<i32: 0>} : vector<9x9x8xi32>
    %12 = tpu.iota {dimensions = array<i32: 1>} : vector<9x9x8xi32>
    %c0_i32 = arith.constant 0 : i32
    %13 = vector.broadcast %c0_i32 : i32 to vector<9x9x8xi32>
    %14 = arith.cmpi sgt, %11, %13 : vector<9x9x8xi32>
    %c0_i32_8 = arith.constant 0 : i32
    %15 = vector.broadcast %c0_i32_8 : i32 to vector<9x9x8xi32>
    %16 = arith.cmpi sgt, %12, %15 : vector<9x9x8xi32>
    %17 = arith.andi %14, %16 : vector<9x9x8xi1>
    %18 = arith.extui %17 : vector<9x9x8xi1> to vector<9x9x8xi32>
    %19 = arith.sitofp %18 : vector<9x9x8xi32> to vector<9x9x8xf32>
    %20 = vector.shape_cast %19 : vector<9x9x8xf32> to vector<1x1x9x9x8xf32>
    %21 = vector.broadcast %20 : vector<1x1x9x9x8xf32> to vector<2x4x9x9x8xf32>
    %22 = arith.mulf %10, %21 : vector<2x4x9x9x8xf32>
    %23 = arith.truncf %22 : vector<2x4x9x9x8xf32> to vector<2x4x9x9x8xbf16>
    %24 = vector.extract_strided_slice %23 {offsets = [0, 3, 0, 0, 0], sizes = [2, 1, 8, 8, 8], strides = [1, 1, 1, 1, 1]} : vector<2x4x9x9x8xbf16> to vector<2x1x8x8x8xbf16>
    %25 = vector.shape_cast %24 : vector<2x1x8x8x8xbf16> to vector<2x8x8x8xbf16>
    %c0_9 = arith.constant 0 : index
    %c0_10 = arith.constant 0 : index
    %c0_11 = arith.constant 0 : index
    %c0_12 = arith.constant 0 : index
    %26 = vector.load %arg6[%c0_9, %c0_10, %c0_11, %c0_12] : memref<2x8x8x72xbf16, #tpu.memory_space<vmem>>, vector<2x8x8x8xbf16>
    tpu.vector_store %arg6[%c0_9, %c0_10, %c0_11, %c0_12], %25 {strides = array<i32>} : memref<2x8x8x72xbf16, #tpu.memory_space<vmem>>, vector<2x8x8x8xbf16>,
    %27 = vector.extract_strided_slice %23 {offsets = [0, 2, 0, 1, 0], sizes = [2, 1, 8, 8, 8], strides = [1, 1, 1, 1, 1]} : vector<2x4x9x9x8xbf16> to vector<2x1x8x8x8xbf16>
    %28 = vector.shape_cast %27 : vector<2x1x8x8x8xbf16> to vector<2x8x8x8xbf16>
    %c0_13 = arith.constant 0 : index
    %c0_14 = arith.constant 0 : index
    %c0_15 = arith.constant 0 : index
    %c8 = arith.constant 8 : index
    %29 = vector.load %arg6[%c0_13, %c0_14, %c0_15, %c8] : memref<2x8x8x72xbf16, #tpu.memory_space<vmem>>, vector<2x8x8x8xbf16>
    tpu.vector_store %arg6[%c0_13, %c0_14, %c0_15, %c8], %28 {strides = array<i32>} : memref<2x8x8x72xbf16, #tpu.memory_space<vmem>>, vector<2x8x8x8xbf16>,
    %30 = vector.extract_strided_slice %23 {offsets = [0, 3, 0, 1, 0], sizes = [2, 1, 8, 8, 8], strides = [1, 1, 1, 1, 1]} : vector<2x4x9x9x8xbf16> to vector<2x1x8x8x8xbf16>
    %31 = vector.shape_cast %30 : vector<2x1x8x8x8xbf16> to vector<2x8x8x8xbf16>
    %c0_16 = arith.constant 0 : index
    %c0_17 = arith.constant 0 : index
    %c0_18 = arith.constant 0 : index
    %c16 = arith.constant 16 : index
    %32 = vector.load %arg6[%c0_16, %c0_17, %c0_18, %c16] : memref<2x8x8x72xbf16, #tpu.memory_space<vmem>>, vector<2x8x8x8xbf16>
    tpu.vector_store %arg6[%c0_16, %c0_17, %c0_18, %c16], %31 {strides = array<i32>} : memref<2x8x8x72xbf16, #tpu.memory_space<vmem>>, vector<2x8x8x8xbf16>,
    %33 = vector.extract_strided_slice %23 {offsets = [0, 1, 1, 0, 0], sizes = [2, 1, 8, 8, 8], strides = [1, 1, 1, 1, 1]} : vector<2x4x9x9x8xbf16> to vector<2x1x8x8x8xbf16>
    %34 = vector.shape_cast %33 : vector<2x1x8x8x8xbf16> to vector<2x8x8x8xbf16>
    %c0_19 = arith.constant 0 : index
    %c0_20 = arith.constant 0 : index
    %c0_21 = arith.constant 0 : index
    %c24 = arith.constant 24 : index
    %35 = vector.load %arg6[%c0_19, %c0_20, %c0_21, %c24] : memref<2x8x8x72xbf16, #tpu.memory_space<vmem>>, vector<2x8x8x8xbf16>
    tpu.vector_store %arg6[%c0_19, %c0_20, %c0_21, %c24], %34 {strides = array<i32>} : memref<2x8x8x72xbf16, #tpu.memory_space<vmem>>, vector<2x8x8x8xbf16>,
    %36 = vector.extract_strided_slice %23 {offsets = [0, 0, 1, 1, 0], sizes = [2, 1, 8, 8, 8], strides = [1, 1, 1, 1, 1]} : vector<2x4x9x9x8xbf16> to vector<2x1x8x8x8xbf16>
    %37 = vector.shape_cast %36 : vector<2x1x8x8x8xbf16> to vector<2x8x8x8xbf16>
    %c0_22 = arith.constant 0 : index
    %c0_23 = arith.constant 0 : index
    %c0_24 = arith.constant 0 : index
    %c32 = arith.constant 32 : index
    %38 = vector.load %arg6[%c0_22, %c0_23, %c0_24, %c32] : memref<2x8x8x72xbf16, #tpu.memory_space<vmem>>, vector<2x8x8x8xbf16>
    tpu.vector_store %arg6[%c0_22, %c0_23, %c0_24, %c32], %37 {strides = array<i32>} : memref<2x8x8x72xbf16, #tpu.memory_space<vmem>>, vector<2x8x8x8xbf16>,
    %39 = vector.extract_strided_slice %23 {offsets = [0, 1, 1, 1, 0], sizes = [2, 1, 8, 8, 8], strides = [1, 1, 1, 1, 1]} : vector<2x4x9x9x8xbf16> to vector<2x1x8x8x8xbf16>
    %40 = vector.shape_cast %39 : vector<2x1x8x8x8xbf16> to vector<2x8x8x8xbf16>
    %c0_25 = arith.constant 0 : index
    %c0_26 = arith.constant 0 : index
    %c0_27 = arith.constant 0 : index
    %c40 = arith.constant 40 : index
    %41 = vector.load %arg6[%c0_25, %c0_26, %c0_27, %c40] : memref<2x8x8x72xbf16, #tpu.memory_space<vmem>>, vector<2x8x8x8xbf16>
    tpu.vector_store %arg6[%c0_25, %c0_26, %c0_27, %c40], %40 {strides = array<i32>} : memref<2x8x8x72xbf16, #tpu.memory_space<vmem>>, vector<2x8x8x8xbf16>,
    %42 = vector.extract_strided_slice %23 {offsets = [0, 3, 1, 0, 0], sizes = [2, 1, 8, 8, 8], strides = [1, 1, 1, 1, 1]} : vector<2x4x9x9x8xbf16> to vector<2x1x8x8x8xbf16>
    %43 = vector.shape_cast %42 : vector<2x1x8x8x8xbf16> to vector<2x8x8x8xbf16>
    %c0_28 = arith.constant 0 : index
    %c0_29 = arith.constant 0 : index
    %c0_30 = arith.constant 0 : index
    %c48 = arith.constant 48 : index
    %44 = vector.load %arg6[%c0_28, %c0_29, %c0_30, %c48] : memref<2x8x8x72xbf16, #tpu.memory_space<vmem>>, vector<2x8x8x8xbf16>
    tpu.vector_store %arg6[%c0_28, %c0_29, %c0_30, %c48], %43 {strides = array<i32>} : memref<2x8x8x72xbf16, #tpu.memory_space<vmem>>, vector<2x8x8x8xbf16>,
    %45 = vector.extract_strided_slice %23 {offsets = [0, 2, 1, 1, 0], sizes = [2, 1, 8, 8, 8], strides = [1, 1, 1, 1, 1]} : vector<2x4x9x9x8xbf16> to vector<2x1x8x8x8xbf16>
    %46 = vector.shape_cast %45 : vector<2x1x8x8x8xbf16> to vector<2x8x8x8xbf16>
    %c0_31 = arith.constant 0 : index
    %c0_32 = arith.constant 0 : index
    %c0_33 = arith.constant 0 : index
    %c56 = arith.constant 56 : index
    %47 = vector.load %arg6[%c0_31, %c0_32, %c0_33, %c56] : memref<2x8x8x72xbf16, #tpu.memory_space<vmem>>, vector<2x8x8x8xbf16>
    tpu.vector_store %arg6[%c0_31, %c0_32, %c0_33, %c56], %46 {strides = array<i32>} : memref<2x8x8x72xbf16, #tpu.memory_space<vmem>>, vector<2x8x8x8xbf16>,
    %48 = vector.extract_strided_slice %23 {offsets = [0, 3, 1, 1, 0], sizes = [2, 1, 8, 8, 8], strides = [1, 1, 1, 1, 1]} : vector<2x4x9x9x8xbf16> to vector<2x1x8x8x8xbf16>
    %49 = vector.shape_cast %48 : vector<2x1x8x8x8xbf16> to vector<2x8x8x8xbf16>
    %c0_34 = arith.constant 0 : index
    %c0_35 = arith.constant 0 : index
    %c0_36 = arith.constant 0 : index
    %c64 = arith.constant 64 : index
    %50 = vector.load %arg6[%c0_34, %c0_35, %c0_36, %c64] : memref<2x8x8x72xbf16, #tpu.memory_space<vmem>>, vector<2x8x8x8xbf16>
    tpu.vector_store %arg6[%c0_34, %c0_35, %c0_36, %c64], %49 {strides = array<i32>} : memref<2x8x8x72xbf16, #tpu.memory_space<vmem>>, vector<2x8x8x8xbf16>,
    %c0_37 = arith.constant 0 : index
    %c0_38 = arith.constant 0 : index
    %c0_39 = arith.constant 0 : index
    %c0_40 = arith.constant 0 : index
    %51 = vector.load %arg6[%c0_37, %c0_38, %c0_39, %c0_40] : memref<2x8x8x72xbf16, #tpu.memory_space<vmem>>, vector<2x8x8x72xbf16>
    %52 = vector.shape_cast %51 : vector<2x8x8x72xbf16> to vector<128x72xbf16>
    %c0_41 = arith.constant 0 : index
    %c0_42 = arith.constant 0 : index
    %53 = vector.load %arg4[%c0_41, %c0_42] : memref<72x128xbf16, #tpu.memory_space<vmem>>, vector<72x128xbf16>
    %cst_43 = arith.constant dense<0.000000e+00> : vector<128x128xf32>
    %54 = tpu.matmul %52, %53, %cst_43 {dimension_numbers = #tpu.dot_dimension_numbers<[1], [0], [0], [1], [0, 0, 1, 1], [], []>} : vector<128x72xbf16>, vector<72x128xbf16>, vector<128x128xf32> -> vector<128x128xf32>
    %55 = vector.shape_cast %54 : vector<128x128xf32> to vector<2x8x8x128xf32>
    %c0_44 = arith.constant 0 : index
    %c0_45 = arith.constant 0 : index
    %c0_46 = arith.constant 0 : index
    %c0_47 = arith.constant 0 : index
    %56 = vector.load %arg5[%c0_44, %c0_45, %c0_46, %c0_47] : memref<2x8x8x128xf32, #tpu.memory_space<vmem>>, vector<2x8x8x128xf32>
    tpu.vector_store %arg5[%c0_44, %c0_45, %c0_46, %c0_47], %55 {strides = array<i32>} : memref<2x8x8x128xf32, #tpu.memory_space<vmem>>, vector<2x8x8x128xf32>,
    return
  }
  func.func @transform_0(%arg0: i32) -> (i32, i32, i32, i32, i32) {
    %c0_i32 = arith.constant 0 : i32
    %c0_i32_0 = arith.constant 0 : i32
    %c0_i32_1 = arith.constant 0 : i32
    %c0_i32_2 = arith.constant 0 : i32
    %c0_i32_3 = arith.constant 0 : i32
    return %arg0, %c0_i32, %c0_i32_0, %c0_i32_1, %c0_i32_2 : i32, i32, i32, i32, i32
  }
  func.func @transform_1(%arg0: i32) -> (i32, i32) {
    %c0_i32 = arith.constant 0 : i32
    %c0_i32_0 = arith.constant 0 : i32
    %c0_i32_1 = arith.constant 0 : i32
    return %c0_i32, %c0_i32_0 : i32, i32
  }
  func.func @transform_2(%arg0: i32) -> (i32, i32) {
    %c0_i32 = arith.constant 0 : i32
    %c0_i32_0 = arith.constant 0 : i32
    %c0_i32_1 = arith.constant 0 : i32
    return %c0_i32, %c0_i32_0 : i32, i32
  }
  func.func @transform_3(%arg0: i32) -> (i32, i32) {
    %c0_i32 = arith.constant 0 : i32
    %c0_i32_0 = arith.constant 0 : i32
    %c0_i32_1 = arith.constant 0 : i32
    return %c0_i32, %c0_i32_0 : i32, i32
  }
  func.func @transform_4(%arg0: i32) -> (i32, i32, i32, i32) {
    %c0_i32 = arith.constant 0 : i32
    %c0_i32_0 = arith.constant 0 : i32
    %c0_i32_1 = arith.constant 0 : i32
    %c0_i32_2 = arith.constant 0 : i32
    return %arg0, %c0_i32, %c0_i32_0, %c0_i32_1 : i32, i32, i32, i32
  }
}

</mosaic_0001>

<bundles_post_ra>
// kernel: _lambda_.1
= control target key start
LH: loop header
LB: loop body
LE: loop exit
PB: predicated region body
PF: predicated region fallthrough
CT: control target
= control target key end

     0   :  { %v576_v0 = vlaneseq  ;;  %vm894_vm1 = vsmask.f32 3328  ;;  %vm895_vm2 = vsmask.f32 7440  ;;  %v3242_v28 = vmov 0.0   ;;  %s3243_s17 = smov 8   ;;  %s5067_s0 = inlined_call_operand.vmem [shape: f32[2,4,9,9,8], index: 0, kind: input, shape index: {}]   ;;  %s5068_s1 = inlined_call_operand.vmem [shape: f32[1,8], index: 1, kind: input, shape index: {}]   ;;  %s5069_s2 = inlined_call_operand.vmem [shape: f32[1,8], index: 2, kind: input, shape index: {}]   ;;  %s5070_s3 = inlined_call_operand.vmem [shape: bf16[72,128], index: 3, kind: input, shape index: {}]   ;;  %s5071_s4 = inlined_call_operand.vmem [shape: f32[2,8,8,128], index: 4, kind: output, shape index: {}]  }
   0x1   :  { %v3279_v1 = vld [vmem:[%s5068_s1] ss:$0 sm:$0xff]  ;;  %v121_v4 = vld [vmem:[%s5067_s0 + $0x368] sm:$0x1]  ;;  %v122_v11 = vld [vmem:[%s5067_s0 + $0x370] sm:$0xff]  ;;  %s3244_s23 = smov 16  }
   0x2   :  { %v3284_v2 = vld [vmem:[%s5069_s2] ss:$0 sm:$0xff]  ;;  %v577_v7 = vshrl.u32 %v576_v0, 7  ;;  %v263_v8 = vmul.f32 %v3279_v1, %v121_v4  ;;  %v53_v9 = vld [vmem:[%s5067_s0 + $0x128] sm:$0x1]  ;;  %v264_v15 = vmul.f32 %v3279_v1, %v122_v11  ;;  %v54_v17 = vld [vmem:[%s5067_s0 + $0x130] sm:$0xff] }
   0x3   :  { %v120_v3 = vld [vmem:[%s5067_s0 + $0x360] sm:$0xff]  ;;  %v123_v12 = vld [vmem:[%s5067_s0 + $0x378] sm:$0x1]  ;;  %v195_v14 = vmul.f32 %v3279_v1, %v53_v9  ;;  %v196_v21 = vmul.f32 %v3279_v1, %v54_v17  ;;  %v58_v0 = vld [vmem:[%s5067_s0 + $0x150] sm:$0xff]  ;;  %s3245_s6 = smov 24   ;;  %s3246_s27 = smov 32  }
   0x4   :  { %v262_v5 = vmul.f32 %v3279_v1, %v120_v3  ;;  %v52_v6 = vld [vmem:[%s5067_s0 + $0x120] sm:$0xff]  ;;  %v265_v16 = vmul.f32 %v3279_v1, %v123_v12  ;;  %v55_v18 = vld [vmem:[%s5067_s0 + $0x138] sm:$0x1]  ;;  %v405_v19 = vadd.f32 %v3284_v2, %v263_v8  ;;  %vm579_vm0 = vcmp.gt.s32.totalorder %v577_v7, 0  ;;  %vm3340_vm3 = vmor %vm894_vm1, %vm895_vm2  ;;  %s3247_s30 = smov 40   ;;  %s3248_s24 = smov 48  }
   0x5   :  { %v194_v10 = vmul.f32 %v3279_v1, %v52_v6  ;;  %v337_v23 = vadd.f32 %v3284_v2, %v195_v14  ;;  %v406_v24 = vadd.f32 %v3284_v2, %v264_v15  ;;  %v3323_v29 = vsel %vm579_vm0, 1.0, %v3242_v28  ;;  %v59_v59 = vld [vmem:[%s5067_s0 + $0x158] sm:$0x1]  ;;  %v56_v3 = vld [vmem:[%s5067_s0 + $0x140] sm:$0xff]  ;;  %s3249_s16 = smov 56   ;;  %s3250_s11 = smov 64  }
   0x6   :  { %v404_v13 = vadd.f32 %v3284_v2, %v262_v5  ;;  %v407_v25 = vadd.f32 %v3284_v2, %v265_v16  ;;  %v541_v26 = vmax.f32 %v405_v19, 0.0  ;;  %v197_v30 = vmul.f32 %v3279_v1, %v55_v18 }
   0x7   :  { %v336_v20 = vadd.f32 %v3284_v2, %v194_v10  ;;  %v473_v32 = vmax.f32 %v337_v23, 0.0  ;;  %v542_v33 = vmax.f32 %v406_v24, 0.0  ;;  %v338_v37 = vadd.f32 %v3284_v2, %v196_v21 }
   0x8   :  { %v540_v22 = vmax.f32 %v404_v13, 0.0  ;;  %v543_v34 = vmax.f32 %v407_v25, 0.0  ;;  %v694_v35 = vmul.f32 0.0, %v541_v26  ;;  %v339_v38 = vadd.f32 %v3284_v2, %v197_v30  ;;  %v57_v13 = vld [vmem:[%s5067_s0 + $0x148] sm:$0x1] }
   0x9   :  { %v472_v27 = vmax.f32 %v336_v20, 0.0  ;;  %v626_v40 = vmul.f32 0.0, %v473_v32  ;;  %v695_v41 = vmul.f32 %v3323_v29, %v542_v33  ;;  %v474_v45 = vmax.f32 %v338_v37, 0.0  ;;  %v124_v37 = vld [vmem:[%s5067_s0 + $0x380] sm:$0xff] }
   0xa   :  { %v693_v31 = vmul.f32 0.0, %v540_v22  ;;  %v3046_v42 = vpack.c.bf16 %v543_v34, %v543_v34  ;;  %v3044_v43 = vpack.c.bf16 %v694_v35, %v694_v35  ;;  %v475_v46 = vmax.f32 %v339_v38, 0.0 }
   0xb   :  { %v625_v36 = vmul.f32 0.0, %v472_v27  ;;  %v3028_v49 = vpack.c.bf16 %v626_v40, %v626_v40  ;;  %v3045_v50 = vpack.c.bf16 %v695_v41, %v695_v41  ;;  %v627_v11 = vmul.f32 %v3323_v29, %v474_v45 }
   0xc   :  { %v3043_v39 = vpack.c.bf16 %v693_v31, %v693_v31  ;;  %v1019_v51 = vshll.u32 %v3044_v43, 16  ;;  %v1033_v54 = vshll.u32 %v3046_v42, 16  ;;  %v3030_v12 = vpack.c.bf16 %v475_v46, %v475_v46  ;;  %v126_v31 = vld [vmem:[%s5067_s0 + $0x390] sm:$0xff]  ;;  %v125_v46 = vld [vmem:[%s5067_s0 + $0x388] sm:$0x1] }
   0xd   :  { %v3027_v44 = vpack.c.bf16 %v625_v36, %v625_v36  ;;  %v907_v57 = vshll.u32 %v3028_v49, 16  ;;  %v1024_v58 = vshrl.u32 %v3045_v50, 16  ;;  %v1027_v63 = vshll.u32 %v3045_v50, 16  ;;  %v127_v36 = vld [vmem:[%s5067_s0 + $0x398] sm:$0x1] }
   0xe   :  { %v1010_v47 = vshrl.u32 %v3043_v39, 16  ;;  %v1013_v48 = vshll.u32 %v3043_v39, 16  ;;  %v1021_v60 = vrot.slane %v1019_v51, 5  ;;  %v1035_v7 = vrot.slane %v1033_v54, 5 }
   0xf   :  { %v898_v52 = vshrl.u32 %v3027_v44, 16  ;;  %v901_v53 = vshll.u32 %v3027_v44, 16  ;;  %v909_v5 = vrot.slane %v907_v57, 5  ;;  %v1026_v6 = vrot.slane %v1024_v58, 4 }
  0x10   :  { %v1012_v55 = vrot.slane %v1010_v47, 4  ;;  %v1015_v56 = vrot.slane %v1013_v48, 5  ;;  %v1029_v10 = vrot.slane %v1027_v63, 5  ;;  %v200_v15 = vmul.f32 %v3279_v1, %v58_v0 }
  0x11   :  { %v900_v61 = vrot.slane %v898_v52, 4  ;;  %v903_v62 = vrot.slane %v901_v53, 5  ;;  %v201_v16 = vmul.f32 %v3279_v1, %v59_v59  ;;  %v198_v17 = vmul.f32 %v3279_v1, %v56_v3 }
  0x12   :  { %v1016_v4 = vor.u32 %v1015_v56, %v1012_v55  ;;  %v1030_v19 = vor.u32 %v1029_v10, %v1026_v6  ;;  %v3029_v20 = vpack.c.bf16 %v627_v11, %v627_v11  ;;  %v921_v21 = vshll.u32 %v3030_v12, 16  ;;  %v72_v10 = vld [vmem:[%s5067_s0 + $0x1c0] sm:$0xff] }
  0x13   :  { %v904_v9 = vor.u32 %v903_v62, %v900_v61  ;;  %v342_v23 = vadd.f32 %v3284_v2, %v200_v15  ;;  %v343_v24 = vadd.f32 %v3284_v2, %v201_v16  ;;  %v199_v25 = vmul.f32 %v3279_v1, %v57_v13  ;;  %v73_v15 = vld [vmem:[%s5067_s0 + $0x1c8] sm:$0x1] }
  0x14   :  { %v1017_v14 = vrot.slane %v1016_v4, 4  ;;  %v1031_v27 = vrot.slane %v1030_v19, 4  ;;  %v912_v28 = vshrl.u32 %v3029_v20, 16  ;;  %v915_v30 = vshll.u32 %v3029_v20, 16 }
  0x15   :  { %v905_v18 = vrot.slane %v904_v9, 4  ;;  %v923_v32 = vrot.slane %v921_v21, 5  ;;  %v478_v33 = vmax.f32 %v342_v23, 0.0  ;;  %v479_v34 = vmax.f32 %v343_v24, 0.0 }
  0x16   :  { %v1022_v22 = vsel %vm3340_vm3, %v1017_v14, %v1021_v60  ;;  %v340_v35 = vadd.f32 %v3284_v2, %v198_v17  ;;  %v3372_v38 = vsel %vm3340_vm3, %v1031_v27, %v1035_v7  ;;  %v914_v39 = vrot.slane %v912_v28, 4 }
  0x17   :  { %1137 = vrot.lane.b32.xlu1 %v1022_v22, %s3243_s17  ;;  %v910_v26 = vsel %vm3340_vm3, %v905_v18, %v909_v5  ;;  %v917_v40 = vrot.slane %v915_v30, 5  ;;  %v341_v41 = vadd.f32 %v3284_v2, %v199_v25  ;;  %v631_v42 = vmul.f32 %v3323_v29, %v478_v33  ;;  %v70_v33 = vld [vmem:[%s5067_s0 + $0x1b0] sm:$0xff] }
  0x18   :  { %1121 = vrot.lane.b32.xlu0 %v910_v26, %s3243_s17  ;;  %v3034_v43 = vpack.c.bf16 %v479_v34, %v479_v34  ;;  %v476_v44 = vmax.f32 %v340_v35, 0.0  ;;  %v268_v45 = vmul.f32 %v3279_v1, %v126_v31  ;;  %v269_v49 = vmul.f32 %v3279_v1, %v127_v36 }
  0x19   :  { %v918_v47 = vor.u32 %v917_v40, %v914_v39  ;;  %v477_v48 = vmax.f32 %v341_v41, 0.0  ;;  %v266_v50 = vmul.f32 %v3279_v1, %v124_v37  ;;  %v3033_v51 = vpack.c.bf16 %v631_v42, %v631_v42 }
  0x1a   :  { %v949_v52 = vshll.u32 %v3034_v43, 16  ;;  %v629_v53 = vmul.f32 %v3323_v29, %v476_v44  ;;  %v410_v54 = vadd.f32 %v3284_v2, %v268_v45  ;;  %v411_v57 = vadd.f32 %v3284_v2, %v269_v49  ;;  %v71_v43 = vld [vmem:[%s5067_s0 + $0x1b8] sm:$0x1] }
  0x1b   :  { %1139 = vrot.lane.b32.xlu1 %v3372_v38, %s3243_s17  ;;  %v919_v55 = vrot.slane %v918_v47, 4  ;;  %v3032_v56 = vpack.c.bf16 %v477_v48, %v477_v48  ;;  %v267_v58 = vmul.f32 %v3279_v1, %v125_v46  ;;  %v940_v59 = vshrl.u32 %v3033_v51, 16 }
  0x1c   :  { %v943_v60 = vshll.u32 %v3033_v51, 16  ;;  %v951_v61 = vrot.slane %v949_v52, 5  ;;  %v3031_v62 = vpack.c.bf16 %v629_v53, %v629_v53  ;;  %v546_v3 = vmax.f32 %v410_v54, 0.0  ;;  %v140_v52 = vld [vmem:[%s5067_s0 + $0x400] sm:$0xff] }
  0x1d   :  { %v3390_v63 = vsel %vm3340_vm3, %v919_v55, %v923_v32  ;;  %v935_v0 = vshll.u32 %v3032_v56, 16  ;;  %v547_v4 = vmax.f32 %v411_v57, 0.0  ;;  %v942_v5 = vrot.slane %v940_v59, 4  ;;  %v141_v57 = vld [vmem:[%s5067_s0 + $0x408] sm:$0x1] }
  0x1e   :  { %1123 = vrot.lane.b32.xlu0 %v3390_v63, %s3243_s17  ;;  %v945_v6 = vrot.slane %v943_v60, 5  ;;  %v926_v7 = vshrl.u32 %v3031_v62, 16  ;;  %v929_v9 = vshll.u32 %v3031_v62, 16  ;;  %v699_v12 = vmul.f32 %v3323_v29, %v546_v3 }
  0x1f   :  { %v937_v11 = vrot.slane %v935_v0, 5  ;;  %v3050_v13 = vpack.c.bf16 %v547_v4, %v547_v4  ;;  %v408_v14 = vadd.f32 %v3284_v2, %v266_v50  ;;  %v409_v19 = vadd.f32 %v3284_v2, %v267_v58 }
  0x20   :  { %v946_v16 = vor.u32 %v945_v6, %v942_v5  ;;  %v928_v17 = vrot.slane %v926_v7, 4  ;;  %v931_v18 = vrot.slane %v929_v9, 5  ;;  %v3049_v20 = vpack.c.bf16 %v699_v12, %v699_v12 }
  0x21   :  { %v1061_v21 = vshll.u32 %v3050_v13, 16  ;;  %v544_v22 = vmax.f32 %v408_v14, 0.0  ;;  %v214_v23 = vmul.f32 %v3279_v1, %v72_v10  ;;  %v545_v26 = vmax.f32 %v409_v19, 0.0  ;;  %v138_v14 = vld [vmem:[%s5067_s0 + $0x3f0] sm:$0xff] }
  0x22   :  { %v947_v24 = vrot.slane %v946_v16, 4  ;;  %v932_v25 = vor.u32 %v931_v18, %v928_v17  ;;  %v215_v27 = vmul.f32 %v3279_v1, %v73_v15  ;;  %v1052_v28 = vshrl.u32 %v3049_v20, 16 }
  0x23   :  { %v1055_v30 = vshll.u32 %v3049_v20, 16  ;;  %v1063_v31 = vrot.slane %v1061_v21, 5  ;;  %v697_v32 = vmul.f32 %v3323_v29, %v544_v22  ;;  %v3048_v36 = vpack.c.bf16 %v545_v26, %v545_v26 }
  0x24   :  { %v3411_v34 = vsel %vm3340_vm3, %v947_v24, %v951_v61  ;;  %v933_v35 = vrot.slane %v932_v25, 4  ;;  %v356_v37 = vadd.f32 %v3284_v2, %v214_v23  ;;  %v1054_v39 = vrot.slane %v1052_v28, 4  ;;  %v139_v23 = vld [vmem:[%s5067_s0 + $0x3f8] sm:$0x1] }
  0x25   :  { %5096 = vst [vmem:[#allocation3_spill] sm:$0xff] %v3411_v34  ;;  %1127 = vrot.lane.b32.xlu1 %v3411_v34, %s3243_s17  ;;  %v1057_v40 = vrot.slane %v1055_v30, 5  ;;  %v3047_v41 = vpack.c.bf16 %v697_v32, %v697_v32  ;;  %v357_v42 = vadd.f32 %v3284_v2, %v215_v27  ;;  %v1047_v45 = vshll.u32 %v3048_v36, 16 }
  0x26   :  { %v3422_v44 = vsel %vm3340_vm3, %v933_v35, %v937_v11  ;;  %v492_v46 = vmax.f32 %v356_v37, 0.0  ;;  %v212_v47 = vmul.f32 %v3279_v1, %v70_v33  ;;  %v213_v55 = vmul.f32 %v3279_v1, %v71_v43 }
  0x27   :  { %1125 = vrot.lane.b32.xlu0 %v3422_v44, %s3243_s17  ;;  %v1058_v48 = vor.u32 %v1057_v40, %v1054_v39  ;;  %v1038_v49 = vshrl.u32 %v3047_v41, 16  ;;  %v1041_v50 = vshll.u32 %v3047_v41, 16  ;;  %v3427_v51 = vmax.f32 %v357_v42, 0.0  ;;  %v76_v39 = vld [vmem:[%s5067_s0 + $0x1e0] sm:$0xff] }
  0x28   :  { %v1049_v53 = vrot.slane %v1047_v45, 5  ;;  %v3433_v54 = vmul.f32 %v3323_v29, %v492_v46  ;;  %v354_v56 = vadd.f32 %v3284_v2, %v212_v47  ;;  %v355_v0 = vadd.f32 %v3284_v2, %v213_v55 }
  0x29   :  { %v1059_v58 = vrot.slane %v1058_v48, 4  ;;  %v1040_v59 = vrot.slane %v1038_v49, 4  ;;  %v1043_v60 = vrot.slane %v1041_v50, 5  ;;  %v3062_v61 = vpack.c.bf16 %v3427_v51, %v3427_v51  ;;  %v77_v49 = vld [vmem:[%s5067_s0 + $0x1e8] sm:$0x1] }
  0x2a   :  { %v3444_v62 = vpack.c.bf16 %v3433_v54, %v3433_v54  ;;  %v490_v3 = vmax.f32 %v354_v56, 0.0  ;;  %v282_v4 = vmul.f32 %v3279_v1, %v140_v52  ;;  %v283_v9 = vmul.f32 %v3279_v1, %v141_v57  ;;  %v74_v56 = vld [vmem:[%s5067_s0 + $0x1d0] sm:$0xff] }
  0x2b   :  { %v3450_v5 = vsel %vm3340_vm3, %v1059_v58, %v1063_v31  ;;  %v1044_v6 = vor.u32 %v1043_v60, %v1040_v59  ;;  %v1290_v7 = vshll.u32 %v3062_v61, 16  ;;  %v491_v12 = vmax.f32 %v355_v0, 0.0 }
  0x2c   :  { %5097 = vst [vmem:[#allocation4_spill] sm:$0xff] %v3450_v5  ;;  %1143 = vrot.lane.b32.xlu1 %v3450_v5, %s3243_s17  ;;  %v1281_v10 = vshrl.u32 %v3444_v62, 16  ;;  %v1284_v11 = vshll.u32 %v3444_v62, 16  ;;  %v3457_v13 = vmul.f32 0.0, %v490_v3  ;;  %v424_v17 = vadd.f32 %v3284_v2, %v282_v4 }
  0x2d   :  { %v1045_v15 = vrot.slane %v1044_v6, 4  ;;  %v1292_v16 = vrot.slane %v1290_v7, 5  ;;  %v425_v18 = vadd.f32 %v3284_v2, %v283_v9  ;;  %v3464_v21 = vmul.f32 0.0, %v491_v12  ;;  %v75_v6 = vld [vmem:[%s5067_s0 + $0x1d8] sm:$0x1] }
  0x2e   :  { %v1283_v19 = vrot.slane %v1281_v10, 4  ;;  %v1286_v20 = vrot.slane %v1284_v11, 5  ;;  %v3059_v22 = vpack.c.bf16 %v3457_v13, %v3457_v13  ;;  %v560_v25 = vmax.f32 %v424_v17, 0.0 }
  0x2f   :  { %v3473_v24 = vsel %vm3340_vm3, %v1045_v15, %v1049_v53  ;;  %v3475_v26 = vmax.f32 %v425_v18, 0.0  ;;  %v280_v27 = vmul.f32 %v3279_v1, %v138_v14  ;;  %v3060_v30 = vpack.c.bf16 %v3464_v21, %v3464_v21 }
  0x30   :  { %1141 = vrot.lane.b32.xlu0 %v3473_v24, %s3243_s17  ;;  %v1287_v28 = vor.u32 %v1286_v20, %v1283_v19  ;;  %v1267_v31 = vshrl.u32 %v3059_v22, 16  ;;  %v1270_v32 = vshll.u32 %v3059_v22, 16  ;;  %v3483_v33 = vmul.f32 %v3323_v29, %v560_v25 }
  0x31   :  { %v3078_v35 = vpack.c.bf16 %v3475_v26, %v3475_v26  ;;  %v281_v36 = vmul.f32 %v3279_v1, %v139_v23  ;;  %v422_v37 = vadd.f32 %v3284_v2, %v280_v27  ;;  %v1276_v43 = vshll.u32 %v3060_v30, 16 }
  0x32   :  { %v1288_v40 = vrot.slane %v1287_v28, 4  ;;  %v1269_v41 = vrot.slane %v1267_v31, 4  ;;  %v1272_v42 = vrot.slane %v1270_v32, 5  ;;  %v3494_v45 = vpack.c.bf16 %v3483_v33, %v3483_v33 }
  0x33   :  { %v1402_v46 = vshll.u32 %v3078_v35, 16  ;;  %v423_v47 = vadd.f32 %v3284_v2, %v281_v36  ;;  %v558_v48 = vmax.f32 %v422_v37, 0.0  ;;  %v1278_v53 = vrot.slane %v1276_v43, 5 }
  0x34   :  { %v3502_v50 = vsel %vm3340_vm3, %v1288_v40, %v1292_v16  ;;  %v1273_v52 = vor.u32 %v1272_v42, %v1269_v41  ;;  %v218_v55 = vmul.f32 %v3279_v1, %v76_v39  ;;  %v1393_v57 = vshrl.u32 %v3494_v45, 16  ;;  %v144_v40 = vld [vmem:[%s5067_s0 + $0x420] sm:$0xff]  ;;  %v145_v41 = vld [vmem:[%s5067_s0 + $0x428] sm:$0x1] }
  0x35   :  { %5098 = vst [vmem:[#allocation5_spill] sm:$0xff] %v3502_v50  ;;  %1492 = vrot.lane.b32.xlu1 %v3502_v50, %s3244_s23  ;;  %v1396_v58 = vshll.u32 %v3494_v45, 16  ;;  %v1404_v59 = vrot.slane %v1402_v46, 5  ;;  %v559_v60 = vmax.f32 %v423_v47, 0.0  ;;  %v3512_v0 = vmul.f32 0.0, %v558_v48 }
  0x36   :  { %v1274_v61 = vrot.slane %v1273_v52, 4  ;;  %v219_v3 = vmul.f32 %v3279_v1, %v77_v49  ;;  %v360_v4 = vadd.f32 %v3284_v2, %v218_v55  ;;  %v1395_v7 = vrot.slane %v1393_v57, 4 }
  0x37   :  { %v1398_v9 = vrot.slane %v1396_v58, 5  ;;  %v3519_v10 = vmul.f32 0.0, %v559_v60  ;;  %v216_v11 = vmul.f32 %v3279_v1, %v74_v56  ;;  %v3075_v14 = vpack.c.bf16 %v3512_v0, %v3512_v0 }
  0x38   :  { %v1279_v12 = vsel %vm3340_vm3, %v1274_v61, %v1278_v53  ;;  %v361_v15 = vadd.f32 %v3284_v2, %v219_v3  ;;  %v496_v16 = vmax.f32 %v360_v4, 0.0  ;;  %v217_v19 = vmul.f32 %v3279_v1, %v75_v6 }
  0x39   :  { %1490 = vrot.lane.b32.xlu0 %v1279_v12, %s3244_s23  ;;  %v1399_v17 = vor.u32 %v1398_v9, %v1395_v7  ;;  %v3076_v18 = vpack.c.bf16 %v3519_v10, %v3519_v10  ;;  %v358_v20 = vadd.f32 %v3284_v2, %v216_v11  ;;  %v1379_v22 = vshrl.u32 %v3075_v14, 16  ;;  %v143_v12 = vld [vmem:[%s5067_s0 + $0x418] sm:$0x1] }
  0x3a   :  { %v1382_v23 = vshll.u32 %v3075_v14, 16  ;;  %v3532_v25 = vmax.f32 %v361_v15, 0.0  ;;  %v3535_v27 = vmul.f32 %v3323_v29, %v496_v16  ;;  %v359_v31 = vadd.f32 %v3284_v2, %v217_v19  ;;  %v36_v19 = vld [vmem:[%s5067_s0 + $0xa0] sm:$0xff] }
  0x3b   :  { %v1400_v28 = vrot.slane %v1399_v17, 4  ;;  %v1388_v30 = vshll.u32 %v3076_v18, 16  ;;  %v494_v32 = vmax.f32 %v358_v20, 0.0  ;;  %v1381_v35 = vrot.slane %v1379_v22, 4  ;;  %v38_v18 = vld [vmem:[%s5067_s0 + $0xb0] sm:$0xff] }
  0x3c   :  { %v1384_v36 = vrot.slane %v1382_v23, 5  ;;  %v3540_v37 = vpack.c.bf16 %v3535_v27, %v3535_v27  ;;  %v3066_v39 = vpack.c.bf16 %v3532_v25, %v3532_v25  ;;  %v3554_v46 = vmax.f32 %v359_v31, 0.0 }
  0x3d   :  { %v3552_v42 = vsel %vm3340_vm3, %v1400_v28, %v1404_v59  ;;  %v1390_v43 = vrot.slane %v1388_v30, 5  ;;  %v3557_v47 = vmul.f32 %v3323_v29, %v494_v32  ;;  %v286_v57 = vmul.f32 %v3279_v1, %v144_v40  ;;  %v142_v59 = vld [vmem:[%s5067_s0 + $0x410] sm:$0xff] }
  0x3e   :  { %5099 = vst [vmem:[#allocation6_spill] sm:$0xff] %v3552_v42  ;;  %1508 = vrot.lane.b32.xlu1 %v3552_v42, %s3244_s23  ;;  %v1385_v48 = vor.u32 %v1384_v36, %v1381_v35  ;;  %v1309_v49 = vshrl.u32 %v3540_v37, 16  ;;  %v1312_v52 = vshll.u32 %v3540_v37, 16  ;;  %v1318_v53 = vshll.u32 %v3066_v39, 16 }
  0x3f   :  { %v3565_v55 = vpack.c.bf16 %v3557_v47, %v3557_v47  ;;  %v3064_v56 = vpack.c.bf16 %v3554_v46, %v3554_v46  ;;  %v287_v58 = vmul.f32 %v3279_v1, %v145_v41  ;;  %v428_v11 = vadd.f32 %v3284_v2, %v286_v57 }
  0x40   :  { %v1386_v60 = vrot.slane %v1385_v48, 4  ;;  %v1311_v61 = vrot.slane %v1309_v49, 4  ;;  %v1314_v3 = vrot.slane %v1312_v52, 5  ;;  %v1320_v4 = vrot.slane %v1318_v53, 5 }
  0x41   :  { %v1295_v6 = vshrl.u32 %v3565_v55, 16  ;;  %v1298_v7 = vshll.u32 %v3565_v55, 16  ;;  %v1304_v9 = vshll.u32 %v3064_v56, 16  ;;  %v429_v16 = vadd.f32 %v3284_v2, %v287_v58 }
  0x42   :  { %v1391_v14 = vsel %vm3340_vm3, %v1386_v60, %v1390_v43  ;;  %v1315_v15 = vor.u32 %v1314_v3, %v1311_v61  ;;  %v284_v17 = vmul.f32 %v3279_v1, %v142_v59  ;;  %v564_v28 = vmax.f32 %v428_v11, 0.0  ;;  %v106_v43 = vld [vmem:[%s5067_s0 + $0x2f0] sm:$0xff] }
  0x43   :  { %1506 = vrot.lane.b32.xlu0 %v1391_v14, %s3244_s23  ;;  %v1297_v20 = vrot.slane %v1295_v6, 4  ;;  %v1300_v22 = vrot.slane %v1298_v7, 5  ;;  %v1306_v23 = vrot.slane %v1304_v9, 5  ;;  %v3591_v31 = vmax.f32 %v429_v16, 0.0 }
  0x44   :  { %v1316_v30 = vrot.slane %v1315_v15, 4  ;;  %v285_v32 = vmul.f32 %v3279_v1, %v143_v12  ;;  %v426_v35 = vadd.f32 %v3284_v2, %v284_v17  ;;  %v3596_v39 = vmul.f32 %v3323_v29, %v564_v28  ;;  %v104_v17 = vld [vmem:[%s5067_s0 + $0x2e0] sm:$0xff] }
  0x45   :  { %v1301_v36 = vor.u32 %v1300_v22, %v1297_v20  ;;  %v180_v40 = vmul.f32 %v3279_v1, %v38_v18  ;;  %v178_v41 = vmul.f32 %v3279_v1, %v36_v19  ;;  %v3082_v49 = vpack.c.bf16 %v3591_v31, %v3591_v31 }
  0x46   :  { %v3605_v48 = vsel %vm3340_vm3, %v1316_v30, %v1320_v4  ;;  %v427_v52 = vadd.f32 %v3284_v2, %v285_v32  ;;  %v562_v53 = vmax.f32 %v426_v35, 0.0  ;;  %v3614_v57 = vpack.c.bf16 %v3596_v39, %v3596_v39 }
  0x47   :  { %5100 = vst [vmem:[#allocation7_spill] sm:$0xff] %v3605_v48  ;;  %1496 = vrot.lane.b32.xlu1 %v3605_v48, %s3244_s23  ;;  %v1302_v56 = vrot.slane %v1301_v36, 4  ;;  %v322_v58 = vadd.f32 %v3284_v2, %v180_v40  ;;  %v320_v59 = vadd.f32 %v3284_v2, %v178_v41  ;;  %v1430_v60 = vshll.u32 %v3082_v49, 16 }
  0x48   :  { %v3618_v61 = vmax.f32 %v427_v52, 0.0  ;;  %v3621_v3 = vmul.f32 %v3323_v29, %v562_v53  ;;  %v248_v4 = vmul.f32 %v3279_v1, %v106_v43  ;;  %v1421_v7 = vshrl.u32 %v3614_v57, 16 }
  0x49   :  { %v3626_v6 = vsel %vm3340_vm3, %v1302_v56, %v1306_v23  ;;  %v1424_v9 = vshll.u32 %v3614_v57, 16  ;;  %v458_v11 = vmax.f32 %v322_v58, 0.0  ;;  %v1432_v12 = vrot.slane %v1430_v60, 5  ;;  %v42_v56 = vld [vmem:[%s5067_s0 + $0xd0] sm:$0xff]  ;;  %v40_v58 = vld [vmem:[%s5067_s0 + $0xc0] sm:$0xff] }
  0x4a   :  { %5101 = vst [vmem:[#allocation8_spill] sm:$0xff] %v3626_v6  ;;  %1494 = vrot.lane.b32.xlu0 %v3626_v6, %s3244_s23  ;;  %v3634_v14 = vpack.c.bf16 %v3621_v3, %v3621_v3  ;;  %v3080_v15 = vpack.c.bf16 %v3618_v61, %v3618_v61  ;;  %v456_v16 = vmax.f32 %v320_v59, 0.0  ;;  %v1423_v18 = vrot.slane %v1421_v7, 4 }
  0x4b   :  { %v1426_v19 = vrot.slane %v1424_v9, 5  ;;  %v611_v20 = vmul.f32 %v3323_v29, %v458_v11  ;;  %v390_v22 = vadd.f32 %v3284_v2, %v248_v4  ;;  %v246_v41 = vmul.f32 %v3279_v1, %v104_v17  ;;  %v110_v9 = vld [vmem:[%s5067_s0 + $0x310] sm:$0xff]  ;;  %v108_v11 = vld [vmem:[%s5067_s0 + $0x300] sm:$0xff] }
  0x4c   :  { %v1407_v23 = vshrl.u32 %v3634_v14, 16  ;;  %v1410_v28 = vshll.u32 %v3634_v14, 16  ;;  %v1416_v30 = vshll.u32 %v3080_v15, 16  ;;  %v609_v32 = vmul.f32 %v3323_v29, %v456_v16 }
  0x4d   :  { %v1427_v35 = vor.u32 %v1426_v19, %v1423_v18  ;;  %v3646_v36 = vpack.c.bf16 %v611_v20, %v611_v20  ;;  %v526_v40 = vmax.f32 %v390_v22, 0.0  ;;  %v388_v18 = vadd.f32 %v3284_v2, %v246_v41 }
  0x4e   :  { %v1409_v43 = vrot.slane %v1407_v23, 4  ;;  %v1412_v49 = vrot.slane %v1410_v28, 5  ;;  %v1418_v52 = vrot.slane %v1416_v30, 5  ;;  %v3649_v53 = vpack.c.bf16 %v609_v32, %v609_v32 }
  0x4f   :  { %v1428_v59 = vrot.slane %v1427_v35, 4  ;;  %v679_v7 = vmul.f32 %v3323_v29, %v526_v40  ;;  %v184_v22 = vmul.f32 %v3279_v1, %v42_v56  ;;  %v182_v23 = vmul.f32 %v3279_v1, %v40_v58  ;;  %v23_v40 = vld [vmem:[%s5067_s0 + $0x28] sm:$0x1]  ;;  %v20_v58 = vld [vmem:[%s5067_s0 + $0x10] sm:$0xff] }
  0x50   :  { %v1413_v15 = vor.u32 %v1412_v49, %v1409_v43  ;;  %v524_v30 = vmax.f32 %v388_v18, 0.0  ;;  %v252_v32 = vmul.f32 %v3279_v1, %v110_v9  ;;  %v250_v35 = vmul.f32 %v3279_v1, %v108_v11 }
  0x51   :  { %v3671_v19 = vsel %vm3340_vm3, %v1428_v59, %v1432_v12  ;;  %v3673_v20 = vpack.c.bf16 %v679_v7, %v679_v7  ;;  %v22_v12 = vld [vmem:[%s5067_s0 + $0x20] sm:$0xff]  ;;  %v326_v49 = vadd.f32 %v3284_v2, %v184_v22  ;;  %v324_v56 = vadd.f32 %v3284_v2, %v182_v23 }
  0x52   :  { %5102 = vst [vmem:[#allocation9_spill] sm:$0xff] %v3671_v19  ;;  %1512 = vrot.lane.b32.xlu1 %v3671_v19, %s3244_s23  ;;  %v1414_v28 = vrot.slane %v1413_v15, 4  ;;  %v677_v7 = vmul.f32 %v3323_v29, %v524_v30  ;;  %v394_v9 = vadd.f32 %v3284_v2, %v252_v32  ;;  %v392_v11 = vadd.f32 %v3284_v2, %v250_v35 }
  0x53   :  { %v462_v15 = vmax.f32 %v326_v49, 0.0  ;;  %v460_v18 = vmax.f32 %v324_v56, 0.0  ;;  %v164_v22 = vmul.f32 %v3279_v1, %v22_v12  ;;  %v165_v23 = vmul.f32 %v3279_v1, %v23_v40  ;;  %v21_v40 = vld [vmem:[%s5067_s0 + $0x18] sm:$0x1] }
  0x54   :  { %v3696_v59 = vsel %vm3340_vm3, %v1414_v28, %v1418_v52  ;;  %v3707_v52 = vpack.c.bf16 %v677_v7, %v677_v7  ;;  %v530_v28 = vmax.f32 %v394_v9, 0.0  ;;  %v528_v30 = vmax.f32 %v392_v11, 0.0 }
  0x55   :  { %5103 = vst [vmem:[#allocation10_spill] sm:$0xff] %v3696_v59  ;;  %1510 = vrot.lane.b32.xlu0 %v3696_v59, %s3244_s23  ;;  %v162_v32 = vmul.f32 %v3279_v1, %v20_v58  ;;  %v615_v35 = vmul.f32 %v3323_v29, %v462_v15  ;;  %v613_v43 = vmul.f32 %v3323_v29, %v460_v18  ;;  %vm797_vm4 = vcmask 60416  }
  0x56   :  { %1605 = vrot.lane.b32.xlu1 %v3646_v36, %s3245_s6  ;;  %v306_v49 = vadd.f32 %v3284_v2, %v164_v22  ;;  %v307_v12 = vadd.f32 %v3284_v2, %v165_v23  ;;  %v683_v9 = vmul.f32 %v3323_v29, %v530_v28  ;;  %v681_v58 = vmul.f32 %v3323_v29, %v528_v30 }
  0x57   :  { %v3723_v11 = vpack.c.bf16 %v615_v35, %v615_v35  ;;  %v3725_v15 = vpack.c.bf16 %v613_v43, %v613_v43  ;;  %v163_v28 = vmul.f32 %v3279_v1, %v21_v40  ;;  %v304_v30 = vadd.f32 %v3284_v2, %v162_v32  ;;  %v90_v35 = vld [vmem:[%s5067_s0 + $0x260] sm:$0xff]  ;;  %v91_v43 = vld [vmem:[%s5067_s0 + $0x268] sm:$0x1] }
  0x58   :  { %v442_v18 = vmax.f32 %v306_v49, 0.0  ;;  %v443_v22 = vmax.f32 %v307_v12, 0.0  ;;  %v3729_v23 = vpack.c.bf16 %v683_v9, %v683_v9  ;;  %v3731_v56 = vpack.c.bf16 %v681_v58, %v681_v58  ;;  %v88_v49 = vld [vmem:[%s5067_s0 + $0x250] sm:$0xff]  ;;  %v89_v58 = vld [vmem:[%s5067_s0 + $0x258] sm:$0x1] }
  0x59   :  { %1603 = vrot.lane.b32.xlu0 %v3649_v53, %s3245_s6  ;;  %v305_v32 = vadd.f32 %v3284_v2, %v163_v28  ;;  %v440_v12 = vmax.f32 %v304_v30, 0.0  ;;  %v232_v7 = vmul.f32 %v3279_v1, %v90_v35  ;;  %v233_v41 = vmul.f32 %v3279_v1, %v91_v43 }
  0x5a   :  { %1621 = vrot.lane.b32.xlu1 %v3673_v20, %s3245_s6  ;;  %v595_v9 = vmul.f32 %v3323_v29, %v442_v18  ;;  %v3110_v40 = vpack.c.bf16 %v443_v22, %v443_v22  ;;  %v230_v17 = vmul.f32 %v3279_v1, %v88_v49  ;;  %v231_v16 = vmul.f32 %v3279_v1, %v89_v58 }
  0x5b   :  { %v441_v19 = vmax.f32 %v305_v32, 0.0  ;;  %v593_v18 = vmul.f32 %v3323_v29, %v440_v12  ;;  %v374_v22 = vadd.f32 %v3284_v2, %v232_v7  ;;  %v375_v28 = vadd.f32 %v3284_v2, %v233_v41 }
  0x5c   :  { %v3109_v4 = vpack.c.bf16 %v595_v9, %v595_v9  ;;  %v1772_v60 = vshll.u32 %v3110_v40, 16  ;;  %v372_v30 = vadd.f32 %v3284_v2, %v230_v17  ;;  %v373_v48 = vadd.f32 %v3284_v2, %v231_v16 }
  0x5d   :  { %1619 = vrot.lane.b32.xlu0 %v3707_v52, %s3245_s6  ;;  %v3107_v58 = vpack.c.bf16 %v593_v18, %v593_v18  ;;  %v3108_v9 = vpack.c.bf16 %v441_v19, %v441_v19  ;;  %v510_v12 = vmax.f32 %v374_v22, 0.0  ;;  %v511_v40 = vmax.f32 %v375_v28, 0.0 }
  0x5e   :  { %1609 = vrot.lane.b32.xlu1 %v3723_v11, %s3245_s6  ;;  %v1763_v35 = vshrl.u32 %v3109_v4, 16  ;;  %v1766_v43 = vshll.u32 %v3109_v4, 16  ;;  %v1774_v49 = vrot.slane %v1772_v60, 5  ;;  %v508_v7 = vmax.f32 %v372_v30, 0.0  ;;  %v26_v60 = vld [vmem:[%s5067_s0 + $0x40] sm:$0xff] }
  0x5f   :  { %v1749_v42 = vshrl.u32 %v3107_v58, 16  ;;  %v1752_v17 = vshll.u32 %v3107_v58, 16  ;;  %v1758_v59 = vshll.u32 %v3108_v9, 16  ;;  %v663_v16 = vmul.f32 %v3323_v29, %v510_v12 }
  0x60   :  { %v1765_v32 = vrot.slane %v1763_v35, 4  ;;  %v1768_v41 = vrot.slane %v1766_v43, 5  ;;  %v3126_v50 = vpack.c.bf16 %v511_v40, %v511_v40  ;;  %v509_v6 = vmax.f32 %v373_v48, 0.0  ;;  %v27_v48 = vld [vmem:[%s5067_s0 + $0x48] sm:$0x1] }
  0x61   :  { %1607 = vrot.lane.b32.xlu0 %v3725_v15, %s3245_s6  ;;  %v1751_v19 = vrot.slane %v1749_v42, 4  ;;  %v1754_v18 = vrot.slane %v1752_v17, 5  ;;  %v661_v22 = vmul.f32 %v3323_v29, %v508_v7  ;;  %v1760_v28 = vrot.slane %v1758_v59, 5  ;;  %v25_v17 = vld [vmem:[%s5067_s0 + $0x38] sm:$0x1] }
  0x62   :  { %1625 = vrot.lane.b32.xlu1 %v3729_v23, %s3245_s6  ;;  %v1769_v4 = vor.u32 %v1768_v41, %v1765_v32  ;;  %v3125_v30 = vpack.c.bf16 %v663_v16, %v663_v16  ;;  %v1884_v35 = vshll.u32 %v3126_v50, 16  ;;  %v3124_v43 = vpack.c.bf16 %v509_v6, %v509_v6  ;;  %v24_v6 = vld [vmem:[%s5067_s0 + $0x30] sm:$0xff] }
  0x63   :  { %v1755_v9 = vor.u32 %v1754_v18, %v1751_v19  ;;  %v3123_v12 = vpack.c.bf16 %v661_v22, %v661_v22  ;;  %v168_v40 = vmul.f32 %v3279_v1, %v26_v60  ;;  %v169_v19 = vmul.f32 %v3279_v1, %v27_v48  ;;  %v95_v18 = vld [vmem:[%s5067_s0 + $0x288] sm:$0x1] }
  0x64   :  { %v1770_v58 = vrot.slane %v1769_v4, 4  ;;  %v1875_v5 = vshrl.u32 %v3125_v30, 16  ;;  %v1878_v34 = vshll.u32 %v3125_v30, 16  ;;  %v1886_v32 = vrot.slane %v1884_v35, 5 }
  0x65   :  { %1623 = vrot.lane.b32.xlu0 %v3731_v56, %s3245_s6  ;;  %v1870_v42 = vshll.u32 %v3124_v43, 16  ;;  %v1756_v59 = vrot.slane %v1755_v9, 4  ;;  %v1861_v41 = vshrl.u32 %v3123_v12, 16  ;;  %v1864_v50 = vshll.u32 %v3123_v12, 16 }
  0x66   :  { %v1775_v7 = vsel %vm3340_vm3, %v1770_v58, %v1774_v49  ;;  %v1877_v16 = vrot.slane %v1875_v5, 4  ;;  %v1880_v60 = vrot.slane %v1878_v34, 5  ;;  %v94_v49 = vld [vmem:[%s5067_s0 + $0x280] sm:$0xff]  ;;  %v310_v43 = vadd.f32 %v3284_v2, %v168_v40 }
  0x67   :  { %1974 = vrot.lane.b32.xlu1 %v1775_v7, %s3246_s27  ;;  %v1872_v4 = vrot.slane %v1870_v42, 5  ;;  %v1761_v22 = vsel %vm3340_vm3, %v1756_v59, %v1760_v28  ;;  %v1863_v30 = vrot.slane %v1861_v41, 4  ;;  %v1866_v35 = vrot.slane %v1864_v50, 5  ;;  %v3809_v5 = vld [vmem:[%s5068_s1] ss:$0 sm:$0xff] }
  0x68   :  { %v1881_v34 = vor.u32 %v1880_v60, %v1877_v16  ;;  %v311_v1 = vadd.f32 %v3284_v2, %v169_v19  ;;  %v166_v58 = vmul.f32 %v3809_v5, %v24_v6  ;;  %v167_v9 = vmul.f32 %v3809_v5, %v25_v17  ;;  %v3818_v2 = vld [vmem:[%s5069_s2] ss:$0 sm:$0xff]  ;;  %v92_v60 = vld [vmem:[%s5067_s0 + $0x270] sm:$0xff] }
  0x69   :  { %1972 = vrot.lane.b32.xlu0 %v1761_v22, %s3246_s27  ;;  %v1867_v12 = vor.u32 %v1866_v35, %v1863_v30  ;;  %v446_v28 = vmax.f32 %v310_v43, 0.0  ;;  %v236_v48 = vmul.f32 %v3809_v5, %v94_v49  ;;  %v237_v40 = vmul.f32 %v3809_v5, %v95_v18 }
  0x6a   :  { %v1882_v42 = vrot.slane %v1881_v34, 4  ;;  %v447_v7 = vmax.f32 %v311_v1, 0.0  ;;  %v308_v59 = vadd.f32 %v3818_v2, %v166_v58  ;;  %v309_v41 = vadd.f32 %v3818_v2, %v167_v9  ;;  %v93_v1 = vld [vmem:[%s5067_s0 + $0x278] sm:$0x1] }
  0x6b   :  { %v1868_v50 = vrot.slane %v1867_v12, 4  ;;  %v599_v6 = vmul.f32 %v3323_v29, %v446_v28  ;;  %v378_v17 = vadd.f32 %v3818_v2, %v236_v48  ;;  %v379_v16 = vadd.f32 %v3818_v2, %v237_v40 }
  0x6c   :  { %v1887_v19 = vsel %vm3340_vm3, %v1882_v42, %v1886_v32  ;;  %v3114_v49 = vpack.c.bf16 %v447_v7, %v447_v7  ;;  %v444_v18 = vmax.f32 %v308_v59, 0.0  ;;  %v445_v22 = vmax.f32 %v309_v41, 0.0 }
  0x6d   :  { %1990 = vrot.lane.b32.xlu1 %v1887_v19, %s3246_s27  ;;  %v1873_v30 = vsel %vm3340_vm3, %v1868_v50, %v1872_v4  ;;  %v3113_v35 = vpack.c.bf16 %v599_v6, %v599_v6  ;;  %v514_v43 = vmax.f32 %v378_v17, 0.0  ;;  %v515_v34 = vmax.f32 %v379_v16, 0.0 }
  0x6e   :  { %1988 = vrot.lane.b32.xlu0 %v1873_v30, %s3246_s27  ;;  %v1800_v58 = vshll.u32 %v3114_v49, 16  ;;  %v597_v32 = vmul.f32 %v3323_v29, %v444_v18  ;;  %v3112_v9 = vpack.c.bf16 %v445_v22, %v445_v22  ;;  %v234_v12 = vmul.f32 %v3809_v5, %v92_v60  ;;  %v39_v60 = vld [vmem:[%s5067_s0 + $0xb8] sm:$0x1] }
  0x6f   :  { %v1791_v28 = vshrl.u32 %v3113_v35, 16  ;;  %v1794_v48 = vshll.u32 %v3113_v35, 16  ;;  %v667_v40 = vmul.f32 %v3323_v29, %v514_v43  ;;  %v3130_v4 = vpack.c.bf16 %v515_v34, %v515_v34 }
  0x70   :  { %v1802_v42 = vrot.slane %v1800_v58, 5  ;;  %v3111_v7 = vpack.c.bf16 %v597_v32, %v597_v32  ;;  %v1786_v59 = vshll.u32 %v3112_v9, 16  ;;  %v235_v41 = vmul.f32 %v3809_v5, %v93_v1 }
  0x71   :  { %v1793_v50 = vrot.slane %v1791_v28, 4  ;;  %v1796_v6 = vrot.slane %v1794_v48, 5  ;;  %v3129_v17 = vpack.c.bf16 %v667_v40, %v667_v40  ;;  %v1912_v16 = vshll.u32 %v3130_v4, 16 }
  0x72   :  { %v1777_v19 = vshrl.u32 %v3111_v7, 16  ;;  %v1780_v49 = vshll.u32 %v3111_v7, 16  ;;  %v1788_v18 = vrot.slane %v1786_v59, 5  ;;  %v376_v22 = vadd.f32 %v3818_v2, %v234_v12  ;;  %v37_v12 = vld [vmem:[%s5067_s0 + $0xa8] sm:$0x1] }
  0x73   :  { %v1797_v30 = vor.u32 %v1796_v6, %v1793_v50  ;;  %v1903_v35 = vshrl.u32 %v3129_v17, 16  ;;  %v1906_v43 = vshll.u32 %v3129_v17, 16  ;;  %v1914_v34 = vrot.slane %v1912_v16, 5 }
  0x74   :  { %v1779_v58 = vrot.slane %v1777_v19, 4  ;;  %v1782_v32 = vrot.slane %v1780_v49, 5  ;;  %v377_v1 = vadd.f32 %v3818_v2, %v235_v41  ;;  %v512_v9 = vmax.f32 %v376_v22, 0.0 }
  0x75   :  { %v1798_v28 = vrot.slane %v1797_v30, 4  ;;  %v1905_v48 = vrot.slane %v1903_v35, 4  ;;  %v1908_v40 = vrot.slane %v1906_v43, 5  ;;  %v181_v4 = vmul.f32 %v3809_v5, %v39_v60 }
  0x76   :  { %v1783_v7 = vor.u32 %v1782_v32, %v1779_v58  ;;  %v513_v59 = vmax.f32 %v377_v1, 0.0  ;;  %v665_v50 = vmul.f32 %v3323_v29, %v512_v9  ;;  %v5104_v6 = vshrl.u32 %v3646_v36, 16 }
  0x77   :  { %v1803_v41 = vsel %vm3340_vm3, %v1798_v28, %v1802_v42  ;;  %v1909_v16 = vor.u32 %v1908_v40, %v1905_v48  ;;  %v323_v19 = vadd.f32 %v3818_v2, %v181_v4  ;;  %v5105_v49 = vshll.u32 %v3646_v36, 16  ;;  %v107_v40 = vld [vmem:[%s5067_s0 + $0x2f8] sm:$0x1] }
  0x78   :  { %v2086_v17 = vrot.slane %v5104_v6, 4  ;;  %1978 = vrot.lane.b32.xlu1 %v1803_v41, %s3246_s27  ;;  %v1784_v60 = vrot.slane %v1783_v7, 4  ;;  %v3127_v30 = vpack.c.bf16 %v665_v50, %v665_v50  ;;  %v3128_v35 = vpack.c.bf16 %v513_v59, %v513_v59 }
  0x79   :  { %v2089_v22 = vrot.slane %v5105_v49, 5  ;;  %v179_v43 = vmul.f32 %v3809_v5, %v37_v12  ;;  %v1910_v58 = vrot.slane %v1909_v16, 4  ;;  %v459_v32 = vmax.f32 %v323_v19, 0.0 }
  0x7a   :  { %v5106_v9 = vshrl.u32 %v3649_v53, 16  ;;  %v1789_v42 = vsel %vm3340_vm3, %v1784_v60, %v1788_v18  ;;  %v1889_v28 = vshrl.u32 %v3127_v30, 16  ;;  %v1892_v48 = vshll.u32 %v3127_v30, 16  ;;  %v105_v18 = vld [vmem:[%s5067_s0 + $0x2e8] sm:$0x1] }
  0x7b   :  { %v2090_v1 = vor.u32 %v2089_v22, %v2086_v17  ;;  %v1898_v36 = vshll.u32 %v3128_v35, 16  ;;  %1976 = vrot.lane.b32.xlu0 %v1789_v42, %s3246_s27  ;;  %v1915_v4 = vsel %vm3340_vm3, %v1910_v58, %v1914_v34  ;;  %v3140_v12 = vpack.c.bf16 %v459_v32, %v459_v32 }
  0x7c   :  { %v2072_v6 = vrot.slane %v5106_v9, 4  ;;  %v321_v59 = vadd.f32 %v3818_v2, %v179_v43  ;;  %1994 = vrot.lane.b32.xlu1 %v1915_v4, %s3246_s27  ;;  %v1891_v50 = vrot.slane %v1889_v28, 4  ;;  %v1894_v17 = vrot.slane %v1892_v48, 5 }
  0x7d   :  { %v2091_v7 = vrot.slane %v2090_v1, 4  ;;  %v1900_v41 = vrot.slane %v1898_v36, 5  ;;  %v5107_v16 = vshll.u32 %v3649_v53, 16  ;;  %v2093_v49 = vshll.u32 %v3140_v12, 16  ;;  %v43_v36 = vld [vmem:[%s5067_s0 + $0xd8] sm:$0x1] }
  0x7e   :  { %v457_v22 = vmax.f32 %v321_v59, 0.0  ;;  %v249_v34 = vmul.f32 %v3809_v5, %v107_v40  ;;  %v5108_v60 = vshrl.u32 %v3673_v20, 16  ;;  %v1895_v35 = vor.u32 %v1894_v17, %v1891_v50 }
  0x7f   :  { %v2075_v19 = vrot.slane %v5107_v16, 5  ;;  %v5109_v58 = vshll.u32 %v3673_v20, 16  ;;  %v247_v1 = vmul.f32 %v3809_v5, %v105_v18  ;;  %v2095_v9 = vrot.slane %v2093_v49, 5  ;;  %v41_v16 = vld [vmem:[%s5067_s0 + $0xc8] sm:$0x1] }
  0x80   :  { %v2198_v30 = vrot.slane %v5108_v60, 4  ;;  %v3139_v42 = vpack.c.bf16 %v457_v22, %v457_v22  ;;  %v391_v28 = vadd.f32 %v3818_v2, %v249_v34  ;;  %v5110_v53 = vshrl.u32 %v3707_v52, 16 }
  0x81   :  { %v2076_v43 = vor.u32 %v2075_v19, %v2072_v6  ;;  %v2201_v32 = vrot.slane %v5109_v58, 5  ;;  %v1896_v40 = vrot.slane %v1895_v35, 4  ;;  %v389_v6 = vadd.f32 %v3818_v2, %v247_v1 }
  0x82   :  { %v2184_v48 = vrot.slane %v5110_v53, 4  ;;  %v2096_v20 = vsel %vm3340_vm3, %v2091_v7, %v2095_v9  ;;  %v2079_v59 = vshll.u32 %v3139_v42, 16  ;;  %v527_v18 = vmax.f32 %v391_v28, 0.0  ;;  %v111_v9 = vld [vmem:[%s5067_s0 + $0x318] sm:$0x1] }
  0x83   :  { %v2077_v4 = vrot.slane %v2076_v43, 4  ;;  %v2202_v12 = vor.u32 %v2201_v32, %v2198_v30  ;;  %v5111_v50 = vshll.u32 %v3707_v52, 16  ;;  %v1901_v19 = vsel %vm3340_vm3, %v1896_v40, %v1900_v41  ;;  %2295 = vrot.lane.b32.xlu1 %v2096_v20, %s3247_s30 }
  0x84   :  { %v525_v22 = vmax.f32 %v389_v6, 0.0  ;;  %v185_v34 = vmul.f32 %v3809_v5, %v43_v36  ;;  %1992 = vrot.lane.b32.xlu0 %v1901_v19, %s3246_s27  ;;  %v2081_v7 = vrot.slane %v2079_v59, 5  ;;  %v3148_v60 = vpack.c.bf16 %v527_v18, %v527_v18 }
  0x85   :  { %v2187_v17 = vrot.slane %v5111_v50, 5  ;;  %v2203_v49 = vrot.slane %v2202_v12, 4  ;;  %v5112_v30 = vshrl.u32 %v3723_v11, 16  ;;  %v5113_v41 = vshll.u32 %v3723_v11, 16 }
  0x86   :  { %v3147_v43 = vpack.c.bf16 %v525_v22, %v525_v22  ;;  %v327_v58 = vadd.f32 %v3818_v2, %v185_v34  ;;  %v183_v1 = vmul.f32 %v3809_v5, %v41_v16  ;;  %v2082_v42 = vsel %vm3340_vm3, %v2077_v4, %v2081_v7  ;;  %v109_v16 = vld [vmem:[%s5067_s0 + $0x308] sm:$0x1] }
  0x87   :  { %v2188_v52 = vor.u32 %v2187_v17, %v2184_v48  ;;  %v2114_v35 = vrot.slane %v5112_v30, 4  ;;  %v2117_v32 = vrot.slane %v5113_v41, 5  ;;  %v2205_v28 = vshll.u32 %v3148_v60, 16 }
  0x88   :  { %v5114_v48 = vshrl.u32 %v3725_v15, 16  ;;  %v2191_v40 = vshll.u32 %v3147_v43, 16  ;;  %v463_v12 = vmax.f32 %v327_v58, 0.0  ;;  %v325_v11 = vadd.f32 %v3818_v2, %v183_v1  ;;  %2293 = vrot.lane.b32.xlu0 %v2082_v42, %s3247_s30  ;;  %v78_v1 = vld [vmem:[%s5067_s0 + $0x1f0] sm:$0xff] }
  0x89   :  { %v2189_v53 = vrot.slane %v2188_v52, 4  ;;  %v2118_v6 = vor.u32 %v2117_v32, %v2114_v35  ;;  %v2207_v20 = vrot.slane %v2205_v28, 5  ;;  %v5115_v59 = vshll.u32 %v3725_v15, 16 }
  0x8a   :  { %v2100_v36 = vrot.slane %v5114_v48, 4  ;;  %v253_v50 = vmul.f32 %v3809_v5, %v111_v9  ;;  %v5116_v4 = vshrl.u32 %v3729_v23, 16  ;;  %v2193_v19 = vrot.slane %v2191_v40, 5  ;;  %v3943_v48 = vpop.permute.xlu1 %1137 }
  0x8b   :  { %v2103_v18 = vrot.slane %v5115_v59, 5  ;;  %v3142_v22 = vpack.c.bf16 %v463_v12, %v463_v12  ;;  %v2119_v34 = vrot.slane %v2118_v6, 4  ;;  %v461_v7 = vmax.f32 %v325_v11, 0.0 }
  0x8c   :  { %v2226_v17 = vrot.slane %v5116_v4, 4  ;;  %v2208_v60 = vsel %vm3340_vm3, %v2203_v49, %v2207_v20  ;;  %v395_v15 = vadd.f32 %v3818_v2, %v253_v50  ;;  %v5117_v30 = vshll.u32 %v3729_v23, 16  ;;  %v146_v49 = vld [vmem:[%s5067_s0 + $0x430] sm:$0xff]  ;;  %v60_v20 = vld [vmem:[%s5067_s0 + $0x160] sm:$0xff] }
  0x8d   :  { %v2104_v52 = vor.u32 %v2103_v18, %v2100_v36  ;;  %2311 = vrot.lane.b32.xlu1 %v2208_v60, %s3247_s30  ;;  %v2194_v43 = vsel %vm3340_vm3, %v2189_v53, %v2193_v19  ;;  %v2121_v58 = vshll.u32 %v3142_v22, 16  ;;  %v3141_v41 = vpack.c.bf16 %v461_v7, %v461_v7  ;;  %v3958_v7 = vpop.permute.xlu0 %1121 }
  0x8e   :  { %v2229_v35 = vrot.slane %v5117_v30, 5  ;;  %v251_v32 = vmul.f32 %v3809_v5, %v109_v16  ;;  %2309 = vrot.lane.b32.xlu0 %v2194_v43, %s3247_s30  ;;  %v531_v9 = vmax.f32 %v395_v15, 0.0  ;;  %v5118_v28 = vshrl.u32 %v3731_v56, 16 }
  0x8f   :  { %v2105_v23 = vrot.slane %v2104_v52, 4  ;;  %v2123_v36 = vrot.slane %v2121_v58, 5  ;;  %v2107_v40 = vshll.u32 %v3141_v41, 16  ;;  %v5119_v6 = vshll.u32 %v3731_v56, 16 }
  0x90   :  { %v2230_v42 = vor.u32 %v2229_v35, %v2226_v17  ;;  %v2212_v53 = vrot.slane %v5118_v28, 4  ;;  %v393_v12 = vadd.f32 %v3818_v2, %v251_v32  ;;  %v3150_v59 = vpack.c.bf16 %v531_v9, %v531_v9  ;;  %v61_v17 = vld [vmem:[%s5067_s0 + $0x168] sm:$0x1]  ;;  %v128_v35 = vld [vmem:[%s5067_s0 + $0x3a0] sm:$0xff]  ;;  %v1140_v28 = vpop.permute.xlu1 %1139 }
  0x91   :  { %v2215_v11 = vrot.slane %v5119_v6, 5  ;;  %v220_v50 = vmul.f32 %v3809_v5, %v78_v1  ;;  %v288_v4 = vmul.f32 %v3809_v5, %v146_v49  ;;  %v2124_v16 = vsel %vm3340_vm3, %v2119_v34, %v2123_v36  ;;  %v129_v34 = vld [vmem:[%s5067_s0 + $0x3a8] sm:$0x1] }
  0x92   :  { %v2231_v18 = vrot.slane %v2230_v42, 4  ;;  %v2109_v19 = vrot.slane %v2107_v40, 5  ;;  %v529_v56 = vmax.f32 %v393_v12, 0.0  ;;  %2299 = vrot.lane.b32.xlu1 %v2124_v16, %s3247_s30  ;;  %v2233_v60 = vshll.u32 %v3150_v59, 16  ;;  %v1124_v16 = vpop.permute.xlu0 %1123 }
  0x93   :  { %v2216_v22 = vor.u32 %v2215_v11, %v2212_v53  ;;  %v362_v52 = vadd.f32 %v3818_v2, %v220_v50  ;;  %v430_v15 = vadd.f32 %v3818_v2, %v288_v4  ;;  %v202_v30 = vmul.f32 %v3809_v5, %v60_v20 }
  0x94   :  { %v2110_v43 = vsel %vm3340_vm3, %v2105_v23, %v2109_v19  ;;  %v3149_v58 = vpack.c.bf16 %v529_v56, %v529_v56  ;;  %v203_v32 = vmul.f32 %v3809_v5, %v61_v17  ;;  %v2235_v1 = vrot.slane %v2233_v60, 5 }
  0x95   :  { %v2217_v41 = vrot.slane %v2216_v22, 4  ;;  %2297 = vrot.lane.b32.xlu0 %v2110_v43, %s3247_s30  ;;  %v498_v49 = vmax.f32 %v362_v52, 0.0  ;;  %v566_v9 = vmax.f32 %v430_v15, 0.0  ;;  %v344_v42 = vadd.f32 %v3818_v2, %v202_v30 }
  0x96   :  { %v2219_v53 = vshll.u32 %v3149_v58, 16  ;;  %v345_v36 = vadd.f32 %v3818_v2, %v203_v32  ;;  %v270_v40 = vmul.f32 %v3809_v5, %v128_v35  ;;  %v271_v12 = vmul.f32 %v3809_v5, %v129_v34  ;;  %v62_v32 = vld [vmem:[%s5067_s0 + $0x170] sm:$0xff] }
  0x97   :  { %v2236_v23 = vsel %vm3340_vm3, %v2231_v18, %v2235_v1  ;;  %v3981_v6 = vmul.f32 %v3323_v29, %v498_v49  ;;  %v3984_v11 = vmul.f32 %v3323_v29, %v566_v9  ;;  %v480_v20 = vmax.f32 %v344_v42, 0.0  ;;  %v1128_v43 = vpop.permute.xlu1 %1127  ;;  %v63_v1 = vld [vmem:[%s5067_s0 + $0x178] sm:$0x1] }
  0x98   :  { %2315 = vrot.lane.b32.xlu1 %v2236_v23, %s3247_s30  ;;  %v2221_v59 = vrot.slane %v2219_v53, 5  ;;  %v481_v50 = vmax.f32 %v345_v36, 0.0  ;;  %v412_v4 = vadd.f32 %v3818_v2, %v270_v40  ;;  %v413_v17 = vadd.f32 %v3818_v2, %v271_v12 }
  0x99   :  { %v3991_v19 = vpack.c.bf16 %v3981_v6, %v3981_v6  ;;  %v633_v18 = vmul.f32 %v3323_v29, %v480_v20  ;;  %v788_v56 = vpack.c.bf16 %v3519_v10, %v3512_v0  ;;  %v4003_v34 = vpack.c.bf16 %v3984_v11, %v3984_v11  ;;  %v1126_v40 = vpop.permute.xlu0 %1125 }
  0x9a   :  { %v2222_v22 = vsel %vm3340_vm3, %v2217_v41, %v2221_v59  ;;  %v3036_v60 = vpack.c.bf16 %v481_v50, %v481_v50  ;;  %v548_v52 = vmax.f32 %v412_v4, 0.0  ;;  %v549_v15 = vmax.f32 %v413_v17, 0.0 }
  0x9b   :  { %2313 = vrot.lane.b32.xlu0 %v2222_v22, %s3247_s30  ;;  %v1323_v30 = vshrl.u32 %v3991_v19, 16  ;;  %v1326_v35 = vshll.u32 %v3991_v19, 16  ;;  %v3035_v0 = vpack.c.bf16 %v633_v18, %v633_v18  ;;  %vm1169_vm5 = vcmask 126016   ;;  %806 = vst.msk [vmem:[#allocation2 + $0x20] sm:$0xf] %vm797_vm4, %v788_v56 }
  0x9c   :  { %2366 = vrot.lane.b32.xlu1 %v3565_v55, %s3248_s24  ;;  %v963_v10 = vshll.u32 %v3036_v60, 16  ;;  %v701_v58 = vmul.f32 %v3323_v29, %v548_v52  ;;  %v4008_v41 = vpack.c.bf16 %v549_v15, %v549_v15  ;;  %v754_v49 = vpack.c.bf16 %v3464_v21, %v3457_v13  ;;  %1178 = vst.msk [vmem:[#allocation2 + $0x20] sm:$0xf] %vm1169_vm5, %v3943_v48 }
  0x9d   :  { %v789_v55 = vpack.c.bf16 %v3475_v26, %v3483_v33  ;;  %v1435_v9 = vshrl.u32 %v4003_v34, 16  ;;  %v954_v42 = vshrl.u32 %v3035_v0, 16  ;;  %v957_v53 = vshll.u32 %v3035_v0, 16 }
  0x9e   :  { %v3051_v36 = vpack.c.bf16 %v701_v58, %v701_v58  ;;  %v4024_v12 = vrot.slane %v963_v10, 5  ;;  %798 = vst.msk [vmem:[#allocation2] sm:$0xf] %vm797_vm4, %v754_v49  ;;  %v755_v13 = vpack.c.bf16 %v3427_v51, %v3433_v54  ;;  %v204_v21 = vmul.f32 %v3809_v5, %v62_v32  ;;  %v131_v51 = vld [vmem:[%s5067_s0 + $0x3b8] sm:$0x1]  ;;  %v1144_v4 = vpop.permute.xlu1 %1143 }
  0x9f   :  { %2364 = vrot.lane.b32.xlu0 %v3444_v62, %s3248_s24  ;;  %807 = vst.msk [vmem:[#allocation2 + $0x24] sm:$0xf] %vm797_vm4, %v789_v55  ;;  %v205_v26 = vmul.f32 %v3809_v5, %v63_v1  ;;  %v130_v62 = vld [vmem:[%s5067_s0 + $0x3b0] sm:$0xff]  ;;  %v956_v33 = vrot.slane %v954_v42, 4  ;;  %v959_v48 = vrot.slane %v957_v53, 5  ;;  %v1075_v54 = vshll.u32 %v4008_v41, 16 }
  0xa0   :  { %2382 = vrot.lane.b32.xlu1 %v3634_v14, %s3248_s24  ;;  %v1066_v23 = vshrl.u32 %v3051_v36, 16  ;;  %v1069_v20 = vshll.u32 %v3051_v36, 16  ;;  %1170 = vst.msk [vmem:[#allocation2] sm:$0xf] %vm1169_vm5, %v3958_v7  ;;  %1179 = vst.msk [vmem:[#allocation2 + $0x24] sm:$0xf] %vm1169_vm5, %v1140_v28  ;;  %v346_v59 = vadd.f32 %v3818_v2, %v204_v21  ;;  %v757_v50 = vpack.c.bf16 %v3532_v25, %v3535_v27 }
  0xa1   :  { %799 = vst.msk [vmem:[#allocation2 + $0x4] sm:$0xf] %vm797_vm4, %v755_v13  ;;  %v347_v14 = vadd.f32 %v3818_v2, %v205_v26  ;;  %v960_v17 = vor.u32 %v959_v48, %v956_v33  ;;  %v756_v28 = vpack.c.bf16 %v3554_v46, %v3557_v47  ;;  %v272_v60 = vmul.f32 %v3809_v5, %v130_v62  ;;  %v79_v27 = vld [vmem:[%s5067_s0 + $0x1f8] sm:$0x1] }
  0xa2   :  { %v1068_v7 = vrot.slane %v1066_v23, 4  ;;  %v1071_v18 = vrot.slane %v1069_v20, 5  ;;  %1171 = vst.msk [vmem:[#allocation2 + $0x4] sm:$0xf] %vm1169_vm5, %v1124_v16  ;;  %v482_v56 = vmax.f32 %v346_v59, 0.0  ;;  %v273_v25 = vmul.f32 %v3809_v5, %v131_v51  ;;  %v1142_v52 = vpop.permute.xlu0 %1141  ;;  %v66_v20 = vld [vmem:[%s5067_s0 + $0x190] sm:$0xff] }
  0xa3   :  { %2380 = vrot.lane.b32.xlu0 %v3494_v45, %s3248_s24  ;;  %v483_v22 = vmax.f32 %v347_v14, 0.0  ;;  %801 = vst.msk [vmem:[#allocation2 + $0xc] sm:$0xf] %vm797_vm4, %v757_v50  ;;  %v961_v16 = vrot.slane %v960_v17, 4  ;;  %800 = vst.msk [vmem:[#allocation2 + $0x8] sm:$0xf] %vm797_vm4, %v756_v28  ;;  %v791_v45 = vpack.c.bf16 %v3591_v31, %v3596_v39  ;;  %v790_v47 = vpack.c.bf16 %v3618_v61, %v3621_v3 }
  0xa4   :  { %2370 = vrot.lane.b32.xlu1 %v3991_v19, %s3248_s24  ;;  %v1072_v46 = vor.u32 %v1071_v18, %v1068_v7  ;;  %1173 = vst.msk [vmem:[#allocation2 + $0xc] sm:$0xf] %vm1169_vm5, %v1128_v43  ;;  %v635_v15 = vmul.f32 %v3323_v29, %v482_v56  ;;  %1172 = vst.msk [vmem:[#allocation2 + $0x8] sm:$0xf] %vm1169_vm5, %v1126_v40  ;;  %v414_v10 = vadd.f32 %v3818_v2, %v272_v60  ;;  %v147_v55 = vld [vmem:[%s5067_s0 + $0x438] sm:$0x1] }
  0xa5   :  { %v3038_v0 = vpack.c.bf16 %v483_v22, %v483_v22  ;;  %v415_v58 = vadd.f32 %v3818_v2, %v273_v25  ;;  %v1438_v43 = vshll.u32 %v4003_v34, 16  ;;  %v1077_v32 = vrot.slane %v1075_v54, 5  ;;  %809 = vst.msk [vmem:[#allocation2 + $0x2c] sm:$0xf] %vm797_vm4, %v791_v45  ;;  %808 = vst.msk [vmem:[#allocation2 + $0x28] sm:$0xf] %vm797_vm4, %v790_v47 }
  0xa6   :  { %v1073_v41 = vrot.slane %v1072_v46, 4  ;;  %v221_v31 = vmul.f32 %v3809_v5, %v79_v27  ;;  %v3037_v39 = vpack.c.bf16 %v635_v15, %v635_v15  ;;  %v550_v61 = vmax.f32 %v414_v10, 0.0  ;;  %1181 = vst.msk [vmem:[#allocation2 + $0x2c] sm:$0xf] %vm1169_vm5, %v1144_v4  ;;  %1180 = vst.msk [vmem:[#allocation2 + $0x28] sm:$0xf] %vm1169_vm5, %v1142_v52 }
  0xa7   :  { %2368 = vrot.lane.b32.xlu0 %v3540_v37, %s3248_s24  ;;  %v551_v3 = vmax.f32 %v415_v58, 0.0  ;;  %v1325_v1 = vrot.slane %v1323_v30, 4  ;;  %v1493_v49 = vpop.permute.xlu1 %1492  ;;  %v4092_v37 = vsel %vm3340_vm3, %v961_v16, %v4024_v12  ;;  %v1328_v53 = vrot.slane %v1326_v35, 5  ;;  %v67_v7 = vld [vmem:[%s5067_s0 + $0x198] sm:$0x1]  ;;  %v64_v22 = vld [vmem:[%s5067_s0 + $0x180] sm:$0xff] }
  0xa8   :  { %2386 = vrot.lane.b32.xlu1 %v4003_v34, %s3248_s24  ;;  %v363_v42 = vadd.f32 %v3818_v2, %v221_v31  ;;  %vm1538_vm6 = vcmask 191616   ;;  %v968_v30 = vshrl.u32 %v3037_v39, 16  ;;  %v971_v36 = vshll.u32 %v3037_v39, 16  ;;  %v134_v52 = vld [vmem:[%s5067_s0 + $0x3d0] sm:$0xff]  ;;  %v135_v58 = vld [vmem:[%s5067_s0 + $0x3d8] sm:$0x1] }
  0xa9   :  { %v977_v40 = vshll.u32 %v3038_v0, 16  ;;  %v703_v13 = vmul.f32 %v3323_v29, %v550_v61  ;;  %1540 = vst.msk [vmem:[#allocation2 + $0x4] sm:$0xf] %vm1538_vm6, %v1493_v49  ;;  %v4101_v21 = vsel %vm3340_vm3, %v1073_v41, %v1077_v32  ;;  %v3054_v26 = vpack.c.bf16 %v551_v3, %v551_v3 }
  0xaa   :  { %v4103_v12 = vmax.f32 %v363_v42, 0.0  ;;  %v289_v62 = vmul.f32 %v3809_v5, %v147_v55  ;;  %v970_v19 = vrot.slane %v968_v30, 4  ;;  %v973_v35 = vrot.slane %v971_v36, 5 }
  0xab   :  { %2384 = vrot.lane.b32.xlu0 %v3614_v57, %s3248_s24  ;;  %v3053_v33 = vpack.c.bf16 %v703_v13, %v703_v13  ;;  %v1329_v48 = vor.u32 %v1328_v53, %v1325_v1  ;;  %v1491_v23 = vpop.permute.xlu0 %1490  ;;  %v1089_v51 = vshll.u32 %v3054_v26, 16  ;;  %v1437_v59 = vrot.slane %v1435_v9, 4  ;;  %v132_v26 = vld [vmem:[%s5067_s0 + $0x3c0] sm:$0xff] }
  0xac   :  { %2469 = vrot.lane.b32.xlu1 %v3422_v44, %s3249_s16  ;;  %v3068_v54 = vpack.c.bf16 %v4103_v12, %v4103_v12  ;;  %1539 = vst.msk [vmem:[#allocation2] sm:$0xf] %vm1538_vm6, %v1491_v23  ;;  %v431_v57 = vadd.f32 %v3818_v2, %v289_v62  ;;  %v974_v14 = vor.u32 %v973_v35, %v970_v19  ;;  %v1440_v17 = vrot.slane %v1438_v43, 5  ;;  %v5121_v23 = vld [vmem:[#allocation3_spill] sm:$0xff] }
  0xad   :  { %v1080_v50 = vshrl.u32 %v3053_v33, 16  ;;  %v1083_v4 = vshll.u32 %v3053_v33, 16  ;;  %v979_v44 = vrot.slane %v977_v40, 5  ;;  %v208_v56 = vmul.f32 %v3809_v5, %v66_v20 }
  0xae   :  { %v1332_v18 = vshll.u32 %v3068_v54, 16  ;;  %v4122_v28 = vmax.f32 %v431_v57, 0.0  ;;  %v975_v34 = vrot.slane %v974_v14, 4  ;;  %v1330_v25 = vrot.slane %v1329_v48, 4  ;;  %v133_v48 = vld [vmem:[%s5067_s0 + $0x3c8] sm:$0x1] }
  0xaf   :  { %2467 = vrot.lane.b32.xlu0 %v3390_v63, %s3249_s16  ;;  %v1082_v9 = vrot.slane %v1080_v50, 4  ;;  %v1085_v60 = vrot.slane %v1083_v4, 5  ;;  %v1441_v16 = vor.u32 %v1440_v17, %v1437_v59  ;;  %v209_v45 = vmul.f32 %v3809_v5, %v67_v7  ;;  %v65_v63 = vld [vmem:[%s5067_s0 + $0x188] sm:$0x1] }
  0xb0   :  { %2485 = vrot.lane.b32.xlu1 %v3473_v24, %s3249_s16  ;;  %v3084_v27 = vpack.c.bf16 %v4122_v28, %v4122_v28  ;;  %v1509_v46 = vpop.permute.xlu1 %1508  ;;  %v350_v47 = vadd.f32 %v3818_v2, %v208_v56  ;;  %v1091_v0 = vrot.slane %v1089_v51, 5  ;;  %v1334_v24 = vrot.slane %v1332_v18, 5 }
  0xb1   :  { %v1086_v15 = vor.u32 %v1085_v60, %v1082_v9  ;;  %1548 = vst.msk [vmem:[#allocation2 + $0x24] sm:$0xf] %vm1538_vm6, %v1509_v46  ;;  %v206_v10 = vmul.f32 %v3809_v5, %v64_v22  ;;  %v4149_v43 = vsel %vm3340_vm3, %v975_v34, %v979_v44  ;;  %v351_v32 = vadd.f32 %v3818_v2, %v209_v45 }
  0xb2   :  { %5120 = vst [vmem:[#allocation11_spill] sm:$0xff] %v4149_v43  ;;  %v1444_v41 = vshll.u32 %v3084_v27, 16  ;;  %v486_v31 = vmax.f32 %v350_v47, 0.0  ;;  %v207_v61 = vmul.f32 %v3809_v5, %v65_v63  ;;  %v276_v1 = vmul.f32 %v3809_v5, %v134_v52  ;;  %v5124_v47 = vld [vmem:[#allocation8_spill] sm:$0xff] }
  0xb3   :  { %2483 = vrot.lane.b32.xlu0 %v3372_v38, %s3249_s16  ;;  %v1087_v39 = vrot.slane %v1086_v15, 4  ;;  %v348_v3 = vadd.f32 %v3818_v2, %v206_v10  ;;  %v1442_v49 = vrot.slane %v1441_v16, 4  ;;  %v487_v55 = vmax.f32 %v351_v32, 0.0  ;;  %v80_v10 = vld [vmem:[%s5067_s0 + $0x200] sm:$0xff] }
  0xb4   :  { %2473 = vrot.lane.b32.xlu1 %v4092_v37, %s3249_s16  ;;  %v639_v42 = vmul.f32 %v3323_v29, %v486_v31  ;;  %v277_v53 = vmul.f32 %v3809_v5, %v135_v58  ;;  %v4163_v30 = vsel %vm3340_vm3, %v1330_v25, %v1334_v24  ;;  %v349_v36 = vadd.f32 %v3818_v2, %v207_v61  ;;  %v5123_v25 = vld [vmem:[#allocation4_spill] sm:$0xff] }
  0xb5   :  { %v1507_v38 = vpop.permute.xlu0 %1506  ;;  %v484_v40 = vmax.f32 %v348_v3, 0.0  ;;  %v418_v13 = vadd.f32 %v3818_v2, %v276_v1  ;;  %v1446_v62 = vrot.slane %v1444_v41, 5  ;;  %v3042_v35 = vpack.c.bf16 %v487_v55, %v487_v55  ;;  %v5125_v55 = vld [vmem:[#allocation5_spill] sm:$0xff] }
  0xb6   :  { %1547 = vst.msk [vmem:[#allocation2 + $0x20] sm:$0xf] %vm1538_vm6, %v1507_v38  ;;  %v3041_v19 = vpack.c.bf16 %v639_v42, %v639_v42  ;;  %v419_v33 = vadd.f32 %v3818_v2, %v277_v53  ;;  %v4179_v20 = vsel %vm3340_vm3, %v1087_v39, %v1091_v0  ;;  %v485_v51 = vmax.f32 %v349_v36, 0.0  ;;  %v81_v39 = vld [vmem:[%s5067_s0 + $0x208] sm:$0x1] }
  0xb7   :  { %2471 = vrot.lane.b32.xlu0 %v5121_v23, %s3249_s16  ;;  %5122 = vst [vmem:[#allocation3_spill] sm:$0xff] %v4179_v20  ;;  %v637_v54 = vmul.f32 %v3323_v29, %v484_v40  ;;  %v554_v57 = vmax.f32 %v418_v13, 0.0  ;;  %v274_v4 = vmul.f32 %v3809_v5, %v132_v26  ;;  %v275_v56 = vmul.f32 %v3809_v5, %v133_v48  ;;  %v148_v40 = vld [vmem:[%s5067_s0 + $0x440] sm:$0xff]  ;;  %v5126_v13 = vld [vmem:[#allocation10_spill] sm:$0xff] }
  0xb8   :  { %2489 = vrot.lane.b32.xlu1 %v4101_v21, %s3249_s16  ;;  %v996_v59 = vshrl.u32 %v3041_v19, 16  ;;  %v999_v14 = vshll.u32 %v3041_v19, 16  ;;  %v555_v50 = vmax.f32 %v419_v33, 0.0  ;;  %v3040_v7 = vpack.c.bf16 %v485_v51, %v485_v51  ;;  %v149_v33 = vld [vmem:[%s5067_s0 + $0x448] sm:$0x1] }
  0xb9   :  { %v3039_v17 = vpack.c.bf16 %v637_v54, %v637_v54  ;;  %v1497_v44 = vpop.permute.xlu1 %1496  ;;  %v707_v18 = vmul.f32 %v3323_v29, %v554_v57  ;;  %v1005_v9 = vshll.u32 %v3042_v35, 16  ;;  %v4192_v27 = vsel %vm3340_vm3, %v1442_v49, %v1446_v62 }
  0xba   :  { %v998_v22 = vrot.slane %v996_v59, 4  ;;  %v1001_v34 = vrot.slane %v999_v14, 5  ;;  %1542 = vst.msk [vmem:[#allocation2 + $0xc] sm:$0xf] %vm1538_vm6, %v1497_v44  ;;  %v3058_v60 = vpack.c.bf16 %v555_v50, %v555_v50  ;;  %v991_v52 = vshll.u32 %v3040_v7, 16 }
  0xbb   :  { %2487 = vrot.lane.b32.xlu0 %v5123_v25, %s3249_s16  ;;  %v982_v16 = vshrl.u32 %v3039_v17, 16  ;;  %v985_v46 = vshll.u32 %v3039_v17, 16  ;;  %v3057_v45 = vpack.c.bf16 %v707_v18, %v707_v18  ;;  %v416_v0 = vadd.f32 %v3818_v2, %v274_v4  ;;  %v5127_v4 = vld [vmem:[#allocation6_spill] sm:$0xff] }
  0xbc   :  { %2566 = vrot.lane.b32.xlu1 %v5124_v47, %s3250_s11  ;;  %v1002_v63 = vor.u32 %v1001_v34, %v998_v22  ;;  %v1495_v15 = vpop.permute.xlu0 %1494  ;;  %v417_v24 = vadd.f32 %v3818_v2, %v275_v56  ;;  %v1117_v31 = vshll.u32 %v3058_v60, 16  ;;  %v1007_v3 = vrot.slane %v1005_v9, 5  ;;  %v84_v60 = vld [vmem:[%s5067_s0 + $0x220] sm:$0xff]  ;;  %v85_v47 = vld [vmem:[%s5067_s0 + $0x228] sm:$0x1] }
  0xbd   :  { %v984_v58 = vrot.slane %v982_v16, 4  ;;  %v987_v41 = vrot.slane %v985_v46, 5  ;;  %1541 = vst.msk [vmem:[#allocation2 + $0x8] sm:$0xf] %vm1538_vm6, %v1495_v15  ;;  %v1108_v32 = vshrl.u32 %v3057_v45, 16  ;;  %v1111_v1 = vshll.u32 %v3057_v45, 16 }
  0xbe   :  { %v1003_v61 = vrot.slane %v1002_v63, 4  ;;  %v552_v49 = vmax.f32 %v416_v0, 0.0  ;;  %v553_v38 = vmax.f32 %v417_v24, 0.0  ;;  %v222_v36 = vmul.f32 %v3809_v5, %v80_v10 }
  0xbf   :  { %2564 = vrot.lane.b32.xlu0 %v5125_v55, %s3250_s11  ;;  %v988_v42 = vor.u32 %v987_v41, %v984_v58  ;;  %v1110_v53 = vrot.slane %v1108_v32, 4  ;;  %v993_v26 = vrot.slane %v991_v52, 5  ;;  %v1113_v62 = vrot.slane %v1111_v1, 5  ;;  %v3223_v55 = vld [vmem:[%s5070_s3] sm:$0xff]  }
  0xc0   :  { %2582 = vrot.lane.b32.xlu1 %v5126_v13, %s3250_s11  ;;  %v705_v19 = vmul.f32 %v3323_v29, %v552_v49  ;;  %v223_v35 = vmul.f32 %v3809_v5, %v81_v39  ;;  %v1119_v23 = vrot.slane %v1117_v31, 5  ;;  %v3056_v51 = vpack.c.bf16 %v553_v38, %v553_v38  ;;  %v82_v31 = vld [vmem:[%s5067_s0 + $0x210] sm:$0xff]  ;;  %v83_v39 = vld [vmem:[%s5067_s0 + $0x218] sm:$0x1]  ;;  %3176 = vmatprep.subr.bf16.mxu0 %v3223_v55 }
  0xc1   :  { %v989_v48 = vrot.slane %v988_v42, 4  ;;  %v364_v54 = vadd.f32 %v3818_v2, %v222_v36  ;;  %v1114_v57 = vor.u32 %v1113_v62, %v1110_v53  ;;  %v290_v50 = vmul.f32 %v3809_v5, %v148_v40  ;;  %3202 = vmatprep.subr.bf16.mxu1 %v3223_v55  ;;  %3177 = vmatpush3.bf16.msra.mxu0 %v3223_v55 }
  0xc2   :  { %v3055_v59 = vpack.c.bf16 %v705_v19, %v705_v19  ;;  %v365_v14 = vadd.f32 %v3818_v2, %v223_v35  ;;  %v4225_v17 = vsel %vm3340_vm3, %v1003_v61, %v1007_v3  ;;  %vm1651_vm7 = vcmask 257216   ;;  %3207 = vmatpush3.bf16.msra.mxu1 %v3223_v55 }
  0xc3   :  { %2580 = vrot.lane.b32.xlu0 %v5127_v4, %s3250_s11  ;;  %5128 = vst [vmem:[#allocation4_spill] sm:$0xff] %v4225_v17  ;;  %v500_v7 = vmax.f32 %v364_v54, 0.0  ;;  %v291_v44 = vmul.f32 %v3809_v5, %v149_v33  ;;  %v1115_v18 = vrot.slane %v1114_v57, 4  ;;  %v4237_v25 = vsel %vm3340_vm3, %v989_v48, %v993_v26  ;;  %v4307_v57 = vld [vmem:[%s5068_s1] ss:$0 sm:$0xff] }
  0xc4   :  { %1131 = vrot.lane.b32.xlu1 %v4149_v43, %s3243_s17  ;;  %v1094_v56 = vshrl.u32 %v3055_v59, 16  ;;  %v1097_v22 = vshll.u32 %v3055_v59, 16  ;;  %v1513_v34 = vpop.permute.xlu1 %1512  ;;  %v4230_v9 = vmax.f32 %v365_v14, 0.0  ;;  %5129 = vst [vmem:[#allocation8_spill] sm:$0xff] %v4237_v25  ;;  %v432_v46 = vadd.f32 %v3818_v2, %v290_v50  ;;  %v3224_v14 = vld [vmem:[%s5070_s3 + $0x8] sm:$0xff]  }
  0xc5   :  { %1550 = vst.msk [vmem:[#allocation2 + $0x2c] sm:$0xf] %vm1538_vm6, %v1513_v34  ;;  %v4241_v16 = vmul.f32 %v3323_v29, %v500_v7  ;;  %v433_v45 = vadd.f32 %v3818_v2, %v291_v44  ;;  %v1103_v15 = vshll.u32 %v3056_v51, 16  ;;  %v226_v32 = vmul.f32 %v3809_v5, %v84_v60  ;;  %v152_v51 = vld [vmem:[%s5067_s0 + $0x460] sm:$0xff]  ;;  %3178 = vmatprep.subr.bf16.mxu0 %v3224_v14 }
  0xc6   :  { %v1096_v63 = vrot.slane %v1094_v56, 4  ;;  %v1099_v52 = vrot.slane %v1097_v22, 5  ;;  %v3070_v0 = vpack.c.bf16 %v4230_v9, %v4230_v9  ;;  %v568_v58 = vmax.f32 %v432_v46, 0.0  ;;  %v4326_v22 = vld [vmem:[%s5069_s2] ss:$0 sm:$0xff]  ;;  %3179 = vmatpush3.bf16.msra.mxu0 %v3224_v14  ;;  %3203 = vmatprep.subr.bf16.mxu1 %v3224_v14 }
  0xc7   :  { %1129 = vrot.lane.b32.xlu0 %v4092_v37, %s3243_s17  ;;  %v1511_v24 = vpop.permute.xlu0 %1510  ;;  %v4254_v10 = vpack.c.bf16 %v4241_v16, %v4241_v16  ;;  %v4256_v41 = vmax.f32 %v433_v45, 0.0  ;;  %v4269_v37 = vsel %vm3340_vm3, %v1115_v18, %v1119_v23  ;;  %v227_v49 = vmul.f32 %v3809_v5, %v85_v47  ;;  %v153_v46 = vld [vmem:[%s5067_s0 + $0x468] sm:$0x1]  ;;  %v5131_v45 = vld [vmem:[#allocation7_spill] sm:$0xff]  ;;  %3208 = vmatpush3.bf16.msra.mxu1 %v3224_v14 }
  0xc8   :  { %1147 = vrot.lane.b32.xlu1 %v4179_v20, %s3243_s17  ;;  %5130 = vst [vmem:[#allocation5_spill] sm:$0xff] %v4269_v37  ;;  %v1100_v61 = vor.u32 %v1099_v52, %v1096_v63  ;;  %1549 = vst.msk [vmem:[#allocation2 + $0x28] sm:$0xf] %vm1538_vm6, %v1511_v24  ;;  %v4272_v3 = vshll.u32 %v3070_v0, 16  ;;  %v1606_v1 = vpop.permute.xlu1 %1605  ;;  %v4282_v38 = vmul.f32 %v3323_v29, %v568_v58  ;;  %v1105_v40 = vrot.slane %v1103_v15, 5 }
  0xc9   :  { %v1337_v42 = vshrl.u32 %v4254_v10, 16  ;;  %v1340_v53 = vshll.u32 %v4254_v10, 16  ;;  %1653 = vst.msk [vmem:[#allocation2 + $0x4] sm:$0xf] %vm1651_vm7, %v1606_v1  ;;  %v3086_v36 = vpack.c.bf16 %v4256_v41, %v4256_v41  ;;  %v368_v13 = vadd.f32 %v3818_v2, %v226_v32 }
  0xca   :  { %v369_v26 = vadd.f32 %v3818_v2, %v227_v49  ;;  %v224_v62 = vmul.f32 %v3809_v5, %v82_v31  ;;  %v1101_v19 = vrot.slane %v1100_v61, 4  ;;  %v4293_v23 = vpack.c.bf16 %v4282_v38, %v4282_v38  ;;  %v3226_v61 = vld [vmem:[%s5070_s3 + $0x10] sm:$0xff]  }
  0xcb   :  { %1145 = vrot.lane.b32.xlu0 %v4101_v21, %s3243_s17  ;;  %v1339_v35 = vrot.slane %v1337_v42, 4  ;;  %v1342_v33 = vrot.slane %v1340_v53, 5  ;;  %v1604_v48 = vpop.permute.xlu0 %1603  ;;  %v1348_v5 = vrot.slane %v4272_v3, 5  ;;  %v504_v21 = vmax.f32 %v368_v13, 0.0  ;;  %v150_v42 = vld [vmem:[%s5067_s0 + $0x450] sm:$0xff]  ;;  %3180 = vmatprep.subr.bf16.mxu0 %v3226_v61 }
  0xcc   :  { %2570 = vrot.lane.b32.xlu1 %v4163_v30, %s3250_s11  ;;  %1652 = vst.msk [vmem:[#allocation2] sm:$0xf] %vm1651_vm7, %v1604_v48  ;;  %v1622_v2 = vpop.permute.xlu1 %1621  ;;  %v4302_v54 = vmax.f32 %v369_v26, 0.0  ;;  %v225_v59 = vmul.f32 %v4307_v57, %v83_v39  ;;  %v1449_v4 = vshrl.u32 %v4293_v23, 16  ;;  %v1452_v7 = vshll.u32 %v4293_v23, 16  ;;  %3204 = vmatprep.subr.bf16.mxu1 %v3226_v61  ;;  %v5133_v26 = vld [vmem:[#allocation9_spill] sm:$0xff] }
  0xcd   :  { %v1343_v50 = vor.u32 %v1342_v33, %v1339_v35  ;;  %v4315_v44 = vshll.u32 %v3086_v36, 16  ;;  %1661 = vst.msk [vmem:[#allocation2 + $0x24] sm:$0xf] %vm1651_vm7, %v1622_v2  ;;  %v4319_v18 = vmul.f32 %v3323_v29, %v504_v21  ;;  %v366_v34 = vadd.f32 %v4326_v22, %v224_v62  ;;  %3181 = vmatpush3.bf16.msra.mxu0 %v3226_v61 }
  0xce   :  { %v3074_v56 = vpack.c.bf16 %v4302_v54, %v4302_v54  ;;  %v367_v60 = vadd.f32 %v4326_v22, %v225_v59  ;;  %v1451_v63 = vrot.slane %v1449_v4, 4  ;;  %v1454_v52 = vrot.slane %v1452_v7, 5  ;;  %3209 = vmatpush3.bf16.msra.mxu1 %v3226_v61 }
  0xcf   :  { %2568 = vrot.lane.b32.xlu0 %v5131_v45, %s3250_s11  ;;  %v1344_v47 = vrot.slane %v1343_v50, 4  ;;  %v1620_v15 = vpop.permute.xlu0 %1619  ;;  %v294_v0 = vmul.f32 %v4307_v57, %v152_v51  ;;  %v4340_v24 = vsel %vm3340_vm3, %v1101_v19, %v1105_v40  ;;  %v4345_v58 = vpack.c.bf16 %v4319_v18, %v4319_v18  ;;  %v151_v51 = vld [vmem:[%s5067_s0 + $0x458] sm:$0x1] }
  0xd0   :  { %2586 = vrot.lane.b32.xlu1 %v4192_v27, %s3250_s11  ;;  %5132 = vst [vmem:[#allocation10_spill] sm:$0xff] %v4340_v24  ;;  %1660 = vst.msk [vmem:[#allocation2 + $0x20] sm:$0xf] %vm1651_vm7, %v1620_v15  ;;  %v502_v32 = vmax.f32 %v366_v34, 0.0  ;;  %v4347_v31 = vmax.f32 %v367_v60, 0.0  ;;  %v1610_v39 = vpop.permute.xlu1 %1609  ;;  %v1455_v3 = vor.u32 %v1454_v52, %v1451_v63  ;;  %v1460_v1 = vrot.slane %v4315_v44, 5 }
  0xd1   :  { %1655 = vst.msk [vmem:[#allocation2 + $0xc] sm:$0xf] %vm1651_vm7, %v1610_v39  ;;  %v295_v49 = vmul.f32 %v4307_v57, %v153_v46  ;;  %v436_v55 = vadd.f32 %v4326_v22, %v294_v0  ;;  %v1365_v53 = vshrl.u32 %v4345_v58, 16  ;;  %v1368_v36 = vshll.u32 %v4345_v58, 16  ;;  %v3228_v50 = vld [vmem:[%s5070_s3 + $0x18] sm:$0xff]  }
  0xd2   :  { %v4361_v40 = vshll.u32 %v3074_v56, 16  ;;  %v4364_v13 = vmul.f32 %v3323_v29, %v502_v32  ;;  %v4370_v62 = vsel %vm3340_vm3, %v1344_v47, %v1348_v5  ;;  %v3072_v19 = vpack.c.bf16 %v4347_v31, %v4347_v31  ;;  %3182 = vmatprep.subr.bf16.mxu0 %v3228_v50  ;;  %3205 = vmatprep.subr.bf16.mxu1 %v3228_v50  ;;  %v46_v32 = vld [vmem:[%s5067_s0 + $0xf0] sm:$0xff] }
  0xd3   :  { %2584 = vrot.lane.b32.xlu0 %v5133_v26, %s3250_s11  ;;  %5134 = vst [vmem:[#allocation6_spill] sm:$0xff] %v4370_v62  ;;  %v1608_v35 = vpop.permute.xlu0 %1607  ;;  %v437_v33 = vadd.f32 %v4326_v22, %v295_v49  ;;  %v572_v48 = vmax.f32 %v436_v55, 0.0  ;;  %v1367_v2 = vrot.slane %v1365_v53, 4  ;;  %v1370_v21 = vrot.slane %v1368_v36, 5  ;;  %3183 = vmatpush3.bf16.msra.mxu0 %v3228_v50 }
  0xd4   :  { %1135 = vrot.lane.b32.xlu1 %v4225_v17, %s3243_s17  ;;  %v4382_v5 = vpack.c.bf16 %v4364_v13, %v4364_v13  ;;  %1654 = vst.msk [vmem:[#allocation2 + $0x8] sm:$0xf] %vm1651_vm7, %v1608_v35  ;;  %v292_v59 = vmul.f32 %v4307_v57, %v150_v42  ;;  %v1626_v14 = vpop.permute.xlu1 %1625  ;;  %v1456_v4 = vrot.slane %v1455_v3, 4  ;;  %v4389_v7 = vshll.u32 %v3072_v19, 16  ;;  %3210 = vmatpush3.bf16.msra.mxu1 %v3228_v50 }
  0xd5   :  { %v4391_v44 = vmax.f32 %v437_v33, 0.0  ;;  %v4394_v56 = vmul.f32 %v3323_v29, %v572_v48  ;;  %1663 = vst.msk [vmem:[#allocation2 + $0x2c] sm:$0xf] %vm1651_vm7, %v1626_v14  ;;  %v1371_v34 = vor.u32 %v1370_v21, %v1367_v2  ;;  %v293_v45 = vmul.f32 %v4307_v57, %v151_v51 }
  0xd6   :  { %v1351_v60 = vshrl.u32 %v4382_v5, 16  ;;  %v1354_v46 = vshll.u32 %v4382_v5, 16  ;;  %v1376_v47 = vrot.slane %v4361_v40, 5  ;;  %v434_v15 = vadd.f32 %v4326_v22, %v292_v59  ;;  %v44_v40 = vld [vmem:[%s5067_s0 + $0xe0] sm:$0xff] }
  0xd7   :  { %1133 = vrot.lane.b32.xlu0 %v4237_v25, %s3243_s17  ;;  %v4405_v63 = vpack.c.bf16 %v4394_v56, %v4394_v56  ;;  %v3090_v52 = vpack.c.bf16 %v4391_v44, %v4391_v44  ;;  %v1624_v0 = vpop.permute.xlu0 %1623  ;;  %v1372_v39 = vrot.slane %v1371_v34, 4  ;;  %v435_v49 = vadd.f32 %v4326_v22, %v293_v45  ;;  %v112_v45 = vld [vmem:[%s5067_s0 + $0x320] sm:$0xff] }
  0xd8   :  { %1151 = vrot.lane.b32.xlu1 %v4269_v37, %s3243_s17  ;;  %v1353_v61 = vrot.slane %v1351_v60, 4  ;;  %v1356_v3 = vrot.slane %v1354_v46, 5  ;;  %1662 = vst.msk [vmem:[#allocation2 + $0x28] sm:$0xf] %vm1651_vm7, %v1624_v0  ;;  %v4419_v55 = vsel %vm3340_vm3, %v1456_v4, %v1460_v1  ;;  %v570_v36 = vmax.f32 %v434_v15, 0.0  ;;  %v114_v1 = vld [vmem:[%s5067_s0 + $0x330] sm:$0xff] }
  0xd9   :  { %5135 = vst [vmem:[#allocation7_spill] sm:$0xff] %v4405_v63  ;;  %5136 = vst [vmem:[#allocation9_spill] sm:$0xff] %v4419_v55  ;;  %v1477_v42 = vshrl.u32 %v4405_v63, 16  ;;  %v1480_v53 = vshll.u32 %v4405_v63, 16  ;;  %v1362_v26 = vrot.slane %v4389_v7, 5  ;;  %v1486_v19 = vshll.u32 %v3090_v52, 16  ;;  %v1975_v7 = vpop.permute.xlu1 %1974 }
  0xda   :  { %v4427_v35 = vmax.f32 %v435_v49, 0.0  ;;  %v188_v33 = vmul.f32 %v4307_v57, %v46_v32  ;;  %v1357_v48 = vor.u32 %v1356_v3, %v1353_v61  ;;  %v4436_v21 = vmul.f32 %v3323_v29, %v570_v36 }
  0xdb   :  { %1149 = vrot.lane.b32.xlu0 %v4340_v24, %s3243_s17  ;;  %v1479_v51 = vrot.slane %v1477_v42, 4  ;;  %v1482_v2 = vrot.slane %v1480_v53, 5  ;;  %v4442_v59 = vsel %vm3340_vm3, %v1372_v39, %v1376_v47  ;;  %v186_v4 = vmul.f32 %v4307_v57, %v44_v40  ;;  %v1973_v32 = vpop.permute.xlu0 %1972  ;;  %v50_v42 = vld [vmem:[%s5067_s0 + $0x110] sm:$0xff] }
  0xdc   :  { %5137 = vst [vmem:[#allocation12_spill] sm:$0xff] %v4427_v35  ;;  %1500 = vrot.lane.b32.xlu1 %v4370_v62, %s3244_s23  ;;  %5138 = vst [vmem:[#allocation13_spill] sm:$0xff] %v4442_v59  ;;  %v3088_v14 = vpack.c.bf16 %v4427_v35, %v4427_v35  ;;  %v330_v50 = vadd.f32 %v4326_v22, %v188_v33  ;;  %v4450_v60 = vpack.c.bf16 %v4436_v21, %v4436_v21  ;;  %vm2020_vm8 = vcmask 322816   ;;  %v118_v33 = vld [vmem:[%s5067_s0 + $0x350] sm:$0xff] }
  0xdd   :  { %v1483_v34 = vor.u32 %v1482_v2, %v1479_v51  ;;  %v256_v46 = vmul.f32 %v4307_v57, %v114_v1  ;;  %v1488_v47 = vrot.slane %v1486_v19, 5  ;;  %v328_v0 = vadd.f32 %v4326_v22, %v186_v4  ;;  %2022 = vst.msk [vmem:[#allocation2 + $0x4] sm:$0xf] %vm2020_vm8, %v1975_v7  ;;  %2021 = vst.msk [vmem:[#allocation2] sm:$0xf] %vm2020_vm8, %v1973_v32  ;;  %v48_v19 = vld [vmem:[%s5067_s0 + $0x100] sm:$0xff] }
  0xde   :  { %v1472_v52 = vshll.u32 %v3088_v14, 16  ;;  %v466_v15 = vmax.f32 %v330_v50, 0.0  ;;  %v1358_v39 = vrot.slane %v1357_v48, 4  ;;  %v1463_v61 = vshrl.u32 %v4450_v60, 16 }
  0xdf   :  { %1498 = vrot.lane.b32.xlu0 %v4163_v30, %s3244_s23  ;;  %v1466_v3 = vshll.u32 %v4450_v60, 16  ;;  %v398_v49 = vadd.f32 %v4326_v22, %v256_v46  ;;  %v1484_v53 = vrot.slane %v1483_v34, 4  ;;  %v464_v30 = vmax.f32 %v328_v0, 0.0 }
  0xe0   :  { %1516 = vrot.lane.b32.xlu1 %v4419_v55, %s3244_s23  ;;  %v619_v36 = vmul.f32 %v3323_v29, %v466_v15  ;;  %v254_v40 = vmul.f32 %v4307_v57, %v112_v45  ;;  %v1465_v1 = vrot.slane %v1463_v61, 4  ;;  %v1474_v51 = vrot.slane %v1472_v52, 5  ;;  %v1991_v45 = vpop.permute.xlu1 %1990  ;;  %v99_v55 = vld [vmem:[%s5067_s0 + $0x2a8] sm:$0x1] }
  0xe1   :  { %v1468_v48 = vrot.slane %v1466_v3, 5  ;;  %v534_v2 = vmax.f32 %v398_v49, 0.0  ;;  %v617_v50 = vmul.f32 %v3323_v29, %v464_v30  ;;  %v192_v7 = vmul.f32 %v4307_v57, %v50_v42  ;;  %2030 = vst.msk [vmem:[#allocation2 + $0x24] sm:$0xf] %vm2020_vm8, %v1991_v45  ;;  %v1989_v3 = vpop.permute.xlu0 %1988 }
  0xe2   :  { %v4477_v14 = vpack.c.bf16 %v619_v36, %v619_v36  ;;  %v396_v4 = vadd.f32 %v4326_v22, %v254_v40  ;;  %v190_v15 = vmul.f32 %v4307_v57, %v48_v19  ;;  %v260_v52 = vmul.f32 %v4307_v57, %v118_v33  ;;  %2029 = vst.msk [vmem:[#allocation2 + $0x20] sm:$0xf] %vm2020_vm8, %v1989_v3  ;;  %v30_v19 = vld [vmem:[%s5067_s0 + $0x60] sm:$0xff] }
  0xe3   :  { %1514 = vrot.lane.b32.xlu0 %v4192_v27, %s3244_s23  ;;  %v1469_v34 = vor.u32 %v1468_v48, %v1465_v1  ;;  %v687_v46 = vmul.f32 %v3323_v29, %v534_v2  ;;  %v4491_v0 = vsel %vm3340_vm3, %v1358_v39, %v1362_v26  ;;  %v4495_v32 = vsel %vm3340_vm3, %v1484_v53, %v1488_v47  ;;  %v116_v26 = vld [vmem:[%s5067_s0 + $0x340] sm:$0xff] }
  0xe4   :  { %1504 = vrot.lane.b32.xlu1 %v4442_v59, %s3244_s23  ;;  %5139 = vst [vmem:[#allocation14_spill] sm:$0xff] %v4491_v0  ;;  %5140 = vst [vmem:[#allocation15_spill] sm:$0xff] %v4495_v32  ;;  %v532_v61 = vmax.f32 %v396_v4, 0.0  ;;  %v334_v36 = vadd.f32 %v4326_v22, %v192_v7  ;;  %v332_v30 = vadd.f32 %v4326_v22, %v190_v15  ;;  %vm2341_vm9 = vcmask 388416  }
  0xe5   :  { %v1470_v49 = vrot.slane %v1469_v34, 4  ;;  %v3104_v42 = vpack.c.bf16 %v687_v46, %v687_v46  ;;  %v4506_v39 = vpack.c.bf16 %v617_v50, %v617_v50  ;;  %v402_v40 = vadd.f32 %v4326_v22, %v260_v52  ;;  %v31_v46 = vld [vmem:[%s5067_s0 + $0x68] sm:$0x1] }
  0xe6   :  { %v685_v53 = vmul.f32 %v3323_v29, %v532_v61  ;;  %v470_v2 = vmax.f32 %v334_v36, 0.0  ;;  %v468_v4 = vmax.f32 %v332_v30, 0.0  ;;  %v258_v34 = vmul.f32 %v4307_v57, %v116_v26 }
  0xe7   :  { %1502 = vrot.lane.b32.xlu0 %v4491_v0, %s3244_s23  ;;  %v4517_v33 = vsel %vm3340_vm3, %v1470_v49, %v1474_v51  ;;  %v2252_v1 = vshrl.u32 %v3104_v42, 16  ;;  %v2255_v48 = vshll.u32 %v3104_v42, 16  ;;  %v538_v7 = vmax.f32 %v402_v40, 0.0 }
  0xe8   :  { %5141 = vst [vmem:[#allocation16_spill] sm:$0xff] %v4517_v33  ;;  %1520 = vrot.lane.b32.xlu1 %v4495_v32, %s3244_s23  ;;  %v3103_v50 = vpack.c.bf16 %v685_v53, %v685_v53  ;;  %v623_v15 = vmul.f32 %v3323_v29, %v470_v2  ;;  %v172_v52 = vmul.f32 %v4307_v57, %v30_v19  ;;  %vm2412_vm10 = vcmask 454016  }
  0xe9   :  { %v621_v49 = vmul.f32 %v3323_v29, %v468_v4  ;;  %v691_v36 = vmul.f32 %v3323_v29, %v538_v7  ;;  %v400_v26 = vadd.f32 %v4326_v22, %v258_v34  ;;  %v173_v53 = vmul.f32 %v4307_v57, %v31_v46  ;;  %v28_v34 = vld [vmem:[%s5067_s0 + $0x50] sm:$0xff] }
  0xea   :  { %v2238_v61 = vshrl.u32 %v3103_v50, 16  ;;  %v2241_v3 = vshll.u32 %v3103_v50, 16  ;;  %v3098_v30 = vpack.c.bf16 %v623_v15, %v623_v15  ;;  %v314_v40 = vadd.f32 %v4326_v22, %v172_v52  ;;  %v1979_v27 = vpop.permute.xlu1 %1978 }
  0xeb   :  { %1518 = vrot.lane.b32.xlu0 %v4517_v33, %s3244_s23  ;;  %v4538_v19 = vrot.slane %v2252_v1, 4  ;;  %v4540_v2 = vrot.slane %v2255_v48, 5  ;;  %v3097_v4 = vpack.c.bf16 %v621_v49, %v621_v49  ;;  %v3106_v51 = vpack.c.bf16 %v691_v36, %v691_v36  ;;  %v29_v1 = vld [vmem:[%s5067_s0 + $0x58] sm:$0x1]  ;;  %2024 = vst.msk [vmem:[#allocation2 + $0xc] sm:$0xf] %vm2020_vm8, %v1979_v27 }
  0xec   :  { %1613 = vrot.lane.b32.xlu1 %v4477_v14, %s3245_s6  ;;  %v2168_v7 = vshrl.u32 %v3098_v30, 16  ;;  %v2171_v45 = vshll.u32 %v3098_v30, 16  ;;  %v536_v47 = vmax.f32 %v400_v26, 0.0  ;;  %v315_v15 = vadd.f32 %v4326_v22, %v173_v53  ;;  %v98_v53 = vld [vmem:[%s5067_s0 + $0x2a0] sm:$0xff] }
  0xed   :  { %v2154_v46 = vshrl.u32 %v3097_v4, 16  ;;  %v2157_v52 = vshll.u32 %v3097_v4, 16  ;;  %v2280_v32 = vshrl.u32 %v3106_v51, 16  ;;  %v2283_v59 = vshll.u32 %v3106_v51, 16 }
  0xee   :  { %v4551_v48 = vrot.slane %v2238_v61, 4  ;;  %v4553_v49 = vrot.slane %v2241_v3, 5  ;;  %v689_v36 = vmul.f32 %v3323_v29, %v536_v47  ;;  %v450_v26 = vmax.f32 %v314_v40, 0.0  ;;  %v1977_v47 = vpop.permute.xlu0 %1976 }
  0xef   :  { %1611 = vrot.lane.b32.xlu0 %v4506_v39, %s3245_s6  ;;  %v4564_v33 = vrot.slane %v2168_v7, 4  ;;  %v4566_v61 = vrot.slane %v2171_v45, 5  ;;  %v4568_v3 = vrot.slane %v2154_v46, 4  ;;  %v4570_v27 = vrot.slane %v2157_v52, 5  ;;  %2023 = vst.msk [vmem:[#allocation2 + $0x8] sm:$0xf] %vm2020_vm8, %v1977_v47 }
  0xf0   :  { %1629 = vrot.lane.b32.xlu1 %v3104_v42, %s3245_s6  ;;  %v4572_v40 = vrot.slane %v2280_v32, 4  ;;  %v451_v62 = vmax.f32 %v315_v15, 0.0  ;;  %v603_v0 = vmul.f32 %v3323_v29, %v450_v26  ;;  %v170_v37 = vmul.f32 %v4307_v57, %v28_v34  ;;  %v1995_v42 = vpop.permute.xlu1 %1994 }
  0xf1   :  { %v4577_v17 = vrot.slane %v2283_v59, 5  ;;  %v171_v45 = vmul.f32 %v4307_v57, %v29_v1  ;;  %v240_v7 = vmul.f32 %v4307_v57, %v98_v53  ;;  %v241_v46 = vmul.f32 %v4307_v57, %v99_v55  ;;  %2032 = vst.msk [vmem:[#allocation2 + $0x2c] sm:$0xf] %vm2020_vm8, %v1995_v42  ;;  %v96_v55 = vld [vmem:[%s5067_s0 + $0x290] sm:$0xff]  ;;  %v97_v42 = vld [vmem:[%s5067_s0 + $0x298] sm:$0x1] }
  0xf2   :  { %v4583_v32 = vpack.c.bf16 %v689_v36, %v689_v36  ;;  %v3117_v15 = vpack.c.bf16 %v603_v0, %v603_v0  ;;  %v3118_v52 = vpack.c.bf16 %v451_v62, %v451_v62  ;;  %v312_v59 = vadd.f32 %v4326_v22, %v170_v37  ;;  %v34_v0 = vld [vmem:[%s5067_s0 + $0x80] sm:$0xff] }
  0xf3   :  { %1627 = vrot.lane.b32.xlu0 %v3103_v50, %s3245_s6  ;;  %v313_v34 = vadd.f32 %v4326_v22, %v171_v45  ;;  %v382_v1 = vadd.f32 %v4326_v22, %v240_v7  ;;  %v383_v26 = vadd.f32 %v4326_v22, %v241_v46  ;;  %v238_v20 = vmul.f32 %v4307_v57, %v96_v55 }
  0xf4   :  { %1617 = vrot.lane.b32.xlu1 %v3098_v30, %s3245_s6  ;;  %v1819_v62 = vshrl.u32 %v3117_v15, 16  ;;  %v1822_v36 = vshll.u32 %v3117_v15, 16  ;;  %v1828_v53 = vshll.u32 %v3118_v52, 16  ;;  %v448_v30 = vmax.f32 %v312_v59, 0.0 }
  0xf5   :  { %v449_v47 = vmax.f32 %v313_v34, 0.0  ;;  %v518_v37 = vmax.f32 %v382_v1, 0.0  ;;  %v519_v46 = vmax.f32 %v383_v26, 0.0  ;;  %v2296_v34 = vpop.permute.xlu1 %2295  ;;  %v239_v55 = vmul.f32 %v4307_v57, %v97_v42 }
  0xf6   :  { %v1821_v45 = vrot.slane %v1819_v62, 4  ;;  %v1824_v7 = vrot.slane %v1822_v36, 5  ;;  %v1830_v15 = vrot.slane %v1828_v53, 5  ;;  %v601_v52 = vmul.f32 %v3323_v29, %v448_v30  ;;  %v1993_v50 = vpop.permute.xlu0 %1992  ;;  %2343 = vst.msk [vmem:[#allocation2 + $0x4] sm:$0xf] %vm2341_vm9, %v2296_v34 }
  0xf7   :  { %1615 = vrot.lane.b32.xlu0 %v3097_v4, %s3245_s6  ;;  %v3116_v59 = vpack.c.bf16 %v449_v47, %v449_v47  ;;  %v671_v1 = vmul.f32 %v3323_v29, %v518_v37  ;;  %v3134_v26 = vpack.c.bf16 %v519_v46, %v519_v46  ;;  %v380_v62 = vadd.f32 %v4326_v22, %v238_v20  ;;  %v35_v20 = vld [vmem:[%s5067_s0 + $0x88] sm:$0x1] }
  0xf8   :  { %1633 = vrot.lane.b32.xlu1 %v3106_v51, %s3245_s6  ;;  %v1825_v4 = vor.u32 %v1824_v7, %v1821_v45  ;;  %2031 = vst.msk [vmem:[#allocation2 + $0x28] sm:$0xf] %vm2020_vm8, %v1993_v50  ;;  %v3115_v36 = vpack.c.bf16 %v601_v52, %v601_v52  ;;  %v176_v30 = vmul.f32 %v4307_v57, %v34_v0  ;;  %vm2515_vm11 = vcmask 519616  }
  0xf9   :  { %v1814_v51 = vshll.u32 %v3116_v59, 16  ;;  %v3133_v53 = vpack.c.bf16 %v671_v1, %v671_v1  ;;  %v1940_v37 = vshll.u32 %v3134_v26, 16  ;;  %v381_v45 = vadd.f32 %v4326_v22, %v239_v55  ;;  %v33_v26 = vld [vmem:[%s5067_s0 + $0x78] sm:$0x1] }
  0xfa   :  { %v1826_v47 = vrot.slane %v1825_v4, 4  ;;  %v516_v7 = vmax.f32 %v380_v62, 0.0  ;;  %v1805_v46 = vshrl.u32 %v3115_v36, 16  ;;  %v1808_v34 = vshll.u32 %v3115_v36, 16  ;;  %v2294_v0 = vpop.permute.xlu0 %2293  ;;  %v32_v4 = vld [vmem:[%s5067_s0 + $0x70] sm:$0xff] }
  0xfb   :  { %1631 = vrot.lane.b32.xlu0 %v4583_v32, %s3245_s6  ;;  %v1816_v42 = vrot.slane %v1814_v51, 5  ;;  %v1931_v24 = vshrl.u32 %v3133_v53, 16  ;;  %v1934_v52 = vshll.u32 %v3133_v53, 16  ;;  %v1942_v59 = vrot.slane %v1940_v37, 5  ;;  %2342 = vst.msk [vmem:[#allocation2] sm:$0xf] %vm2341_vm9, %v2294_v0 }
  0xfc   :  { %v1831_v50 = vsel %vm3340_vm3, %v1826_v47, %v1830_v15  ;;  %v517_v1 = vmax.f32 %v381_v45, 0.0  ;;  %v1807_v55 = vrot.slane %v1805_v46, 4  ;;  %v1810_v62 = vrot.slane %v1808_v34, 5 }
  0xfd   :  { %1982 = vrot.lane.b32.xlu1 %v1831_v50, %s3246_s27  ;;  %v1933_v36 = vrot.slane %v1931_v24, 4  ;;  %v669_v15 = vmul.f32 %v3323_v29, %v516_v7  ;;  %v1936_v51 = vrot.slane %v1934_v52, 5  ;;  %v177_v47 = vmul.f32 %v4307_v57, %v35_v20 }
  0xfe   :  { %v3132_v53 = vpack.c.bf16 %v517_v1, %v517_v1  ;;  %v318_v37 = vadd.f32 %v4326_v22, %v176_v30  ;;  %v1811_v45 = vor.u32 %v1810_v62, %v1807_v55  ;;  %v174_v63 = vmul.f32 %v4307_v57, %v32_v4 }
  0xff   :  { %v3131_v43 = vpack.c.bf16 %v669_v15, %v669_v15  ;;  %v2312_v25 = vpop.permute.xlu1 %2311  ;;  %v175_v50 = vmul.f32 %v4307_v57, %v33_v26  ;;  %v1937_v46 = vor.u32 %v1936_v51, %v1933_v36  ;;  %v319_v7 = vadd.f32 %v4326_v22, %v177_v47  ;;  %v103_v36 = vld [vmem:[%s5067_s0 + $0x2c8] sm:$0x1] }
 0x100   :  { %v1926_v34 = vshll.u32 %v3132_v53, 16  ;;  %2351 = vst.msk [vmem:[#allocation2 + $0x24] sm:$0xf] %vm2341_vm9, %v2312_v25  ;;  %v2310_v24 = vpop.permute.xlu0 %2309  ;;  %v454_v0 = vmax.f32 %v318_v37, 0.0  ;;  %v1812_v52 = vrot.slane %v1811_v45, 4  ;;  %v316_v30 = vadd.f32 %v4326_v22, %v174_v63  ;;  %v102_v25 = vld [vmem:[%s5067_s0 + $0x2c0] sm:$0xff] }
 0x101   :  { %v1917_v1 = vshrl.u32 %v3131_v43, 16  ;;  %v1920_v20 = vshll.u32 %v3131_v43, 16  ;;  %2350 = vst.msk [vmem:[#allocation2 + $0x20] sm:$0xf] %vm2341_vm9, %v2310_v24  ;;  %v1938_v55 = vrot.slane %v1937_v46, 4  ;;  %v455_v4 = vmax.f32 %v319_v7, 0.0 }
 0x102   :  { %v1928_v62 = vrot.slane %v1926_v34, 5  ;;  %v607_v26 = vmul.f32 %v3323_v29, %v454_v0  ;;  %v1817_v43 = vsel %vm3340_vm3, %v1812_v52, %v1816_v42  ;;  %v317_v63 = vadd.f32 %v4326_v22, %v175_v50 }
 0x103   :  { %v1919_v15 = vrot.slane %v1917_v1, 4  ;;  %v1922_v51 = vrot.slane %v1920_v20, 5  ;;  %1980 = vrot.lane.b32.xlu0 %v1817_v43, %s3246_s27  ;;  %v1943_v53 = vsel %vm3340_vm3, %v1938_v55, %v1942_v59  ;;  %v3122_v37 = vpack.c.bf16 %v455_v4, %v455_v4 }
 0x104   :  { %v3121_v47 = vpack.c.bf16 %v607_v26, %v607_v26  ;;  %v452_v45 = vmax.f32 %v316_v30, 0.0  ;;  %v2300_v46 = vpop.permute.xlu1 %2299  ;;  %1998 = vrot.lane.b32.xlu1 %v1943_v53, %s3246_s27  ;;  %v453_v24 = vmax.f32 %v317_v63, 0.0  ;;  %v244_v42 = vmul.f32 %v4307_v57, %v102_v25  ;;  %v100_v26 = vld [vmem:[%s5067_s0 + $0x2b0] sm:$0xff] }
 0x105   :  { %v1923_v34 = vor.u32 %v1922_v51, %v1919_v15  ;;  %2345 = vst.msk [vmem:[#allocation2 + $0xc] sm:$0xf] %vm2341_vm9, %v2300_v46  ;;  %v245_v7 = vmul.f32 %v4307_v57, %v103_v36  ;;  %v1856_v52 = vshll.u32 %v3122_v37, 16  ;;  %v101_v51 = vld [vmem:[%s5067_s0 + $0x2b8] sm:$0x1]  ;;  %vm2612_vm12 = vcmask 585216  }
 0x106   :  { %v1847_v50 = vshrl.u32 %v3121_v47, 16  ;;  %v1850_v0 = vshll.u32 %v3121_v47, 16  ;;  %v605_v1 = vmul.f32 %v3323_v29, %v452_v45  ;;  %v3120_v55 = vpack.c.bf16 %v453_v24, %v453_v24 }
 0x107   :  { %v2298_v59 = vpop.permute.xlu0 %2297  ;;  %v1924_v20 = vrot.slane %v1923_v34, 4  ;;  %v386_v30 = vadd.f32 %v4326_v22, %v244_v42  ;;  %v387_v4 = vadd.f32 %v4326_v22, %v245_v7  ;;  %v1858_v43 = vrot.slane %v1856_v52, 5  ;;  %v47_v7 = vld [vmem:[%s5067_s0 + $0xf8] sm:$0x1] }
 0x108   :  { %2344 = vst.msk [vmem:[#allocation2 + $0x8] sm:$0xf] %vm2341_vm9, %v2298_v59  ;;  %v1849_v25 = vrot.slane %v1847_v50, 4  ;;  %v1852_v36 = vrot.slane %v1850_v0, 5  ;;  %v3119_v15 = vpack.c.bf16 %v605_v1, %v605_v1  ;;  %v1842_v53 = vshll.u32 %v3120_v55, 16 }
 0x109   :  { %v1929_v63 = vsel %vm3340_vm3, %v1924_v20, %v1928_v62  ;;  %v522_v47 = vmax.f32 %v386_v30, 0.0  ;;  %v523_v37 = vmax.f32 %v387_v4, 0.0  ;;  %v242_v42 = vmul.f32 %v4307_v57, %v100_v26 }
 0x10a   :  { %v2316_v45 = vpop.permute.xlu1 %2315  ;;  %1996 = vrot.lane.b32.xlu0 %v1929_v63, %s3246_s27  ;;  %v1853_v46 = vor.u32 %v1852_v36, %v1849_v25  ;;  %v1833_v34 = vshrl.u32 %v3119_v15, 16  ;;  %v1836_v24 = vshll.u32 %v3119_v15, 16  ;;  %v5142_v50 = vshrl.u32 %v4583_v32, 16 }
 0x10b   :  { %2353 = vst.msk [vmem:[#allocation2 + $0x2c] sm:$0xf] %vm2341_vm9, %v2316_v45  ;;  %v675_v0 = vmul.f32 %v3323_v29, %v522_v47  ;;  %v3138_v52 = vpack.c.bf16 %v523_v37, %v523_v37  ;;  %v243_v1 = vmul.f32 %v4307_v57, %v101_v51  ;;  %v384_v30 = vadd.f32 %v4326_v22, %v242_v42 }
 0x10c   :  { %v4674_v62 = vrot.slane %v5142_v50, 4  ;;  %v1854_v59 = vrot.slane %v1853_v46, 4  ;;  %v1835_v20 = vrot.slane %v1833_v34, 4  ;;  %v1838_v55 = vrot.slane %v1836_v24, 5 }
 0x10d   :  { %v2314_v4 = vpop.permute.xlu0 %2313  ;;  %v1844_v26 = vrot.slane %v1842_v53, 5  ;;  %v3137_v25 = vpack.c.bf16 %v675_v0, %v675_v0  ;;  %v385_v36 = vadd.f32 %v4326_v22, %v243_v1  ;;  %v189_v15 = vmul.f32 %v4307_v57, %v47_v7  ;;  %v45_v53 = vld [vmem:[%s5067_s0 + $0xe8] sm:$0x1] }
 0x10e   :  { %2352 = vst.msk [vmem:[#allocation2 + $0x28] sm:$0xf] %vm2341_vm9, %v2314_v4  ;;  %v2367_v63 = vpop.permute.xlu1 %2366  ;;  %v1859_v47 = vsel %vm3340_vm3, %v1854_v59, %v1858_v43  ;;  %v1839_v37 = vor.u32 %v1838_v55, %v1835_v20  ;;  %v520_v51 = vmax.f32 %v384_v30, 0.0  ;;  %v5143_v45 = vshrl.u32 %v4477_v14, 16 }
 0x10f   :  { %1986 = vrot.lane.b32.xlu1 %v1859_v47, %s3246_s27  ;;  %v1959_v34 = vshrl.u32 %v3137_v25, 16  ;;  %v1962_v24 = vshll.u32 %v3137_v25, 16  ;;  %v1968_v42 = vshll.u32 %v3138_v52, 16  ;;  %v521_v50 = vmax.f32 %v385_v36, 0.0  ;;  %2414 = vst.msk [vmem:[#allocation2 + $0x4] sm:$0xf] %vm2412_vm10, %v2367_v63 }
 0x110   :  { %v2142_v46 = vrot.slane %v5143_v45, 4  ;;  %v1840_v7 = vrot.slane %v1839_v37, 4  ;;  %v673_v0 = vmul.f32 %v3323_v29, %v520_v51  ;;  %v331_v43 = vadd.f32 %v4326_v22, %v189_v15  ;;  %v51_v63 = vld [vmem:[%s5067_s0 + $0x118] sm:$0x1] }
 0x111   :  { %v5144_v1 = vshll.u32 %v4477_v14, 16  ;;  %v2365_v20 = vpop.permute.xlu0 %2364  ;;  %v1961_v55 = vrot.slane %v1959_v34, 4  ;;  %v1964_v30 = vrot.slane %v1962_v24, 5  ;;  %v3136_v4 = vpack.c.bf16 %v521_v50, %v521_v50 }
 0x112   :  { %v187_v45 = vmul.f32 %v4307_v57, %v45_v53  ;;  %v2383_v35 = vpop.permute.xlu1 %2382  ;;  %v1845_v25 = vsel %vm3340_vm3, %v1840_v7, %v1844_v26  ;;  %v3135_v52 = vpack.c.bf16 %v673_v0, %v673_v0  ;;  %v467_v36 = vmax.f32 %v331_v43, 0.0  ;;  %v115_v26 = vld [vmem:[%s5067_s0 + $0x338] sm:$0x1]  ;;  %2413 = vst.msk [vmem:[#allocation2] sm:$0xf] %vm2412_vm10, %v2365_v20 }
 0x113   :  { %v2145_v59 = vrot.slane %v5144_v1, 5  ;;  %1984 = vrot.lane.b32.xlu0 %v1845_v25, %s3246_s27  ;;  %v1965_v37 = vor.u32 %v1964_v30, %v1961_v55  ;;  %v1970_v15 = vrot.slane %v1968_v42, 5  ;;  %v5145_v51 = vshrl.u32 %v4506_v39, 16  ;;  %v113_v55 = vld [vmem:[%s5067_s0 + $0x328] sm:$0x1] }
 0x114   :  { %v329_v14 = vadd.f32 %v4326_v22, %v187_v45  ;;  %v1945_v24 = vshrl.u32 %v3135_v52, 16  ;;  %v1948_v50 = vshll.u32 %v3135_v52, 16  ;;  %v1954_v1 = vshll.u32 %v3136_v4, 16  ;;  %2422 = vst.msk [vmem:[#allocation2 + $0x24] sm:$0xf] %vm2412_vm10, %v2383_v35 }
 0x115   :  { %v2146_v47 = vor.u32 %v2145_v59, %v2142_v46  ;;  %v2128_v34 = vrot.slane %v5145_v51, 4  ;;  %v3144_v53 = vpack.c.bf16 %v467_v36, %v467_v36  ;;  %v2381_v7 = vpop.permute.xlu0 %2380  ;;  %v1966_v0 = vrot.slane %v1965_v37, 4 }
 0x116   :  { %v465_v43 = vmax.f32 %v329_v14, 0.0  ;;  %v5146_v59 = vshll.u32 %v4506_v39, 16  ;;  %v2371_v30 = vpop.permute.xlu1 %2370  ;;  %v1947_v45 = vrot.slane %v1945_v24, 4  ;;  %v1950_v25 = vrot.slane %v1948_v50, 5  ;;  %2421 = vst.msk [vmem:[#allocation2 + $0x20] sm:$0xf] %vm2412_vm10, %v2381_v7 }
 0x117   :  { %v2147_v46 = vrot.slane %v2146_v47, 4  ;;  %v2149_v4 = vshll.u32 %v3144_v53, 16  ;;  %v1971_v52 = vsel %vm3340_vm3, %v1966_v0, %v1970_v15  ;;  %v257_v39 = vmul.f32 %v4307_v57, %v115_v26  ;;  %2416 = vst.msk [vmem:[#allocation2 + $0xc] sm:$0xf] %vm2412_vm10, %v2371_v30 }
 0x118   :  { %v2131_v42 = vrot.slane %v5146_v59, 5  ;;  %v3143_v36 = vpack.c.bf16 %v465_v43, %v465_v43  ;;  %2002 = vrot.lane.b32.xlu1 %v1971_v52, %s3246_s27  ;;  %v1951_v47 = vor.u32 %v1950_v25, %v1947_v45  ;;  %v1956_v37 = vrot.slane %v1954_v1, 5  ;;  %v49_v1 = vld [vmem:[%s5067_s0 + $0x108] sm:$0x1] }
 0x119   :  { %v2151_v14 = vrot.slane %v2149_v4, 5  ;;  %v255_v15 = vmul.f32 %v4307_v57, %v113_v55  ;;  %v2369_v20 = vpop.permute.xlu0 %2368  ;;  %v399_v50 = vadd.f32 %v4326_v22, %v257_v39  ;;  %v2258_v53 = vor.u32 %v4540_v2, %v4538_v19  ;;  %v119_v55 = vld [vmem:[%s5067_s0 + $0x358] sm:$0x1] }
 0x11a   :  { %v2132_v51 = vor.u32 %v2131_v42, %v2128_v34  ;;  %v5147_v34 = vshll.u32 %v4583_v32, 16  ;;  %v2135_v35 = vshll.u32 %v3143_v36, 16  ;;  %2415 = vst.msk [vmem:[#allocation2 + $0x8] sm:$0xf] %vm2412_vm10, %v2369_v20  ;;  %v2387_v26 = vpop.permute.xlu1 %2386  ;;  %v1952_v7 = vrot.slane %v1951_v47, 4 }
 0x11b   :  { %v2152_v0 = vsel %vm3340_vm3, %v2147_v46, %v2151_v14  ;;  %v397_v43 = vadd.f32 %v4326_v22, %v255_v15  ;;  %2424 = vst.msk [vmem:[#allocation2 + $0x2c] sm:$0xf] %vm2412_vm10, %v2387_v26  ;;  %v535_v42 = vmax.f32 %v399_v50, 0.0  ;;  %v2244_v19 = vor.u32 %v4553_v49, %v4551_v48 }
 0x11c   :  { %v4724_v24 = vrot.slane %v5147_v34, 5  ;;  %v2133_v32 = vrot.slane %v2132_v51, 4  ;;  %v2137_v59 = vrot.slane %v2135_v35, 5  ;;  %v193_v2 = vmul.f32 %v4307_v57, %v51_v63  ;;  %2303 = vrot.lane.b32.xlu1 %v2152_v0, %s3247_s30  ;;  %v117_v51 = vld [vmem:[%s5067_s0 + $0x348] sm:$0x1] }
 0x11d   :  { %v1957_v30 = vsel %vm3340_vm3, %v1952_v7, %v1956_v37  ;;  %v533_v46 = vmax.f32 %v397_v43, 0.0  ;;  %v2174_v45 = vor.u32 %v4566_v61, %v4564_v33  ;;  %v191_v25 = vmul.f32 %v4307_v57, %v49_v1  ;;  %v2385_v4 = vpop.permute.xlu0 %2384 }
 0x11e   :  { %2000 = vrot.lane.b32.xlu0 %v1957_v30, %s3246_s27  ;;  %v3152_v48 = vpack.c.bf16 %v535_v42, %v535_v42  ;;  %v2259_v49 = vrot.slane %v2258_v53, 4  ;;  %v335_v52 = vadd.f32 %v4326_v22, %v193_v2  ;;  %v2160_v36 = vor.u32 %v4570_v27, %v4568_v3  ;;  %2423 = vst.msk [vmem:[#allocation2 + $0x28] sm:$0xf] %vm2412_vm10, %v2385_v4  ;;  %v2470_v39 = vpop.permute.xlu1 %2469  ;;  %v4791_v4 = vld [vmem:[%s5068_s1] ss:$0 sm:$0xff] }
 0x11f   :  { %v2138_v33 = vsel %vm3340_vm3, %v2133_v32, %v2137_v59  ;;  %v3151_v61 = vpack.c.bf16 %v533_v46, %v533_v46  ;;  %v333_v47 = vadd.f32 %v4326_v22, %v191_v25  ;;  %v261_v37 = vmul.f32 %v4307_v57, %v119_v55  ;;  %2517 = vst.msk [vmem:[#allocation2 + $0x4] sm:$0xf] %vm2515_vm11, %v2470_v39 }
 0x120   :  { %v2261_v14 = vshll.u32 %v3152_v48, 16  ;;  %v2245_v15 = vrot.slane %v2244_v19, 4  ;;  %v471_v63 = vmax.f32 %v335_v52, 0.0  ;;  %v2175_v20 = vrot.slane %v2174_v45, 4  ;;  %v86_v19 = vld [vmem:[%s5067_s0 + $0x230] sm:$0xff] }
 0x121   :  { %v2247_v3 = vshll.u32 %v3151_v61, 16  ;;  %v469_v27 = vmax.f32 %v333_v47, 0.0  ;;  %v403_v34 = vadd.f32 %v4326_v22, %v261_v37  ;;  %v259_v35 = vmul.f32 %v4307_v57, %v117_v51  ;;  %v2468_v50 = vpop.permute.xlu0 %2467  ;;  %v4801_v47 = vld [vmem:[%s5069_s2] ss:$0 sm:$0xff] }
 0x122   :  { %2301 = vrot.lane.b32.xlu0 %v2138_v33, %s3247_s30  ;;  %v2263_v53 = vrot.slane %v2261_v14, 5  ;;  %v3146_v1 = vpack.c.bf16 %v471_v63, %v471_v63  ;;  %v2161_v26 = vrot.slane %v2160_v36, 4  ;;  %v2286_v7 = vor.u32 %v4577_v17, %v4572_v40  ;;  %v2486_v0 = vpop.permute.xlu1 %2485  ;;  %v68_v17 = vld [vmem:[%s5067_s0 + $0x1a0] sm:$0xff]  ;;  %2516 = vst.msk [vmem:[#allocation2] sm:$0xf] %vm2515_vm11, %v2468_v50 }
 0x123   :  { %v2249_v32 = vrot.slane %v2247_v3, 5  ;;  %v3145_v43 = vpack.c.bf16 %v469_v27, %v469_v27  ;;  %v539_v59 = vmax.f32 %v403_v34, 0.0  ;;  %v401_v42 = vadd.f32 %v4326_v22, %v259_v35  ;;  %2525 = vst.msk [vmem:[#allocation2 + $0x24] sm:$0xf] %vm2515_vm11, %v2486_v0  ;;  %v136_v35 = vld [vmem:[%s5067_s0 + $0x3e0] sm:$0xff] }
 0x124   :  { %v2264_v57 = vsel %vm3340_vm3, %v2259_v49, %v2263_v53  ;;  %v2177_v2 = vshll.u32 %v3146_v1, 16  ;;  %v2272_v55 = vor.u32 %v4724_v24, %v4674_v62  ;;  %v154_v24 = vld [vmem:[%s5067_s0 + $0x470] sm:$0xff]  ;;  %v2287_v25 = vrot.slane %v2286_v7, 4 }
 0x125   :  { %2319 = vrot.lane.b32.xlu1 %v2264_v57, %s3247_s30  ;;  %v2250_v22 = vsel %vm3340_vm3, %v2245_v15, %v2249_v32  ;;  %v2163_v40 = vshll.u32 %v3145_v43, 16  ;;  %v3154_v30 = vpack.c.bf16 %v539_v59, %v539_v59  ;;  %v537_v46 = vmax.f32 %v401_v42, 0.0  ;;  %v2484_v62 = vpop.permute.xlu0 %2483 }
 0x126   :  { %2317 = vrot.lane.b32.xlu0 %v2250_v22, %s3247_s30  ;;  %v2179_v45 = vrot.slane %v2177_v2, 5  ;;  %2524 = vst.msk [vmem:[#allocation2 + $0x20] sm:$0xf] %vm2515_vm11, %v2484_v62  ;;  %v228_v48 = vmul.f32 %v4791_v4, %v86_v19  ;;  %v2474_v49 = vpop.permute.xlu1 %2473  ;;  %v210_v39 = vmul.f32 %v4791_v4, %v68_v17  ;;  %v2273_v61 = vrot.slane %v2272_v55, 4 }
 0x127   :  { %v2165_v52 = vrot.slane %v2163_v40, 5  ;;  %v2289_v36 = vshll.u32 %v3154_v30, 16  ;;  %v3153_v51 = vpack.c.bf16 %v537_v46, %v537_v46  ;;  %2519 = vst.msk [vmem:[#allocation2 + $0xc] sm:$0xf] %vm2515_vm11, %v2474_v49  ;;  %v296_v14 = vmul.f32 %v4791_v4, %v154_v24 }
 0x128   :  { %v2180_v33 = vsel %vm3340_vm3, %v2175_v20, %v2179_v45  ;;  %v370_v37 = vadd.f32 %v4801_v47, %v228_v48  ;;  %v69_v20 = vld [vmem:[%s5067_s0 + $0x1a8] sm:$0x1]  ;;  %v352_v34 = vadd.f32 %v4801_v47, %v210_v39  ;;  %v759_v53 = vpack.c.bf16 %v4230_v9, %v4241_v16 }
 0x129   :  { %2307 = vrot.lane.b32.xlu1 %v2180_v33, %s3247_s30  ;;  %v2166_v15 = vsel %vm3340_vm3, %v2161_v26, %v2165_v52  ;;  %v2291_v63 = vrot.slane %v2289_v36, 5  ;;  %v2275_v3 = vshll.u32 %v3153_v51, 16  ;;  %v2472_v27 = vpop.permute.xlu0 %2471  ;;  %v758_v0 = vpack.c.bf16 %v4103_v12, %v3981_v6  ;;  %v137_v12 = vld [vmem:[%s5067_s0 + $0x3e8] sm:$0x1] }
 0x12a   :  { %2305 = vrot.lane.b32.xlu0 %v2166_v15, %s3247_s30  ;;  %2518 = vst.msk [vmem:[#allocation2 + $0x8] sm:$0xf] %vm2515_vm11, %v2472_v27  ;;  %v2490_v50 = vpop.permute.xlu1 %2489  ;;  %v488_v7 = vmax.f32 %v352_v34, 0.0  ;;  %v438_v32 = vadd.f32 %v4801_v47, %v296_v14  ;;  %v211_v43 = vmul.f32 %v4791_v4, %v69_v20  ;;  %v278_v59 = vmul.f32 %v4791_v4, %v136_v35  ;;  %v5149_v34 = vld [vmem:[#allocation7_spill] sm:$0xff] }
 0x12b   :  { %v2292_v1 = vsel %vm3340_vm3, %v2287_v25, %v2291_v63  ;;  %v2277_v26 = vrot.slane %v2275_v3, 5  ;;  %2527 = vst.msk [vmem:[#allocation2 + $0x2c] sm:$0xf] %vm2515_vm11, %v2490_v50  ;;  %v506_v16 = vmax.f32 %v370_v37, 0.0  ;;  %v793_v2 = vpack.c.bf16 %v4256_v41, %v4282_v38  ;;  %v5148_v3 = vld [vmem:[#allocation12_spill] sm:$0xff] }
 0x12c   :  { %803 = vst.msk [vmem:[#allocation2 + $0x14] sm:$0xf] %vm797_vm4, %v759_v53  ;;  %v641_v19 = vmul.f32 %v3323_v29, %v488_v7  ;;  %802 = vst.msk [vmem:[#allocation2 + $0x10] sm:$0xf] %vm797_vm4, %v758_v0  ;;  %v420_v57 = vadd.f32 %v4801_v47, %v278_v59  ;;  %v792_v55 = vpack.c.bf16 %v4122_v28, %v3984_v11  ;;  %v574_v17 = vmax.f32 %v438_v32, 0.0  ;;  %v5150_v7 = vld [vmem:[#allocation8_spill] sm:$0xff] }
 0x12d   :  { %2323 = vrot.lane.b32.xlu1 %v2292_v1, %s3247_s30  ;;  %v2278_v9 = vsel %vm3340_vm3, %v2273_v61, %v2277_v26  ;;  %v2488_v42 = vpop.permute.xlu0 %2487  ;;  %v353_v22 = vadd.f32 %v4801_v47, %v211_v43  ;;  %v659_v30 = vmul.f32 %v3323_v29, %v506_v16  ;;  %v279_v24 = vmul.f32 %v4791_v4, %v137_v12  ;;  %v3229_v11 = vld [vmem:[%s5070_s3 + $0x20] ss:$0 sps:$4 sm:$0xff]   ;;  %v155_v26 = vld [vmem:[%s5067_s0 + $0x478] sm:$0x1] }
 0x12e   :  { %2321 = vrot.lane.b32.xlu0 %v2278_v9, %s3247_s30  ;;  %2526 = vst.msk [vmem:[#allocation2 + $0x28] sm:$0xf] %vm2515_vm11, %v2488_v42  ;;  %v2567_v6 = vpop.permute.xlu1 %2566  ;;  %v556_v40 = vmax.f32 %v420_v57, 0.0  ;;  %v3157_v62 = vpack.c.bf16 %v641_v19, %v641_v19  ;;  %v727_v38 = vmul.f32 %v3323_v29, %v574_v17  ;;  %vm2746_vm13 = vcmask 1043456   ;;  %v5151_v59 = vld [vmem:[#allocation11_spill] sm:$0xff]  ;;  %v5152_v12 = vld [vmem:[#allocation10_spill] sm:$0xff] }
 0x12f   :  { %2614 = vst.msk [vmem:[#allocation2 + $0x4] sm:$0xf] %vm2612_vm12, %v2567_v6  ;;  %v761_v45 = vpack.c.bf16 %v4302_v54, %v4319_v18  ;;  %v4864_v25 = vpack.c.bf16 %v659_v30, %v659_v30  ;;  %v421_v49 = vadd.f32 %v4801_v47, %v279_v24  ;;  %3212 = vmatprep.subr.msk.bf16.mxu0 %vm2746_vm13, %v3229_v11  ;;  %v2748_v52 = vsel %vm2746_vm13, %v3229_v11, 0 }
 0x130   :  { %811 = vst.msk [vmem:[#allocation2 + $0x34] sm:$0xf] %vm797_vm4, %v793_v2  ;;  %810 = vst.msk [vmem:[#allocation2 + $0x30] sm:$0xf] %vm797_vm4, %v792_v55  ;;  %v709_v41 = vmul.f32 %v3323_v29, %v556_v40  ;;  %v2440_v48 = vshrl.u32 %v3157_v62, 16  ;;  %v2443_v29 = vshll.u32 %v3157_v62, 16  ;;  %3185 = vmatpush3.bf16.msra.mxu0 %v2748_v52  ;;  %3213 = vmatprep.subr.msk.bf16.mxu1 %vm2746_vm13, %v3229_v11 }
 0x131   :  { %2374 = vrot.lane.b32.xlu1 %v4382_v5, %s3248_s24  ;;  %v2565_v46 = vpop.permute.xlu0 %2564  ;;  %v489_v5 = vmax.f32 %v353_v22, 0.0  ;;  %805 = vst.msk [vmem:[#allocation2 + $0x1c] sm:$0xf] %vm797_vm4, %v761_v45  ;;  %v4877_v36 = vpack.c.bf16 %v727_v38, %v727_v38  ;;  %vm2721_vm14 = vcmask 588800   ;;  %3211 = vmatpush3.bf16.msra.mxu1 %v2748_v52  ;;  %v795_v61 = vpack.c.bf16 %v4391_v44, %v4394_v56  ;;  %v5153_v22 = vld [vmem:[#allocation3_spill] sm:$0xff] }
 0x132   :  { %2372 = vrot.lane.b32.xlu0 %v4254_v10, %s3248_s24  ;;  %2613 = vst.msk [vmem:[#allocation2] sm:$0xf] %vm2612_vm12, %v2565_v46  ;;  %v2583_v28 = vpop.permute.xlu1 %2582  ;;  %v3159_v18 = vpack.c.bf16 %v709_v41, %v709_v41  ;;  %v2442_v39 = vrot.slane %v2440_v48, 4  ;;  %v2445_v37 = vrot.slane %v2443_v29, 5  ;;  %v794_v27 = vpack.c.bf16 %v5148_v3, %v4436_v21 }
 0x133   :  { %2622 = vst.msk [vmem:[#allocation2 + $0x24] sm:$0xf] %vm2612_vm12, %v2583_v28  ;;  %v3158_v51 = vpack.c.bf16 %v489_v5, %v489_v5  ;;  %v297_v6 = vmul.f32 %v4791_v4, %v155_v26  ;;  %v2537_v55 = vshrl.u32 %v4864_v25, 16  ;;  %v2540_v17 = vshll.u32 %v4864_v25, 16  ;;  %v5154_v5 = vld [vmem:[#allocation4_spill] sm:$0xff] }
 0x134   :  { %v2454_v14 = vshrl.u32 %v3159_v18, 16  ;;  %v2457_v15 = vshll.u32 %v3159_v18, 16  ;;  %813 = vst.msk [vmem:[#allocation2 + $0x3c] sm:$0xf] %vm797_vm4, %v795_v61  ;;  %812 = vst.msk [vmem:[#allocation2 + $0x38] sm:$0xf] %vm797_vm4, %v794_v27  ;;  %v2446_v21 = vor.u32 %v2445_v37, %v2442_v39 }
 0x135   :  { %2390 = vrot.lane.b32.xlu1 %v4450_v60, %s3248_s24  ;;  %v2581_v10 = vpop.permute.xlu0 %2580  ;;  %v760_v60 = vpack.c.bf16 %v4347_v31, %v4364_v13  ;;  %v557_v13 = vmax.f32 %v421_v49, 0.0  ;;  %v439_v62 = vadd.f32 %v4801_v47, %v297_v6  ;;  %v2539_v11 = vrot.slane %v2537_v55, 4  ;;  %v5156_v39 = vld [vmem:[#allocation14_spill] sm:$0xff]  ;;  %v5159_v27 = vld [vmem:[#allocation9_spill] sm:$0xff] }
 0x136   :  { %2388 = vrot.lane.b32.xlu0 %v4293_v23, %s3248_s24  ;;  %2621 = vst.msk [vmem:[#allocation2 + $0x20] sm:$0xf] %vm2612_vm12, %v2581_v10  ;;  %v1132_v54 = vpop.permute.xlu1 %1131  ;;  %v87_v23 = vld [vmem:[%s5067_s0 + $0x238] sm:$0x1]  ;;  %v2456_v50 = vrot.slane %v2454_v14, 4  ;;  %v2459_v53 = vrot.slane %v2457_v15, 5 }
 0x137   :  { %1175 = vst.msk [vmem:[#allocation2 + $0x14] sm:$0xf] %vm1169_vm5, %v1132_v54  ;;  %v229_v20 = vmul.f32 %v4791_v4, %v87_v23  ;;  %v3160_v35 = vpack.c.bf16 %v557_v13, %v557_v13  ;;  %v2447_v9 = vrot.slane %v2446_v21, 4  ;;  %v2542_v28 = vrot.slane %v2540_v17, 5  ;;  %v5155_v54 = vld [vmem:[#allocation5_spill] sm:$0xff]  ;;  %v5157_v13 = vld [vmem:[#allocation6_spill] sm:$0xff] }
 0x138   :  { %804 = vst.msk [vmem:[#allocation2 + $0x18] sm:$0xf] %vm797_vm4, %v760_v60  ;;  %v2460_v16 = vor.u32 %v2459_v53, %v2456_v50  ;;  %v2554_v10 = vshll.u32 %v4877_v36, 16  ;;  %v5160_v21 = vld [vmem:[#allocation13_spill] sm:$0xff] }
 0x139   :  { %2378 = vrot.lane.b32.xlu1 %v4864_v25, %s3248_s24  ;;  %v1130_v31 = vpop.permute.xlu0 %1129  ;;  %v3225_v33 = vld [vmem:[#allocation2] sm:$0xff]   ;;  %v371_v43 = vadd.f32 %v4801_v47, %v229_v20  ;;  %v2463_v42 = vshll.u32 %v3160_v35, 16  ;;  %v575_v25 = vmax.f32 %v439_v62, 0.0  ;;  %v2551_v47 = vshrl.u32 %v4877_v36, 16 }
 0x13a   :  { %2376 = vrot.lane.b32.xlu0 %v4345_v58, %s3248_s24  ;;  %1174 = vst.msk [vmem:[#allocation2 + $0x10] sm:$0xf] %vm1169_vm5, %v1130_v31  ;;  %v1148_v63 = vpop.permute.xlu1 %1147  ;;  %3186 = vmatprep.mubr.msk.bf16.mxu0 %vm2721_vm14, %v3225_v33  ;;  %v2449_v58 = vshll.u32 %v3158_v51, 16  ;;  %v2461_v30 = vrot.slane %v2460_v16, 4  ;;  %v2543_v49 = vor.u32 %v2542_v28, %v2539_v11  ;;  %v2556_v51 = vrot.slane %v2554_v10, 5 }
 0x13b   :  { %1183 = vst.msk [vmem:[#allocation2 + $0x34] sm:$0xf] %vm1169_vm5, %v1148_v63  ;;  %v507_v2 = vmax.f32 %v371_v43, 0.0  ;;  %v2465_v46 = vrot.slane %v2463_v42, 5  ;;  %v3162_v60 = vpack.c.bf16 %v575_v25, %v575_v25  ;;  %v2553_v23 = vrot.slane %v2551_v47, 4  ;;  %v5158_v63 = vld [vmem:[#allocation16_spill] sm:$0xff] }
 0x13c   :  { %v2451_v0 = vrot.slane %v2449_v58, 5  ;;  %v2544_v33 = vrot.slane %v2543_v49, 4 }
 0x13d   :  { %2394 = vrot.lane.b32.xlu1 %v4877_v36, %s3248_s24  ;;  %v1146_v44 = vpop.permute.xlu0 %1145  ;;  %v3227_v56 = vld [vmem:[#allocation2 + $0x20] sm:$0xff]   ;;  %v3161_v24 = vpack.c.bf16 %v507_v2, %v507_v2  ;;  %v2466_v45 = vsel %vm3340_vm3, %v2461_v30, %v2465_v46  ;;  %v2557_v37 = vor.u32 %v2556_v51, %v2553_v23  ;;  %v2560_v14 = vshll.u32 %v3162_v60, 16 }
 0x13e   :  { %2392 = vrot.lane.b32.xlu0 %v5149_v34, %s3248_s24  ;;  %1182 = vst.msk [vmem:[#allocation2 + $0x30] sm:$0xf] %vm1169_vm5, %v1146_v44  ;;  %v2571_v1 = vpop.permute.xlu1 %2570  ;;  %3194 = vmatprep.mubr.msk.bf16.mxu1 %vm2721_vm14, %v3227_v56  ;;  %v2452_v40 = vsel %vm3340_vm3, %v2447_v9, %v2451_v0 }
 0x13f   :  { %2616 = vst.msk [vmem:[#allocation2 + $0xc] sm:$0xf] %vm2612_vm12, %v2571_v1  ;;  %v2546_v18 = vshll.u32 %v3161_v24, 16  ;;  %v2558_v44 = vrot.slane %v2557_v37, 4  ;;  %v2562_v56 = vrot.slane %v2560_v14, 5  ;;  %v5161_v1 = vld [vmem:[#allocation15_spill] sm:$0xff] }
 0x141   :  { %2477 = vrot.lane.b32.xlu1 %v5150_v7, %s3249_s16  ;;  %v2569_v32 = vpop.permute.xlu0 %2568  ;;  %v2548_v61 = vrot.slane %v2546_v18, 5  ;;  %v2563_v35 = vsel %vm3340_vm3, %v2558_v44, %v2562_v56 }
 0x142   :  { %2475 = vrot.lane.b32.xlu0 %v5151_v59, %s3249_s16  ;;  %2615 = vst.msk [vmem:[#allocation2 + $0x8] sm:$0xf] %vm2612_vm12, %v2569_v32  ;;  %v2587_v19 = vpop.permute.xlu1 %2586 }
 0x143   :  { %2624 = vst.msk [vmem:[#allocation2 + $0x2c] sm:$0xf] %vm2612_vm12, %v2587_v19  ;;  %v2549_v58 = vsel %vm3340_vm3, %v2544_v33, %v2548_v61 }
 0x145   :  { %2493 = vrot.lane.b32.xlu1 %v5152_v12, %s3249_s16  ;;  %v2585_v57 = vpop.permute.xlu0 %2584 }
 0x146   :  { %2491 = vrot.lane.b32.xlu0 %v5153_v22, %s3249_s16  ;;  %2623 = vst.msk [vmem:[#allocation2 + $0x28] sm:$0xf] %vm2612_vm12, %v2585_v57  ;;  %v1136_v4 = vpop.permute.xlu1 %1135 }
 0x147   :  { %1177 = vst.msk [vmem:[#allocation2 + $0x1c] sm:$0xf] %vm1169_vm5, %v1136_v4 }
 0x149   :  { %2481 = vrot.lane.b32.xlu1 %v2452_v40, %s3249_s16  ;;  %v1134_v41 = vpop.permute.xlu0 %1133  ;;  %v3230_v38 = vld [vmem:[#allocation2 + $0x8] sm:$0xff]  }
 0x14a   :  { %2479 = vrot.lane.b32.xlu0 %v5154_v5, %s3249_s16  ;;  %1176 = vst.msk [vmem:[#allocation2 + $0x18] sm:$0xf] %vm1169_vm5, %v1134_v41  ;;  %v1152_v48 = vpop.permute.xlu1 %1151  ;;  %3187 = vmatmul.mubr.msk.bf16.vlgmr.msra.gmra.mrb[0].mxu0 %vm2721_vm14, %v3230_v38 }
 0x14b   :  { %1185 = vst.msk [vmem:[#allocation2 + $0x3c] sm:$0xf] %vm1169_vm5, %v1152_v48 }
 0x14d   :  { %2497 = vrot.lane.b32.xlu1 %v2466_v45, %s3249_s16  ;;  %v1150_v52 = vpop.permute.xlu0 %1149  ;;  %v3231_v29 = vld [vmem:[#allocation2 + $0x28] sm:$0xff]  }
 0x14e   :  { %2495 = vrot.lane.b32.xlu0 %v5155_v54, %s3249_s16  ;;  %1184 = vst.msk [vmem:[#allocation2 + $0x38] sm:$0xf] %vm1169_vm5, %v1150_v52  ;;  %v1501_v36 = vpop.permute.xlu1 %1500  ;;  %3195 = vmatmul.mubr.msk.bf16.vlgmr.msra.gmra.mrb[0].mxu1 %vm2721_vm14, %v3231_v29 }
 0x14f   :  { %1544 = vst.msk [vmem:[#allocation2 + $0x14] sm:$0xf] %vm1538_vm6, %v1501_v36 }
 0x151   :  { %2574 = vrot.lane.b32.xlu1 %v5156_v39, %s3250_s11  ;;  %v1499_v31 = vpop.permute.xlu0 %1498 }
 0x152   :  { %2572 = vrot.lane.b32.xlu0 %v5157_v13, %s3250_s11  ;;  %1543 = vst.msk [vmem:[#allocation2 + $0x10] sm:$0xf] %vm1538_vm6, %v1499_v31  ;;  %v1517_v15 = vpop.permute.xlu1 %1516 }
 0x153   :  { %1552 = vst.msk [vmem:[#allocation2 + $0x34] sm:$0xf] %vm1538_vm6, %v1517_v15 }
 0x155   :  { %2590 = vrot.lane.b32.xlu1 %v5158_v63, %s3250_s11  ;;  %v1515_v3 = vpop.permute.xlu0 %1514 }
 0x156   :  { %2588 = vrot.lane.b32.xlu0 %v5159_v27, %s3250_s11  ;;  %1551 = vst.msk [vmem:[#allocation2 + $0x30] sm:$0xf] %vm1538_vm6, %v1515_v3  ;;  %v1505_v20 = vpop.permute.xlu1 %1504 }
 0x157   :  { %1546 = vst.msk [vmem:[#allocation2 + $0x1c] sm:$0xf] %vm1538_vm6, %v1505_v20 }
 0x159   :  { %2578 = vrot.lane.b32.xlu1 %v2549_v58, %s3250_s11  ;;  %v1503_v34 = vpop.permute.xlu0 %1502 }
 0x15a   :  { %2576 = vrot.lane.b32.xlu0 %v5160_v21, %s3250_s11  ;;  %1545 = vst.msk [vmem:[#allocation2 + $0x18] sm:$0xf] %vm1538_vm6, %v1503_v34  ;;  %v1521_v50 = vpop.permute.xlu1 %1520 }
 0x15b   :  { %1554 = vst.msk [vmem:[#allocation2 + $0x3c] sm:$0xf] %vm1538_vm6, %v1521_v50 }
 0x15d   :  { %2594 = vrot.lane.b32.xlu1 %v2563_v35, %s3250_s11  ;;  %v1519_v53 = vpop.permute.xlu0 %1518 }
 0x15e   :  { %2592 = vrot.lane.b32.xlu0 %v5161_v1, %s3250_s11  ;;  %1553 = vst.msk [vmem:[#allocation2 + $0x38] sm:$0xf] %vm1538_vm6, %v1519_v53  ;;  %v1614_v26 = vpop.permute.xlu1 %1613 }
 0x15f   :  { %1657 = vst.msk [vmem:[#allocation2 + $0x14] sm:$0xf] %vm1651_vm7, %v1614_v26 }
 0x161   :  { %v1612_v7 = vpop.permute.xlu0 %1611 }
 0x162   :  { %1656 = vst.msk [vmem:[#allocation2 + $0x10] sm:$0xf] %vm1651_vm7, %v1612_v7  ;;  %v1630_v8 = vpop.permute.xlu1 %1629 }
 0x163   :  { %1665 = vst.msk [vmem:[#allocation2 + $0x34] sm:$0xf] %vm1651_vm7, %v1630_v8 }
 0x165   :  { %v1628_v0 = vpop.permute.xlu0 %1627 }
 0x166   :  { %1664 = vst.msk [vmem:[#allocation2 + $0x30] sm:$0xf] %vm1651_vm7, %v1628_v0  ;;  %v1618_v32 = vpop.permute.xlu1 %1617 }
 0x167   :  { %1659 = vst.msk [vmem:[#allocation2 + $0x1c] sm:$0xf] %vm1651_vm7, %v1618_v32 }
 0x169   :  { %v1616_v43 = vpop.permute.xlu0 %1615 }
 0x16a   :  { %1658 = vst.msk [vmem:[#allocation2 + $0x18] sm:$0xf] %vm1651_vm7, %v1616_v43  ;;  %v1634_v59 = vpop.permute.xlu1 %1633 }
 0x16b   :  { %1667 = vst.msk [vmem:[#allocation2 + $0x3c] sm:$0xf] %vm1651_vm7, %v1634_v59 }
 0x16d   :  { %v1632_v9 = vpop.permute.xlu0 %1631 }
 0x16e   :  { %1666 = vst.msk [vmem:[#allocation2 + $0x38] sm:$0xf] %vm1651_vm7, %v1632_v9 }
 0x16f   :  { %v1983_v16 = vpop.permute.xlu1 %1982 }
 0x170   :  { %2026 = vst.msk [vmem:[#allocation2 + $0x14] sm:$0xf] %vm2020_vm8, %v1983_v16 }
 0x175   :  { %v1981_v42 = vpop.permute.xlu0 %1980 }
 0x176   :  { %2025 = vst.msk [vmem:[#allocation2 + $0x10] sm:$0xf] %vm2020_vm8, %v1981_v42  ;;  %v1999_v19 = vpop.permute.xlu1 %1998 }
 0x177   :  { %2034 = vst.msk [vmem:[#allocation2 + $0x34] sm:$0xf] %vm2020_vm8, %v1999_v19 }
 0x17c   :  { %v1997_v6 = vpop.permute.xlu0 %1996 }
 0x17d   :  { %2033 = vst.msk [vmem:[#allocation2 + $0x30] sm:$0xf] %vm2020_vm8, %v1997_v6 }
 0x181   :  { %v1987_v12 = vpop.permute.xlu1 %1986 }
 0x182   :  { %2028 = vst.msk [vmem:[#allocation2 + $0x1c] sm:$0xf] %vm2020_vm8, %v1987_v12 }
 0x185   :  { %v1985_v57 = vpop.permute.xlu0 %1984 }
 0x186   :  { %2027 = vst.msk [vmem:[#allocation2 + $0x18] sm:$0xf] %vm2020_vm8, %v1985_v57 }
 0x18a   :  { %v2003_v2 = vpop.permute.xlu1 %2002 }
 0x18b   :  { %2036 = vst.msk [vmem:[#allocation2 + $0x3c] sm:$0xf] %vm2020_vm8, %v2003_v2 }
 0x18e   :  { %v2304_v55 = vpop.permute.xlu1 %2303 }
 0x18f   :  { %2347 = vst.msk [vmem:[#allocation2 + $0x14] sm:$0xf] %vm2341_vm9, %v2304_v55 }
 0x190   :  { %v2001_v17 = vpop.permute.xlu0 %2000 }
 0x191   :  { %2035 = vst.msk [vmem:[#allocation2 + $0x38] sm:$0xf] %vm2020_vm8, %v2001_v17 }
 0x194   :  { %v2302_v22 = vpop.permute.xlu0 %2301 }
 0x195   :  { %2346 = vst.msk [vmem:[#allocation2 + $0x10] sm:$0xf] %vm2341_vm9, %v2302_v22 }
 0x197   :  { %v2320_v40 = vpop.permute.xlu1 %2319 }
 0x198   :  { %2355 = vst.msk [vmem:[#allocation2 + $0x34] sm:$0xf] %vm2341_vm9, %v2320_v40  ;;  %v2318_v30 = vpop.permute.xlu0 %2317 }
 0x199   :  { %2354 = vst.msk [vmem:[#allocation2 + $0x30] sm:$0xf] %vm2341_vm9, %v2318_v30 }
 0x19b   :  { %v2308_v46 = vpop.permute.xlu1 %2307 }
 0x19c   :  { %2349 = vst.msk [vmem:[#allocation2 + $0x1c] sm:$0xf] %vm2341_vm9, %v2308_v46  ;;  %v2306_v4 = vpop.permute.xlu0 %2305 }
 0x19d   :  { %2348 = vst.msk [vmem:[#allocation2 + $0x18] sm:$0xf] %vm2341_vm9, %v2306_v4 }
 0x19f   :  { %v2324_v62 = vpop.permute.xlu1 %2323 }
 0x1a0   :  { %2357 = vst.msk [vmem:[#allocation2 + $0x3c] sm:$0xf] %vm2341_vm9, %v2324_v62  ;;  %v2322_v24 = vpop.permute.xlu0 %2321 }
 0x1a1   :  { %2356 = vst.msk [vmem:[#allocation2 + $0x38] sm:$0xf] %vm2341_vm9, %v2322_v24 }
 0x1a3   :  { %v2375_v11 = vpop.permute.xlu1 %2374 }
 0x1a4   :  { %2418 = vst.msk [vmem:[#allocation2 + $0x14] sm:$0xf] %vm2412_vm10, %v2375_v11  ;;  %v2373_v28 = vpop.permute.xlu0 %2372 }
 0x1a5   :  { %2417 = vst.msk [vmem:[#allocation2 + $0x10] sm:$0xf] %vm2412_vm10, %v2373_v28 }
 0x1a7   :  { %v2391_v41 = vpop.permute.xlu1 %2390 }
 0x1a8   :  { %2426 = vst.msk [vmem:[#allocation2 + $0x34] sm:$0xf] %vm2412_vm10, %v2391_v41  ;;  %v2389_v38 = vpop.permute.xlu0 %2388 }
 0x1a9   :  { %2425 = vst.msk [vmem:[#allocation2 + $0x30] sm:$0xf] %vm2412_vm10, %v2389_v38 }
 0x1ab   :  { %v2379_v5 = vpop.permute.xlu1 %2378 }
 0x1ac   :  { %2420 = vst.msk [vmem:[#allocation2 + $0x1c] sm:$0xf] %vm2412_vm10, %v2379_v5  ;;  %v2377_v45 = vpop.permute.xlu0 %2376 }
 0x1ad   :  { %2419 = vst.msk [vmem:[#allocation2 + $0x18] sm:$0xf] %vm2412_vm10, %v2377_v45 }
 0x1af   :  { %v2395_v25 = vpop.permute.xlu1 %2394 }
 0x1b0   :  { %2428 = vst.msk [vmem:[#allocation2 + $0x3c] sm:$0xf] %vm2412_vm10, %v2395_v25  ;;  %v2393_v47 = vpop.permute.xlu0 %2392 }
 0x1b1   :  { %2427 = vst.msk [vmem:[#allocation2 + $0x38] sm:$0xf] %vm2412_vm10, %v2393_v47 }
 0x1b3   :  { %v2478_v10 = vpop.permute.xlu1 %2477 }
 0x1b4   :  { %2521 = vst.msk [vmem:[#allocation2 + $0x14] sm:$0xf] %vm2515_vm11, %v2478_v10  ;;  %v2476_v48 = vpop.permute.xlu0 %2475 }
 0x1b5   :  { %2520 = vst.msk [vmem:[#allocation2 + $0x10] sm:$0xf] %vm2515_vm11, %v2476_v48 }
 0x1b7   :  { %v2494_v49 = vpop.permute.xlu1 %2493 }
 0x1b8   :  { %2529 = vst.msk [vmem:[#allocation2 + $0x34] sm:$0xf] %vm2515_vm11, %v2494_v49  ;;  %v2492_v52 = vpop.permute.xlu0 %2491 }
 0x1b9   :  { %2528 = vst.msk [vmem:[#allocation2 + $0x30] sm:$0xf] %vm2515_vm11, %v2492_v52 }
 0x1bb   :  { %v2482_v29 = vpop.permute.xlu1 %2481 }
 0x1bc   :  { %2523 = vst.msk [vmem:[#allocation2 + $0x1c] sm:$0xf] %vm2515_vm11, %v2482_v29  ;;  %v2480_v54 = vpop.permute.xlu0 %2479 }
 0x1bd   :  { %2522 = vst.msk [vmem:[#allocation2 + $0x18] sm:$0xf] %vm2515_vm11, %v2480_v54 }
 0x1bf   :  { %v2498_v18 = vpop.permute.xlu1 %2497 }
 0x1c0   :  { %2531 = vst.msk [vmem:[#allocation2 + $0x3c] sm:$0xf] %vm2515_vm11, %v2498_v18  ;;  %v2496_v60 = vpop.permute.xlu0 %2495 }
 0x1c1   :  { %2530 = vst.msk [vmem:[#allocation2 + $0x38] sm:$0xf] %vm2515_vm11, %v2496_v60 }
 0x1c3   :  { %v2575_v23 = vpop.permute.xlu1 %2574 }
 0x1c4   :  { %2618 = vst.msk [vmem:[#allocation2 + $0x14] sm:$0xf] %vm2612_vm12, %v2575_v23  ;;  %v2573_v51 = vpop.permute.xlu0 %2572 }
 0x1c5   :  { %2617 = vst.msk [vmem:[#allocation2 + $0x10] sm:$0xf] %vm2612_vm12, %v2573_v51 }
 0x1c7   :  { %v2591_v36 = vpop.permute.xlu1 %2590 }
 0x1c8   :  { %2626 = vst.msk [vmem:[#allocation2 + $0x34] sm:$0xf] %vm2612_vm12, %v2591_v36  ;;  %v2589_v39 = vpop.permute.xlu0 %2588 }
 0x1c9   :  { %2625 = vst.msk [vmem:[#allocation2 + $0x30] sm:$0xf] %vm2612_vm12, %v2589_v39 }
 0x1cb   :  { %v2579_v31 = vpop.permute.xlu1 %2578 }
 0x1cc   :  { %2620 = vst.msk [vmem:[#allocation2 + $0x1c] sm:$0xf] %vm2612_vm12, %v2579_v31  ;;  %v2577_v13 = vpop.permute.xlu0 %2576  ;;  %v3232_v33 = vld [vmem:[#allocation2 + $0x10] sm:$0xff]  }
 0x1cd   :  { %2619 = vst.msk [vmem:[#allocation2 + $0x18] sm:$0xf] %vm2612_vm12, %v2577_v13  ;;  %3190 = vmatprep.mubr.msk.bf16.mxu0 %vm2721_vm14, %v3232_v33 }
 0x1cf   :  { %v2595_v61 = vpop.permute.xlu1 %2594 }
 0x1d0   :  { %2628 = vst.msk [vmem:[#allocation2 + $0x3c] sm:$0xf] %vm2612_vm12, %v2595_v61  ;;  %v2593_v37 = vpop.permute.xlu0 %2592  ;;  %v3233_v14 = vld [vmem:[#allocation2 + $0x30] sm:$0xff]  }
 0x1d1   :  { %2627 = vst.msk [vmem:[#allocation2 + $0x38] sm:$0xf] %vm2612_vm12, %v2593_v37  ;;  %3198 = vmatprep.mubr.msk.bf16.mxu1 %vm2721_vm14, %v3233_v14 }
 0x1d4   :  { %v3234_v15 = vld [vmem:[#allocation2 + $0x18] sm:$0xff]  }
 0x1d5   :  { %3191 = vmatmul.mubr.msk.bf16.gmra.mrb[4].mxu0 %vm2721_vm14, %v3234_v15 }
 0x1d8   :  { %v3235_v63 = vld [vmem:[#allocation2 + $0x38] sm:$0xff]  }
 0x1d9   :  { %3199 = vmatmul.mubr.msk.bf16.gmra.mrb[4].mxu1 %vm2721_vm14, %v3235_v63 }
 0x21d   :  { %v3188_v3 = vpop.f32.mrb[0].mxu0 }
 0x21e   :  { %2849 = vst [vmem:[%s5071_s4 + $0x10] sm:$0xff] %v3188_v3  ;;  %v2784_v27 = vpop.f32.mrb[1].mxu0 }
 0x21f   :  { %2847 = vst [vmem:[%s5071_s4] sm:$0xff] %v2784_v27  ;;  %v3189_v58 = vpop.f32.mrb[2].mxu0 }
 0x220   :  { %2850 = vst [vmem:[%s5071_s4 + $0x18] sm:$0xff] %v3189_v58  ;;  %v2787_v44 = vpop.f32.mrb[3].mxu0 }
 0x221   :  { %2848 = vst [vmem:[%s5071_s4 + $0x8] sm:$0xff] %v2787_v44  ;;  %v3196_v56 = vpop.f32.mrb[0].mxu1 }
 0x222   :  { %2857 = vst [vmem:[%s5071_s4 + $0x50] sm:$0xff] %v3196_v56  ;;  %v2816_v20 = vpop.f32.mrb[1].mxu1 }
 0x223   :  { %2855 = vst [vmem:[%s5071_s4 + $0x40] sm:$0xff] %v2816_v20  ;;  %v3197_v34 = vpop.f32.mrb[2].mxu1 }
 0x224   :  { %2858 = vst [vmem:[%s5071_s4 + $0x58] sm:$0xff] %v3197_v34  ;;  %v2819_v21 = vpop.f32.mrb[3].mxu1 }
 0x225   :  { %2856 = vst [vmem:[%s5071_s4 + $0x48] sm:$0xff] %v2819_v21 }
 0x2a8   :  { %v3192_v35 = vpop.f32.mrb[4].mxu0 }
 0x2a9   :  { %2853 = vst [vmem:[%s5071_s4 + $0x30] sm:$0xff] %v3192_v35  ;;  %v2800_v50 = vpop.f32.mrb[5].mxu0 }
 0x2aa   :  { %2851 = vst [vmem:[%s5071_s4 + $0x20] sm:$0xff] %v2800_v50  ;;  %v3193_v53 = vpop.f32.mrb[6].mxu0 }
 0x2ab   :  { %2854 = vst [vmem:[%s5071_s4 + $0x38] sm:$0xff] %v3193_v53  ;;  %v2803_v1 = vpop.f32.mrb[7].mxu0 }
 0x2ac   :  { %2852 = vst [vmem:[%s5071_s4 + $0x28] sm:$0xff] %v2803_v1  ;;  %v3200_v26 = vpop.f32.mrb[4].mxu1 }
 0x2ad   :  { %2861 = vst [vmem:[%s5071_s4 + $0x70] sm:$0xff] %v3200_v26  ;;  %v2832_v7 = vpop.f32.mrb[5].mxu1 }
 0x2ae   :  { %2859 = vst [vmem:[%s5071_s4 + $0x60] sm:$0xff] %v2832_v7  ;;  %v3201_v8 = vpop.f32.mrb[6].mxu1 }
 0x2af   :  { %2862 = vst [vmem:[%s5071_s4 + $0x78] sm:$0xff] %v3201_v8  ;;  %v2835_v0 = vpop.f32.mrb[7].mxu1 }
 0x2b0   :  { %2860 = vst [vmem:[%s5071_s4 + $0x68] sm:$0xff] %v2835_v0 }

</bundles_post_ra>
